<compile_context>
chip_gen: v7x
topology: tpu7x:2x2x1
jax: 0.10.0
libtpu: 0.0.40
codegen_flags: <defaults>
</compile_context>

<pallas_src>
import jax
import jax.numpy as jnp
from jax.experimental import pallas as pl
from jax.experimental.pallas import tpu as pltpu

# ----------------------------- hyperparameters ------------------------------
B = 2                      # graphs per batch
N_PER_GRAPH = 16           # nodes per graph
NT = B * N_PER_GRAPH       # 32 nodes total (both graphs stacked along sublanes)
TOPO_IN = 8                # train_dataset[0].topo_feat.size(1)
FEAT_IN = 8                # feature_in_feats
H_T = 16                   # topology_h_feats (DGCNN hidden_channels)
NUM_LAYERS = 3
H_F = 4                    # feature_h_feats (GAT hidden per head)
GAT_HEADS = 8
OUT_FEATS = 32             # out_feats (must be 32: att_t / lin1 act on the DGCNN 32-d output)
NUM_CLASSES = 3
K = max(10, N_PER_GRAPH)   # DGCNN sort-pool k (0.6-quantile of node counts, min 10)
D_TOTAL = H_T * NUM_LAYERS + 1        # total_latent_dim = 49
CONV1_CH, CONV2_CH = 16, 32
CONV2_KW = 5
POOLED = (K - 2) // 2 + 1             # 8 positions after MaxPool1d(2,2)
L_CONV2 = POOLED - CONV2_KW + 1       # 4 positions after conv2

NEG_SLOPE = 0.2
MASK_VAL = -1e30
F32 = jnp.float32

# TODO(synk): sort-pool pad/truncate for k != nodes-per-graph is not implemented
# (here k == max(10, 16) == N_PER_GRAPH so every node is kept).
assert K == N_PER_GRAPH

# --------------------------- parameter slab layout ---------------------------
# 27 zero-padded [32, 32] weight blocks followed by a 16-row bias band (1 row/bias).
_WBLK = ('gw1', 'gw2', 'gw3', 'gw4',
         'c1w1', 'c1w2', 'c1w3', 'c1w4',
         'c2w0', 'c2w1', 'c2w2', 'c2w3', 'c2w4',
         'l1w0', 'l1w1', 'l1w2', 'l1w3',
         'g1w', 'g1as', 'g1ad', 'g2w', 'g2sd',
         'attw_t', 'attw_f', 'qw', 'l1wh', 'l2w')
_WIDX = {n: i for i, n in enumerate(_WBLK)}
_BROW = ('gb1', 'gb2', 'gb3', 'gb4', 'c1b', 'c2b', 'l1tb', 'g1b', 'g2b',
         'attb_t', 'attb_f', 'qb', 'l1bh', 'l2b')
_BIDX = {n: i for i, n in enumerate(_BROW)}
N_WBLK = len(_WBLK)                 # 27
BIAS_OFF = 32 * N_WBLK              # 864
PSLAB_ROWS = BIAS_OFF + 16          # 880

# ------------------------------ aux slab layout ------------------------------
AUX_ANORM = 0          # [32,32]  block-diag normalized GCN adjacency
AUX_ADJ = 32           # [32,32]  block-diag edge mask with self loops (GAT)
AUX_SAMEG = 64         # [32,32]  same-graph mask
AUX_LT = 96            # [32,32]  lt[r,c] = (r < c)  (sort-pool tie break)
AUX_HEADCOL = 128      # [256,32] headcol[h*32+i, c] = (c//4 == h)
AUX_POOLMAT = 384      # [8,32]   rows 0:B = per-graph sum-pool indicators
AUX_POOLTGT = 392      # [16,32]  col0 = 2q, col1 = 2q+1 (maxpool slot targets)
AUX_MISC = 408         # [8,32]   row 0 = graph offsets 16*(i//16)
AUX_ROWS = 416


# ------------------------------ the fused kernel ------------------------------
def _net_kernel(nd_ref, aux_ref, p_ref, o_ref):
    def mm(a, b):
        return jnp.dot(a, b, preferred_element_type=F32)

    def W(name):                       # [32,32] zero-padded weight block
        return p_ref[pl.ds(32 * _WIDX[name], 32), :]

    def Bv(name):                      # [1,32] zero-padded bias row
        return p_ref[pl.ds(BIAS_OFF + _BIDX[name], 1), :]

    topo = nd_ref[pl.ds(0, NT), :]                 # [32,32], cols 0:8 real
    feat = nd_ref[pl.ds(NT, NT), :]                # [32,32], cols 0:8 real
    a_n = aux_ref[pl.ds(AUX_ANORM, NT), :]
    adj = aux_ref[pl.ds(AUX_ADJ, NT), :]
    same_g = aux_ref[pl.ds(AUX_SAMEG, NT), :]
    lt_mask = aux_ref[pl.ds(AUX_LT, NT), :]
    pool_mat = aux_ref[pl.ds(AUX_POOLMAT, B), :]           # [2,32]
    ptgt = aux_ref[pl.ds(AUX_POOLTGT, B * POOLED), :]      # [16,32]
    goff_row = aux_ref[pl.ds(AUX_MISC, 1), :]              # [1,32]

    # ---------------------------- topology view: DGCNN ----------------------
    x1 = jnp.tanh(mm(a_n, mm(topo, W('gw1'))) + Bv('gb1'))
    x2 = jnp.tanh(mm(a_n, mm(x1, W('gw2'))) + Bv('gb2'))
    x3 = jnp.tanh(mm(a_n, mm(x2, W('gw3'))) + Bv('gb3'))
    x4f = jnp.tanh(mm(a_n, mm(x3, W('gw4'))) + Bv('gb4'))  # col 0 = sort channel

    # global_sort_pool (k == nodes per graph): per-graph descending rank.
    # Ties broken by ascending node index (PyTorch's sort order for exact ties may differ).
    score_col = x4f[:, 0:1]                                # [32,1]
    score_row = jnp.transpose(x4f)[0:1, :]                 # [1,32]
    gt = score_col > score_row                             # prec[j,i]: j precedes i
    eq = (score_col == score_row) & (lt_mask > 0.0)
    prec = jnp.where((gt | eq) & (same_g > 0.0), 1.0, 0.0)
    pos_row = mm(jnp.ones((1, NT), F32), prec) + goff_row  # [1,32] global sorted slot
    sel_e = jnp.where(pos_row == ptgt[:, 0:1], 1.0, 0.0)   # [16,32]
    sel_o = jnp.where(pos_row == ptgt[:, 1:2], 1.0, 0.0)

    # conv1 (Conv1d(1,16,49,stride=49)) + ReLU, computed in node order
    pre = (mm(x1, W('c1w1')) + mm(x2, W('c1w2')) +
           mm(x3, W('c1w3')) + mm(x4f, W('c1w4')))
    yr = jnp.maximum(pre + Bv('c1b'), 0.0)                 # [32,32]

    # MaxPool1d(2,2) over sorted positions (per graph)
    pooled = jnp.maximum(mm(sel_e, yr), mm(sel_o, yr))     # [16,32]

    # conv2 (Conv1d(16,32,5)) + ReLU: per-tap shifted slices of both graphs
    z = Bv('c2b')
    for k in range(CONV2_KW):
        sh = jnp.concatenate([pooled[k:k + L_CONV2, :],
                              pooled[POOLED + k:POOLED + k + L_CONV2, :]], axis=0)
        z = z + mm(sh, W('c2w%d' % k))
    z = jnp.maximum(z, 0.0)                                # [8,32]

    # DGCNN lin1; torch's channel-major flatten is folded into the per-tap weights.
    x_t = Bv('l1tb')
    for t in range(L_CONV2):
        rows = jnp.concatenate([z[t:t + 1, :],
                                z[L_CONV2 + t:L_CONV2 + t + 1, :]], axis=0)
        x_t = x_t + mm(rows, W('l1w%d' % t))               # [2,32]

    # ---------------------------- feature view: 2-layer GAT -----------------
    def att_softmax(e):
        e = jnp.where(e > 0.0, e, NEG_SLOPE * e)           # LeakyReLU(0.2)
        e = jnp.where(adj > 0.0, e, MASK_VAL)              # edges + self loops only
        e = e - jnp.max(e, axis=1, keepdims=True)
        p = jnp.exp(e)
        return p * pl.reciprocal(jnp.sum(p, axis=1, keepdims=True), approx=True)

    h1 = mm(feat, W('g1w'))                                # [32,32] (8 heads x 4)
    a_src = mm(h1, W('g1as'))                              # [32,32], cols 0:8 valid
    a_dst = mm(h1, W('g1ad'))
    a_srcT = jnp.transpose(a_src)                          # rows 0:8 valid
    alphas = [att_softmax(a_dst[:, h:h + 1] + a_srcT[h:h + 1, :])
              for h in range(GAT_HEADS)]
    alpha = jnp.concatenate(alphas, axis=0)                # [256,32]
    ow = mm(alpha, h1)                                     # single aggregation matmul
    x1g = Bv('g1b')
    for h in range(GAT_HEADS):
        hc = aux_ref[pl.ds(AUX_HEADCOL + h * NT, NT), :]   # head-h column mask
        x1g = x1g + ow[h * NT:(h + 1) * NT, :] * hc
    x1g = jnp.where(x1g > 0.0, x1g, jnp.exp(x1g) - 1.0)    # ELU
    # TODO(synk): F.dropout between the GAT layers is omitted (eval mode -> identity).

    h2 = mm(x1g, W('g2w'))                                 # [32,32]
    sc = mm(h2, W('g2sd'))                                 # col0 = src, col1 = dst scores
    e2 = sc[:, 1:2] + jnp.transpose(sc)[0:1, :]
    alpha2 = att_softmax(e2)
    x2g = mm(alpha2, h2) + Bv('g2b')
    x_f = mm(pool_mat, x2g)                                # [2,32] global_add_pool

    # ---------------------------- attention fusion + MLP head ---------------
    def att_score(x, wname, bname):
        return (mm(jnp.tanh(mm(x, W(wname)) + Bv(bname)), W('qw')) + Bv('qb'))[:, 0:1]

    at = att_score(x_t, 'attw_t', 'attb_t')                # [2,1]
    af = att_score(x_f, 'attw_f', 'attb_f')
    m = jnp.maximum(at, af)                                # stabilized 2-way softmax
    et = jnp.exp(at - m)
    ef = jnp.exp(af - m)
    inv = 1.0 / (et + ef)
    x = (et * inv) * x_t + (ef * inv) * x_f                # [2,32]
    x = jnp.maximum(mm(x, W('l1wh')) + Bv('l1bh'), 0.0)
    o_ref[...] = mm(x, W('l2w')) + Bv('l2b')               # [2,32] (cols 0:3 = logits)


# ------------------------------- host wrapper ---------------------------------
@jax.jit
def net_forward(node_slab, aux_slab, param_slab):
    out = pl.pallas_call(
        _net_kernel,
        grid=(1,),
        out_shape=jax.ShapeDtypeStruct((B, 32), jnp.float32),
        in_specs=[
            pl.BlockSpec(node_slab.shape, lambda i: (0, 0)),
            pl.BlockSpec(aux_slab.shape, lambda i: (0, 0)),
            pl.BlockSpec(param_slab.shape, lambda i: (0, 0)),
        ],
        out_specs=pl.BlockSpec((B, 32), lambda i: (0, 0)),
        compiler_params=pltpu.CompilerParams(dimension_semantics=("arbitrary",)),
    )(node_slab, aux_slab, param_slab)
    return out[:, :NUM_CLASSES]


# ----------------------------- slab construction ------------------------------
def init_param_slab(key):
    keys = iter(jax.random.split(key, 64))

    def blk(rows, cols, scale=0.1):
        w = scale * jax.random.normal(next(keys), (rows, cols), dtype=jnp.float32)
        return jnp.zeros((32, 32), jnp.float32).at[:rows, :cols].set(w)

    def brow(cols, scale=0.1):
        b = scale * jax.random.normal(next(keys), (1, cols), dtype=jnp.float32)
        return jnp.zeros((1, 32), jnp.float32).at[:, :cols].set(b)

    blocks = {}
    # DGCNN GCN stack
    blocks['gw1'] = blk(TOPO_IN, H_T)
    blocks['gw2'] = blk(H_T, H_T)
    blocks['gw3'] = blk(H_T, H_T)
    blocks['gw4'] = blk(H_T, 1)
    # DGCNN conv1 (per-layer blocks of the width-49 kernel)
    blocks['c1w1'] = blk(H_T, CONV1_CH)
    blocks['c1w2'] = blk(H_T, CONV1_CH)
    blocks['c1w3'] = blk(H_T, CONV1_CH)
    blocks['c1w4'] = blk(1, CONV1_CH)
    # DGCNN conv2 taps (== torch weight[:, :, k].T)
    for k in range(CONV2_KW):
        blocks['c2w%d' % k] = blk(CONV1_CH, CONV2_CH)
    # DGCNN lin1 per-tap blocks (channel-major flatten folded into this layout)
    for t in range(L_CONV2):
        blocks['l1w%d' % t] = blk(CONV2_CH, 32)
    # GAT layer 1: block-diagonal attention vectors give all heads in one matmul
    blocks['g1w'] = blk(FEAT_IN, GAT_HEADS * H_F)
    a_src = 0.1 * jax.random.normal(next(keys), (GAT_HEADS, H_F), dtype=jnp.float32)
    a_dst = 0.1 * jax.random.normal(next(keys), (GAT_HEADS, H_F), dtype=jnp.float32)
    as_blk = jnp.zeros((32, 32), jnp.float32)
    ad_blk = jnp.zeros((32, 32), jnp.float32)
    for h in range(GAT_HEADS):
        as_blk = as_blk.at[h * H_F:(h + 1) * H_F, h].set(a_src[h])
        ad_blk = ad_blk.at[h * H_F:(h + 1) * H_F, h].set(a_dst[h])
    blocks['g1as'] = as_blk
    blocks['g1ad'] = ad_blk
    # GAT layer 2 (heads=1, concat=False)
    blocks['g2w'] = blk(GAT_HEADS * H_F, OUT_FEATS)
    g2sd = jnp.zeros((32, 32), jnp.float32)
    g2sd = g2sd.at[:OUT_FEATS, 0].set(
        0.1 * jax.random.normal(next(keys), (OUT_FEATS,), dtype=jnp.float32))
    g2sd = g2sd.at[:OUT_FEATS, 1].set(
        0.1 * jax.random.normal(next(keys), (OUT_FEATS,), dtype=jnp.float32))
    blocks['g2sd'] = g2sd
    # fusion head
    blocks['attw_t'] = blk(OUT_FEATS, 32)
    blocks['attw_f'] = blk(OUT_FEATS, 32)
    blocks['qw'] = blk(32, 1)
    blocks['l1wh'] = blk(OUT_FEATS, 32)
    blocks['l2w'] = blk(32, NUM_CLASSES)

    biases = {
        'gb1': brow(H_T), 'gb2': brow(H_T), 'gb3': brow(H_T), 'gb4': brow(1),
        'c1b': brow(CONV1_CH), 'c2b': brow(CONV2_CH), 'l1tb': brow(32),
        'g1b': brow(GAT_HEADS * H_F), 'g2b': brow(OUT_FEATS),
        'attb_t': brow(32), 'attb_f': brow(32), 'qb': brow(1),
        'l1bh': brow(32), 'l2b': brow(NUM_CLASSES),
    }
    slab = jnp.concatenate(
        [blocks[n] for n in _WBLK] + [biases[n] for n in _BROW] +
        [jnp.zeros((16 - len(_BROW), 32), jnp.float32)], axis=0)
    assert slab.shape == (PSLAB_ROWS, 32)
    return slab


def build_data_slabs(topo, feat, adj_blocks):
    node = jnp.zeros((2 * NT, 32), jnp.float32)
    node = node.at[:NT, :TOPO_IN].set(topo)
    node = node.at[NT:, :FEAT_IN].set(feat)

    eye = jnp.eye(N_PER_GRAPH, dtype=jnp.float32)
    a_hat = jnp.zeros((NT, NT), jnp.float32)
    for g in range(B):
        s = g * N_PER_GRAPH
        a_hat = a_hat.at[s:s + N_PER_GRAPH, s:s + N_PER_GRAPH].set(adj_blocks[g] + eye)
    deg = jnp.sum(a_hat, axis=1)
    dis = jnp.where(deg > 0, 1.0 / jnp.sqrt(deg), 0.0)
    a_norm = dis[:, None] * a_hat * dis[None, :]           # GCN normalization

    idx = jnp.arange(NT)
    same_g = (idx[:, None] // N_PER_GRAPH == idx[None, :] // N_PER_GRAPH).astype(jnp.float32)
    lt = (idx[:, None] < idx[None, :]).astype(jnp.float32)

    hr = jnp.arange(GAT_HEADS * NT)
    hc = jnp.arange(32)
    headcol = ((hc[None, :] // H_F) == (hr[:, None] // NT)).astype(jnp.float32)

    pool_mat = jnp.zeros((8, 32), jnp.float32)
    pool_mat = pool_mat.at[:B, :].set(
        (idx[None, :] // N_PER_GRAPH == jnp.arange(B)[:, None]).astype(jnp.float32))

    qq = jnp.arange(B * POOLED, dtype=jnp.float32)
    ptgt = jnp.zeros((B * POOLED, 32), jnp.float32)
    ptgt = ptgt.at[:, 0].set(2.0 * qq).at[:, 1].set(2.0 * qq + 1.0)

    misc = jnp.zeros((8, 32), jnp.float32)
    misc = misc.at[0, :].set(((idx // N_PER_GRAPH) * N_PER_GRAPH).astype(jnp.float32))

    aux = jnp.concatenate(
        [a_norm, a_hat, same_g, lt, headcol, pool_mat, ptgt, misc], axis=0)
    assert aux.shape == (AUX_ROWS, 32)
    return node, aux


# --------------------------------- main ---------------------------------------
if __name__ == "__main__":
    key = jax.random.PRNGKey(0)
    k_feat, k_topo, k_adj, k_param = jax.random.split(key, 4)

    feat = jax.random.normal(k_feat, (B * N_PER_GRAPH, FEAT_IN), dtype=jnp.float32)   # data.x
    topo = jax.random.normal(k_topo, (B * N_PER_GRAPH, TOPO_IN), dtype=jnp.float32)   # data.topo_feat

    # Per-graph random undirected adjacency (dense stand-in for edge_index).
    blocks = []
    for g in range(B):
        kb = jax.random.fold_in(k_adj, g)
        m = (jax.random.uniform(kb, (N_PER_GRAPH, N_PER_GRAPH)) < 0.3).astype(jnp.float32)
        m = jnp.maximum(m, m.T)
        m = m * (1.0 - jnp.eye(N_PER_GRAPH, dtype=jnp.float32))
        blocks.append(m)
    adj_blocks = jnp.stack(blocks, axis=0)

    node_slab, aux_slab = build_data_slabs(topo, feat, adj_blocks)
    param_slab = init_param_slab(k_param)

    out = net_forward(node_slab, aux_slab, param_slab)
    out = jax.block_until_ready(out)
    assert out.shape == (B, NUM_CLASSES)
    print("KERNEL_OK")
</pallas_src>

<mosaic_0001>
module attributes {stable_mosaic.version = 11 : i64} {
  func.func @_net_kernel(%arg0: i32, %arg1: memref<64x32xf32, #tpu.memory_space<vmem>>, %arg2: memref<416x32xf32, #tpu.memory_space<vmem>>, %arg3: memref<880x32xf32, #tpu.memory_space<vmem>>, %arg4: memref<2x32xf32, #tpu.memory_space<vmem>>) attributes {dimension_semantics = [#tpu.dimension_semantics<arbitrary>], iteration_bounds = array<i64: 1>, scalar_prefetch = 0 : i64, scratch_operands = 0 : i64, tpu.core_type = #tpu.core_type<tc>, window_params = [{pipeline_mode = #tpu.pipeline_mode<synchronous>, transform_indices = @transform_0, window_bounds = array<i64: 64, 32>}, {pipeline_mode = #tpu.pipeline_mode<synchronous>, transform_indices = @transform_1, window_bounds = array<i64: 416, 32>}, {pipeline_mode = #tpu.pipeline_mode<synchronous>, transform_indices = @transform_2, window_bounds = array<i64: 880, 32>}, {pipeline_mode = #tpu.pipeline_mode<synchronous>, transform_indices = @transform_3, window_bounds = array<i64: 2, 32>}]} {
    %c0 = arith.constant 0 : index
    %c0_0 = arith.constant 0 : index
    %0 = vector.load %arg1[%c0, %c0_0] : memref<64x32xf32, #tpu.memory_space<vmem>>, vector<32x32xf32>
    %c32 = arith.constant 32 : index
    %c0_1 = arith.constant 0 : index
    %1 = vector.load %arg1[%c32, %c0_1] : memref<64x32xf32, #tpu.memory_space<vmem>>, vector<32x32xf32>
    %c0_2 = arith.constant 0 : index
    %c0_3 = arith.constant 0 : index
    %2 = vector.load %arg2[%c0_2, %c0_3] : memref<416x32xf32, #tpu.memory_space<vmem>>, vector<32x32xf32>
    %c32_4 = arith.constant 32 : index
    %c0_5 = arith.constant 0 : index
    %3 = vector.load %arg2[%c32_4, %c0_5] : memref<416x32xf32, #tpu.memory_space<vmem>>, vector<32x32xf32>
    %c64 = arith.constant 64 : index
    %c0_6 = arith.constant 0 : index
    %4 = vector.load %arg2[%c64, %c0_6] : memref<416x32xf32, #tpu.memory_space<vmem>>, vector<32x32xf32>
    %c96 = arith.constant 96 : index
    %c0_7 = arith.constant 0 : index
    %5 = vector.load %arg2[%c96, %c0_7] : memref<416x32xf32, #tpu.memory_space<vmem>>, vector<32x32xf32>
    %c384 = arith.constant 384 : index
    %c0_8 = arith.constant 0 : index
    %6 = vector.load %arg2[%c384, %c0_8] : memref<416x32xf32, #tpu.memory_space<vmem>>, vector<2x32xf32>
    %c392 = arith.constant 392 : index
    %c0_9 = arith.constant 0 : index
    %7 = vector.load %arg2[%c392, %c0_9] : memref<416x32xf32, #tpu.memory_space<vmem>>, vector<16x32xf32>
    %c408 = arith.constant 408 : index
    %c0_10 = arith.constant 0 : index
    %8 = vector.load %arg2[%c408, %c0_10] : memref<416x32xf32, #tpu.memory_space<vmem>>, vector<1x32xf32>
    %c0_11 = arith.constant 0 : index
    %c0_12 = arith.constant 0 : index
    %9 = vector.load %arg3[%c0_11, %c0_12] : memref<880x32xf32, #tpu.memory_space<vmem>>, vector<32x32xf32>
    %cst = arith.constant dense<0.000000e+00> : vector<32x32xf32>
    %10 = tpu.matmul %0, %9, %cst {dimension_numbers = #tpu.dot_dimension_numbers<[1], [0], [0], [1], [0, 0, 1, 1], [], []>} : vector<32x32xf32>, vector<32x32xf32>, vector<32x32xf32> -> vector<32x32xf32>
    %cst_13 = arith.constant dense<0.000000e+00> : vector<32x32xf32>
    %11 = tpu.matmul %2, %10, %cst_13 {dimension_numbers = #tpu.dot_dimension_numbers<[1], [0], [0], [1], [0, 0, 1, 1], [], []>} : vector<32x32xf32>, vector<32x32xf32>, vector<32x32xf32> -> vector<32x32xf32>
    %c864 = arith.constant 864 : index
    %c0_14 = arith.constant 0 : index
    %12 = vector.load %arg3[%c864, %c0_14] : memref<880x32xf32, #tpu.memory_space<vmem>>, vector<1x32xf32>
    %13 = vector.broadcast %12 : vector<1x32xf32> to vector<32x32xf32>
    %14 = arith.addf %11, %13 : vector<32x32xf32>
    %15 = math.tanh %14 : vector<32x32xf32>
    %c32_15 = arith.constant 32 : index
    %c0_16 = arith.constant 0 : index
    %16 = vector.load %arg3[%c32_15, %c0_16] : memref<880x32xf32, #tpu.memory_space<vmem>>, vector<32x32xf32>
    %cst_17 = arith.constant dense<0.000000e+00> : vector<32x32xf32>
    %17 = tpu.matmul %15, %16, %cst_17 {dimension_numbers = #tpu.dot_dimension_numbers<[1], [0], [0], [1], [0, 0, 1, 1], [], []>} : vector<32x32xf32>, vector<32x32xf32>, vector<32x32xf32> -> vector<32x32xf32>
    %cst_18 = arith.constant dense<0.000000e+00> : vector<32x32xf32>
    %18 = tpu.matmul %2, %17, %cst_18 {dimension_numbers = #tpu.dot_dimension_numbers<[1], [0], [0], [1], [0, 0, 1, 1], [], []>} : vector<32x32xf32>, vector<32x32xf32>, vector<32x32xf32> -> vector<32x32xf32>
    %c865 = arith.constant 865 : index
    %c0_19 = arith.constant 0 : index
    %19 = vector.load %arg3[%c865, %c0_19] : memref<880x32xf32, #tpu.memory_space<vmem>>, vector<1x32xf32>
    %20 = vector.broadcast %19 : vector<1x32xf32> to vector<32x32xf32>
    %21 = arith.addf %18, %20 : vector<32x32xf32>
    %22 = math.tanh %21 : vector<32x32xf32>
    %c64_20 = arith.constant 64 : index
    %c0_21 = arith.constant 0 : index
    %23 = vector.load %arg3[%c64_20, %c0_21] : memref<880x32xf32, #tpu.memory_space<vmem>>, vector<32x32xf32>
    %cst_22 = arith.constant dense<0.000000e+00> : vector<32x32xf32>
    %24 = tpu.matmul %22, %23, %cst_22 {dimension_numbers = #tpu.dot_dimension_numbers<[1], [0], [0], [1], [0, 0, 1, 1], [], []>} : vector<32x32xf32>, vector<32x32xf32>, vector<32x32xf32> -> vector<32x32xf32>
    %cst_23 = arith.constant dense<0.000000e+00> : vector<32x32xf32>
    %25 = tpu.matmul %2, %24, %cst_23 {dimension_numbers = #tpu.dot_dimension_numbers<[1], [0], [0], [1], [0, 0, 1, 1], [], []>} : vector<32x32xf32>, vector<32x32xf32>, vector<32x32xf32> -> vector<32x32xf32>
    %c866 = arith.constant 866 : index
    %c0_24 = arith.constant 0 : index
    %26 = vector.load %arg3[%c866, %c0_24] : memref<880x32xf32, #tpu.memory_space<vmem>>, vector<1x32xf32>
    %27 = vector.broadcast %26 : vector<1x32xf32> to vector<32x32xf32>
    %28 = arith.addf %25, %27 : vector<32x32xf32>
    %29 = math.tanh %28 : vector<32x32xf32>
    %c96_25 = arith.constant 96 : index
    %c0_26 = arith.constant 0 : index
    %30 = vector.load %arg3[%c96_25, %c0_26] : memref<880x32xf32, #tpu.memory_space<vmem>>, vector<32x32xf32>
    %cst_27 = arith.constant dense<0.000000e+00> : vector<32x32xf32>
    %31 = tpu.matmul %29, %30, %cst_27 {dimension_numbers = #tpu.dot_dimension_numbers<[1], [0], [0], [1], [0, 0, 1, 1], [], []>} : vector<32x32xf32>, vector<32x32xf32>, vector<32x32xf32> -> vector<32x32xf32>
    %cst_28 = arith.constant dense<0.000000e+00> : vector<32x32xf32>
    %32 = tpu.matmul %2, %31, %cst_28 {dimension_numbers = #tpu.dot_dimension_numbers<[1], [0], [0], [1], [0, 0, 1, 1], [], []>} : vector<32x32xf32>, vector<32x32xf32>, vector<32x32xf32> -> vector<32x32xf32>
    %c867 = arith.constant 867 : index
    %c0_29 = arith.constant 0 : index
    %33 = vector.load %arg3[%c867, %c0_29] : memref<880x32xf32, #tpu.memory_space<vmem>>, vector<1x32xf32>
    %34 = vector.broadcast %33 : vector<1x32xf32> to vector<32x32xf32>
    %35 = arith.addf %32, %34 : vector<32x32xf32>
    %36 = math.tanh %35 : vector<32x32xf32>
    %37 = vector.extract_strided_slice %36 {offsets = [0, 0], sizes = [32, 1], strides = [1, 1]} : vector<32x32xf32> to vector<32x1xf32>
    %38 = tpu.transpose %36, [1, 0] : vector<32x32xf32> -> vector<32x32xf32>
    %39 = vector.extract_strided_slice %38 {offsets = [0, 0], sizes = [1, 32], strides = [1, 1]} : vector<32x32xf32> to vector<1x32xf32>
    %40 = vector.broadcast %37 : vector<32x1xf32> to vector<32x32xf32>
    %41 = vector.broadcast %39 : vector<1x32xf32> to vector<32x32xf32>
    %42 = arith.cmpf ogt, %40, %41 : vector<32x32xf32>
    %43 = vector.broadcast %37 : vector<32x1xf32> to vector<32x32xf32>
    %44 = vector.broadcast %39 : vector<1x32xf32> to vector<32x32xf32>
    %45 = arith.cmpf oeq, %43, %44 : vector<32x32xf32>
    %cst_30 = arith.constant 0.000000e+00 : f32
    %46 = vector.broadcast %cst_30 : f32 to vector<32x32xf32>
    %47 = arith.cmpf ogt, %5, %46 : vector<32x32xf32>
    %48 = arith.andi %45, %47 : vector<32x32xi1>
    %49 = arith.ori %42, %48 : vector<32x32xi1>
    %cst_31 = arith.constant 0.000000e+00 : f32
    %50 = vector.broadcast %cst_31 : f32 to vector<32x32xf32>
    %51 = arith.cmpf ogt, %4, %50 : vector<32x32xf32>
    %52 = arith.andi %49, %51 : vector<32x32xi1>
    %cst_32 = arith.constant 1.000000e+00 : f32
    %cst_33 = arith.constant 0.000000e+00 : f32
    %53 = vector.broadcast %cst_32 : f32 to vector<32x32xf32>
    %54 = vector.broadcast %cst_33 : f32 to vector<32x32xf32>
    %55 = arith.select %52, %53, %54 : vector<32x32xi1>, vector<32x32xf32>
    %cst_34 = arith.constant 1.000000e+00 : f32
    %56 = vector.broadcast %cst_34 : f32 to vector<1x32xf32>
    %cst_35 = arith.constant dense<0.000000e+00> : vector<1x32xf32>
    %57 = tpu.matmul %56, %55, %cst_35 {dimension_numbers = #tpu.dot_dimension_numbers<[1], [0], [0], [1], [0, 0, 1, 1], [], []>} : vector<1x32xf32>, vector<32x32xf32>, vector<1x32xf32> -> vector<1x32xf32>
    %58 = arith.addf %57, %8 : vector<1x32xf32>
    %59 = vector.extract_strided_slice %7 {offsets = [0, 0], sizes = [16, 1], strides = [1, 1]} : vector<16x32xf32> to vector<16x1xf32>
    %60 = vector.broadcast %58 : vector<1x32xf32> to vector<16x32xf32>
    %61 = vector.broadcast %59 : vector<16x1xf32> to vector<16x32xf32>
    %62 = arith.cmpf oeq, %60, %61 : vector<16x32xf32>
    %cst_36 = arith.constant 1.000000e+00 : f32
    %cst_37 = arith.constant 0.000000e+00 : f32
    %63 = vector.broadcast %cst_36 : f32 to vector<16x32xf32>
    %64 = vector.broadcast %cst_37 : f32 to vector<16x32xf32>
    %65 = arith.select %62, %63, %64 : vector<16x32xi1>, vector<16x32xf32>
    %66 = vector.extract_strided_slice %7 {offsets = [0, 1], sizes = [16, 1], strides = [1, 1]} : vector<16x32xf32> to vector<16x1xf32>
    %67 = vector.broadcast %58 : vector<1x32xf32> to vector<16x32xf32>
    %68 = vector.broadcast %66 : vector<16x1xf32> to vector<16x32xf32>
    %69 = arith.cmpf oeq, %67, %68 : vector<16x32xf32>
    %cst_38 = arith.constant 1.000000e+00 : f32
    %cst_39 = arith.constant 0.000000e+00 : f32
    %70 = vector.broadcast %cst_38 : f32 to vector<16x32xf32>
    %71 = vector.broadcast %cst_39 : f32 to vector<16x32xf32>
    %72 = arith.select %69, %70, %71 : vector<16x32xi1>, vector<16x32xf32>
    %c128 = arith.constant 128 : index
    %c0_40 = arith.constant 0 : index
    %73 = vector.load %arg3[%c128, %c0_40] : memref<880x32xf32, #tpu.memory_space<vmem>>, vector<32x32xf32>
    %cst_41 = arith.constant dense<0.000000e+00> : vector<32x32xf32>
    %74 = tpu.matmul %15, %73, %cst_41 {dimension_numbers = #tpu.dot_dimension_numbers<[1], [0], [0], [1], [0, 0, 1, 1], [], []>} : vector<32x32xf32>, vector<32x32xf32>, vector<32x32xf32> -> vector<32x32xf32>
    %c160 = arith.constant 160 : index
    %c0_42 = arith.constant 0 : index
    %75 = vector.load %arg3[%c160, %c0_42] : memref<880x32xf32, #tpu.memory_space<vmem>>, vector<32x32xf32>
    %cst_43 = arith.constant dense<0.000000e+00> : vector<32x32xf32>
    %76 = tpu.matmul %22, %75, %cst_43 {dimension_numbers = #tpu.dot_dimension_numbers<[1], [0], [0], [1], [0, 0, 1, 1], [], []>} : vector<32x32xf32>, vector<32x32xf32>, vector<32x32xf32> -> vector<32x32xf32>
    %77 = arith.addf %74, %76 : vector<32x32xf32>
    %c192 = arith.constant 192 : index
    %c0_44 = arith.constant 0 : index
    %78 = vector.load %arg3[%c192, %c0_44] : memref<880x32xf32, #tpu.memory_space<vmem>>, vector<32x32xf32>
    %cst_45 = arith.constant dense<0.000000e+00> : vector<32x32xf32>
    %79 = tpu.matmul %29, %78, %cst_45 {dimension_numbers = #tpu.dot_dimension_numbers<[1], [0], [0], [1], [0, 0, 1, 1], [], []>} : vector<32x32xf32>, vector<32x32xf32>, vector<32x32xf32> -> vector<32x32xf32>
    %80 = arith.addf %77, %79 : vector<32x32xf32>
    %c224 = arith.constant 224 : index
    %c0_46 = arith.constant 0 : index
    %81 = vector.load %arg3[%c224, %c0_46] : memref<880x32xf32, #tpu.memory_space<vmem>>, vector<32x32xf32>
    %cst_47 = arith.constant dense<0.000000e+00> : vector<32x32xf32>
    %82 = tpu.matmul %36, %81, %cst_47 {dimension_numbers = #tpu.dot_dimension_numbers<[1], [0], [0], [1], [0, 0, 1, 1], [], []>} : vector<32x32xf32>, vector<32x32xf32>, vector<32x32xf32> -> vector<32x32xf32>
    %83 = arith.addf %80, %82 : vector<32x32xf32>
    %c868 = arith.constant 868 : index
    %c0_48 = arith.constant 0 : index
    %84 = vector.load %arg3[%c868, %c0_48] : memref<880x32xf32, #tpu.memory_space<vmem>>, vector<1x32xf32>
    %85 = vector.broadcast %84 : vector<1x32xf32> to vector<32x32xf32>
    %86 = arith.addf %83, %85 : vector<32x32xf32>
    %cst_49 = arith.constant 0.000000e+00 : f32
    %87 = vector.broadcast %cst_49 : f32 to vector<32x32xf32>
    %88 = arith.maximumf %86, %87 : vector<32x32xf32>
    %cst_50 = arith.constant dense<0.000000e+00> : vector<16x32xf32>
    %89 = tpu.matmul %65, %88, %cst_50 {dimension_numbers = #tpu.dot_dimension_numbers<[1], [0], [0], [1], [0, 0, 1, 1], [], []>} : vector<16x32xf32>, vector<32x32xf32>, vector<16x32xf32> -> vector<16x32xf32>
    %cst_51 = arith.constant dense<0.000000e+00> : vector<16x32xf32>
    %90 = tpu.matmul %72, %88, %cst_51 {dimension_numbers = #tpu.dot_dimension_numbers<[1], [0], [0], [1], [0, 0, 1, 1], [], []>} : vector<16x32xf32>, vector<32x32xf32>, vector<16x32xf32> -> vector<16x32xf32>
    %91 = arith.maximumf %89, %90 : vector<16x32xf32>
    %c869 = arith.constant 869 : index
    %c0_52 = arith.constant 0 : index
    %92 = vector.load %arg3[%c869, %c0_52] : memref<880x32xf32, #tpu.memory_space<vmem>>, vector<1x32xf32>
    %93 = vector.extract_strided_slice %91 {offsets = [0, 0], sizes = [4, 32], strides = [1, 1]} : vector<16x32xf32> to vector<4x32xf32>
    %94 = vector.extract_strided_slice %91 {offsets = [8, 0], sizes = [4, 32], strides = [1, 1]} : vector<16x32xf32> to vector<4x32xf32>
    %95 = tpu.concatenate %93, %94 in 0 : vector<4x32xf32>, vector<4x32xf32> -> vector<8x32xf32>
    %c256 = arith.constant 256 : index
    %c0_53 = arith.constant 0 : index
    %96 = vector.load %arg3[%c256, %c0_53] : memref<880x32xf32, #tpu.memory_space<vmem>>, vector<32x32xf32>
    %cst_54 = arith.constant dense<0.000000e+00> : vector<8x32xf32>
    %97 = tpu.matmul %95, %96, %cst_54 {dimension_numbers = #tpu.dot_dimension_numbers<[1], [0], [0], [1], [0, 0, 1, 1], [], []>} : vector<8x32xf32>, vector<32x32xf32>, vector<8x32xf32> -> vector<8x32xf32>
    %98 = vector.broadcast %92 : vector<1x32xf32> to vector<8x32xf32>
    %99 = arith.addf %98, %97 : vector<8x32xf32>
    %100 = vector.extract_strided_slice %91 {offsets = [1, 0], sizes = [4, 32], strides = [1, 1]} : vector<16x32xf32> to vector<4x32xf32>
    %101 = vector.extract_strided_slice %91 {offsets = [9, 0], sizes = [4, 32], strides = [1, 1]} : vector<16x32xf32> to vector<4x32xf32>
    %102 = tpu.concatenate %100, %101 in 0 : vector<4x32xf32>, vector<4x32xf32> -> vector<8x32xf32>
    %c288 = arith.constant 288 : index
    %c0_55 = arith.constant 0 : index
    %103 = vector.load %arg3[%c288, %c0_55] : memref<880x32xf32, #tpu.memory_space<vmem>>, vector<32x32xf32>
    %cst_56 = arith.constant dense<0.000000e+00> : vector<8x32xf32>
    %104 = tpu.matmul %102, %103, %cst_56 {dimension_numbers = #tpu.dot_dimension_numbers<[1], [0], [0], [1], [0, 0, 1, 1], [], []>} : vector<8x32xf32>, vector<32x32xf32>, vector<8x32xf32> -> vector<8x32xf32>
    %105 = arith.addf %99, %104 : vector<8x32xf32>
    %106 = vector.extract_strided_slice %91 {offsets = [2, 0], sizes = [4, 32], strides = [1, 1]} : vector<16x32xf32> to vector<4x32xf32>
    %107 = vector.extract_strided_slice %91 {offsets = [10, 0], sizes = [4, 32], strides = [1, 1]} : vector<16x32xf32> to vector<4x32xf32>
    %108 = tpu.concatenate %106, %107 in 0 : vector<4x32xf32>, vector<4x32xf32> -> vector<8x32xf32>
    %c320 = arith.constant 320 : index
    %c0_57 = arith.constant 0 : index
    %109 = vector.load %arg3[%c320, %c0_57] : memref<880x32xf32, #tpu.memory_space<vmem>>, vector<32x32xf32>
    %cst_58 = arith.constant dense<0.000000e+00> : vector<8x32xf32>
    %110 = tpu.matmul %108, %109, %cst_58 {dimension_numbers = #tpu.dot_dimension_numbers<[1], [0], [0], [1], [0, 0, 1, 1], [], []>} : vector<8x32xf32>, vector<32x32xf32>, vector<8x32xf32> -> vector<8x32xf32>
    %111 = arith.addf %105, %110 : vector<8x32xf32>
    %112 = vector.extract_strided_slice %91 {offsets = [3, 0], sizes = [4, 32], strides = [1, 1]} : vector<16x32xf32> to vector<4x32xf32>
    %113 = vector.extract_strided_slice %91 {offsets = [11, 0], sizes = [4, 32], strides = [1, 1]} : vector<16x32xf32> to vector<4x32xf32>
    %114 = tpu.concatenate %112, %113 in 0 : vector<4x32xf32>, vector<4x32xf32> -> vector<8x32xf32>
    %c352 = arith.constant 352 : index
    %c0_59 = arith.constant 0 : index
    %115 = vector.load %arg3[%c352, %c0_59] : memref<880x32xf32, #tpu.memory_space<vmem>>, vector<32x32xf32>
    %cst_60 = arith.constant dense<0.000000e+00> : vector<8x32xf32>
    %116 = tpu.matmul %114, %115, %cst_60 {dimension_numbers = #tpu.dot_dimension_numbers<[1], [0], [0], [1], [0, 0, 1, 1], [], []>} : vector<8x32xf32>, vector<32x32xf32>, vector<8x32xf32> -> vector<8x32xf32>
    %117 = arith.addf %111, %116 : vector<8x32xf32>
    %118 = vector.extract_strided_slice %91 {offsets = [4, 0], sizes = [4, 32], strides = [1, 1]} : vector<16x32xf32> to vector<4x32xf32>
    %119 = vector.extract_strided_slice %91 {offsets = [12, 0], sizes = [4, 32], strides = [1, 1]} : vector<16x32xf32> to vector<4x32xf32>
    %120 = tpu.concatenate %118, %119 in 0 : vector<4x32xf32>, vector<4x32xf32> -> vector<8x32xf32>
    %c384_61 = arith.constant 384 : index
    %c0_62 = arith.constant 0 : index
    %121 = vector.load %arg3[%c384_61, %c0_62] : memref<880x32xf32, #tpu.memory_space<vmem>>, vector<32x32xf32>
    %cst_63 = arith.constant dense<0.000000e+00> : vector<8x32xf32>
    %122 = tpu.matmul %120, %121, %cst_63 {dimension_numbers = #tpu.dot_dimension_numbers<[1], [0], [0], [1], [0, 0, 1, 1], [], []>} : vector<8x32xf32>, vector<32x32xf32>, vector<8x32xf32> -> vector<8x32xf32>
    %123 = arith.addf %117, %122 : vector<8x32xf32>
    %cst_64 = arith.constant 0.000000e+00 : f32
    %124 = vector.broadcast %cst_64 : f32 to vector<8x32xf32>
    %125 = arith.maximumf %123, %124 : vector<8x32xf32>
    %c870 = arith.constant 870 : index
    %c0_65 = arith.constant 0 : index
    %126 = vector.load %arg3[%c870, %c0_65] : memref<880x32xf32, #tpu.memory_space<vmem>>, vector<1x32xf32>
    %127 = vector.extract_strided_slice %125 {offsets = [0, 0], sizes = [1, 32], strides = [1, 1]} : vector<8x32xf32> to vector<1x32xf32>
    %128 = vector.extract_strided_slice %125 {offsets = [4, 0], sizes = [1, 32], strides = [1, 1]} : vector<8x32xf32> to vector<1x32xf32>
    %129 = tpu.concatenate %127, %128 in 0 : vector<1x32xf32>, vector<1x32xf32> -> vector<2x32xf32>
    %c416 = arith.constant 416 : index
    %c0_66 = arith.constant 0 : index
    %130 = vector.load %arg3[%c416, %c0_66] : memref<880x32xf32, #tpu.memory_space<vmem>>, vector<32x32xf32>
    %cst_67 = arith.constant dense<0.000000e+00> : vector<2x32xf32>
    %131 = tpu.matmul %129, %130, %cst_67 {dimension_numbers = #tpu.dot_dimension_numbers<[1], [0], [0], [1], [0, 0, 1, 1], [], []>} : vector<2x32xf32>, vector<32x32xf32>, vector<2x32xf32> -> vector<2x32xf32>
    %132 = vector.broadcast %126 : vector<1x32xf32> to vector<2x32xf32>
    %133 = arith.addf %132, %131 : vector<2x32xf32>
    %134 = vector.extract_strided_slice %125 {offsets = [1, 0], sizes = [1, 32], strides = [1, 1]} : vector<8x32xf32> to vector<1x32xf32>
    %135 = vector.extract_strided_slice %125 {offsets = [5, 0], sizes = [1, 32], strides = [1, 1]} : vector<8x32xf32> to vector<1x32xf32>
    %136 = tpu.concatenate %134, %135 in 0 : vector<1x32xf32>, vector<1x32xf32> -> vector<2x32xf32>
    %c448 = arith.constant 448 : index
    %c0_68 = arith.constant 0 : index
    %137 = vector.load %arg3[%c448, %c0_68] : memref<880x32xf32, #tpu.memory_space<vmem>>, vector<32x32xf32>
    %cst_69 = arith.constant dense<0.000000e+00> : vector<2x32xf32>
    %138 = tpu.matmul %136, %137, %cst_69 {dimension_numbers = #tpu.dot_dimension_numbers<[1], [0], [0], [1], [0, 0, 1, 1], [], []>} : vector<2x32xf32>, vector<32x32xf32>, vector<2x32xf32> -> vector<2x32xf32>
    %139 = arith.addf %133, %138 : vector<2x32xf32>
    %140 = vector.extract_strided_slice %125 {offsets = [2, 0], sizes = [1, 32], strides = [1, 1]} : vector<8x32xf32> to vector<1x32xf32>
    %141 = vector.extract_strided_slice %125 {offsets = [6, 0], sizes = [1, 32], strides = [1, 1]} : vector<8x32xf32> to vector<1x32xf32>
    %142 = tpu.concatenate %140, %141 in 0 : vector<1x32xf32>, vector<1x32xf32> -> vector<2x32xf32>
    %c480 = arith.constant 480 : index
    %c0_70 = arith.constant 0 : index
    %143 = vector.load %arg3[%c480, %c0_70] : memref<880x32xf32, #tpu.memory_space<vmem>>, vector<32x32xf32>
    %cst_71 = arith.constant dense<0.000000e+00> : vector<2x32xf32>
    %144 = tpu.matmul %142, %143, %cst_71 {dimension_numbers = #tpu.dot_dimension_numbers<[1], [0], [0], [1], [0, 0, 1, 1], [], []>} : vector<2x32xf32>, vector<32x32xf32>, vector<2x32xf32> -> vector<2x32xf32>
    %145 = arith.addf %139, %144 : vector<2x32xf32>
    %146 = vector.extract_strided_slice %125 {offsets = [3, 0], sizes = [1, 32], strides = [1, 1]} : vector<8x32xf32> to vector<1x32xf32>
    %147 = vector.extract_strided_slice %125 {offsets = [7, 0], sizes = [1, 32], strides = [1, 1]} : vector<8x32xf32> to vector<1x32xf32>
    %148 = tpu.concatenate %146, %147 in 0 : vector<1x32xf32>, vector<1x32xf32> -> vector<2x32xf32>
    %c512 = arith.constant 512 : index
    %c0_72 = arith.constant 0 : index
    %149 = vector.load %arg3[%c512, %c0_72] : memref<880x32xf32, #tpu.memory_space<vmem>>, vector<32x32xf32>
    %cst_73 = arith.constant dense<0.000000e+00> : vector<2x32xf32>
    %150 = tpu.matmul %148, %149, %cst_73 {dimension_numbers = #tpu.dot_dimension_numbers<[1], [0], [0], [1], [0, 0, 1, 1], [], []>} : vector<2x32xf32>, vector<32x32xf32>, vector<2x32xf32> -> vector<2x32xf32>
    %151 = arith.addf %145, %150 : vector<2x32xf32>
    %c544 = arith.constant 544 : index
    %c0_74 = arith.constant 0 : index
    %152 = vector.load %arg3[%c544, %c0_74] : memref<880x32xf32, #tpu.memory_space<vmem>>, vector<32x32xf32>
    %cst_75 = arith.constant dense<0.000000e+00> : vector<32x32xf32>
    %153 = tpu.matmul %1, %152, %cst_75 {dimension_numbers = #tpu.dot_dimension_numbers<[1], [0], [0], [1], [0, 0, 1, 1], [], []>} : vector<32x32xf32>, vector<32x32xf32>, vector<32x32xf32> -> vector<32x32xf32>
    %c576 = arith.constant 576 : index
    %c0_76 = arith.constant 0 : index
    %154 = vector.load %arg3[%c576, %c0_76] : memref<880x32xf32, #tpu.memory_space<vmem>>, vector<32x32xf32>
    %cst_77 = arith.constant dense<0.000000e+00> : vector<32x32xf32>
    %155 = tpu.matmul %153, %154, %cst_77 {dimension_numbers = #tpu.dot_dimension_numbers<[1], [0], [0], [1], [0, 0, 1, 1], [], []>} : vector<32x32xf32>, vector<32x32xf32>, vector<32x32xf32> -> vector<32x32xf32>
    %c608 = arith.constant 608 : index
    %c0_78 = arith.constant 0 : index
    %156 = vector.load %arg3[%c608, %c0_78] : memref<880x32xf32, #tpu.memory_space<vmem>>, vector<32x32xf32>
    %cst_79 = arith.constant dense<0.000000e+00> : vector<32x32xf32>
    %157 = tpu.matmul %153, %156, %cst_79 {dimension_numbers = #tpu.dot_dimension_numbers<[1], [0], [0], [1], [0, 0, 1, 1], [], []>} : vector<32x32xf32>, vector<32x32xf32>, vector<32x32xf32> -> vector<32x32xf32>
    %158 = tpu.transpose %155, [1, 0] : vector<32x32xf32> -> vector<32x32xf32>
    %159 = vector.extract_strided_slice %157 {offsets = [0, 0], sizes = [32, 1], strides = [1, 1]} : vector<32x32xf32> to vector<32x1xf32>
    %160 = vector.extract_strided_slice %158 {offsets = [0, 0], sizes = [1, 32], strides = [1, 1]} : vector<32x32xf32> to vector<1x32xf32>
    %161 = vector.broadcast %159 : vector<32x1xf32> to vector<32x32xf32>
    %162 = vector.broadcast %160 : vector<1x32xf32> to vector<32x32xf32>
    %163 = arith.addf %161, %162 : vector<32x32xf32>
    %cst_80 = arith.constant 0.000000e+00 : f32
    %164 = vector.broadcast %cst_80 : f32 to vector<32x32xf32>
    %165 = arith.cmpf ogt, %163, %164 : vector<32x32xf32>
    %cst_81 = arith.constant 2.000000e-01 : f32
    %166 = vector.broadcast %cst_81 : f32 to vector<32x32xf32>
    %167 = arith.mulf %166, %163 : vector<32x32xf32>
    %168 = arith.select %165, %163, %167 : vector<32x32xi1>, vector<32x32xf32>
    %cst_82 = arith.constant 0.000000e+00 : f32
    %169 = vector.broadcast %cst_82 : f32 to vector<32x32xf32>
    %170 = arith.cmpf ogt, %3, %169 : vector<32x32xf32>
    %cst_83 = arith.constant -1.000000e+30 : f32
    %171 = vector.broadcast %cst_83 : f32 to vector<32x32xf32>
    %172 = arith.select %170, %168, %171 : vector<32x32xi1>, vector<32x32xf32>
    %cst_84 = arith.constant dense<0xFF800000> : vector<32xf32>
    %173 = vector.multi_reduction <maximumf>, %172, %cst_84 [1] : vector<32x32xf32> to vector<32xf32>
    %174 = vector.shape_cast %173 : vector<32xf32> to vector<32x1xf32>
    %175 = vector.broadcast %174 : vector<32x1xf32> to vector<32x32xf32>
    %176 = arith.subf %172, %175 : vector<32x32xf32>
    %177 = math.exp %176 : vector<32x32xf32>
    %cst_85 = arith.constant dense<0.000000e+00> : vector<32xf32>
    %178 = vector.multi_reduction <add>, %177, %cst_85 [1] : vector<32x32xf32> to vector<32xf32>
    %179 = vector.shape_cast %178 : vector<32xf32> to vector<32x1xf32>
    %180 = tpu.reciprocal %179 {approx = true} : vector<32x1xf32> -> vector<32x1xf32>
    %181 = vector.broadcast %180 : vector<32x1xf32> to vector<32x32xf32>
    %182 = arith.mulf %177, %181 : vector<32x32xf32>
    %183 = vector.extract_strided_slice %157 {offsets = [0, 1], sizes = [32, 1], strides = [1, 1]} : vector<32x32xf32> to vector<32x1xf32>
    %184 = vector.extract_strided_slice %158 {offsets = [1, 0], sizes = [1, 32], strides = [1, 1]} : vector<32x32xf32> to vector<1x32xf32>
    %185 = vector.broadcast %183 : vector<32x1xf32> to vector<32x32xf32>
    %186 = vector.broadcast %184 : vector<1x32xf32> to vector<32x32xf32>
    %187 = arith.addf %185, %186 : vector<32x32xf32>
    %cst_86 = arith.constant 0.000000e+00 : f32
    %188 = vector.broadcast %cst_86 : f32 to vector<32x32xf32>
    %189 = arith.cmpf ogt, %187, %188 : vector<32x32xf32>
    %cst_87 = arith.constant 2.000000e-01 : f32
    %190 = vector.broadcast %cst_87 : f32 to vector<32x32xf32>
    %191 = arith.mulf %190, %187 : vector<32x32xf32>
    %192 = arith.select %189, %187, %191 : vector<32x32xi1>, vector<32x32xf32>
    %cst_88 = arith.constant 0.000000e+00 : f32
    %193 = vector.broadcast %cst_88 : f32 to vector<32x32xf32>
    %194 = arith.cmpf ogt, %3, %193 : vector<32x32xf32>
    %cst_89 = arith.constant -1.000000e+30 : f32
    %195 = vector.broadcast %cst_89 : f32 to vector<32x32xf32>
    %196 = arith.select %194, %192, %195 : vector<32x32xi1>, vector<32x32xf32>
    %cst_90 = arith.constant dense<0xFF800000> : vector<32xf32>
    %197 = vector.multi_reduction <maximumf>, %196, %cst_90 [1] : vector<32x32xf32> to vector<32xf32>
    %198 = vector.shape_cast %197 : vector<32xf32> to vector<32x1xf32>
    %199 = vector.broadcast %198 : vector<32x1xf32> to vector<32x32xf32>
    %200 = arith.subf %196, %199 : vector<32x32xf32>
    %201 = math.exp %200 : vector<32x32xf32>
    %cst_91 = arith.constant dense<0.000000e+00> : vector<32xf32>
    %202 = vector.multi_reduction <add>, %201, %cst_91 [1] : vector<32x32xf32> to vector<32xf32>
    %203 = vector.shape_cast %202 : vector<32xf32> to vector<32x1xf32>
    %204 = tpu.reciprocal %203 {approx = true} : vector<32x1xf32> -> vector<32x1xf32>
    %205 = vector.broadcast %204 : vector<32x1xf32> to vector<32x32xf32>
    %206 = arith.mulf %201, %205 : vector<32x32xf32>
    %207 = vector.extract_strided_slice %157 {offsets = [0, 2], sizes = [32, 1], strides = [1, 1]} : vector<32x32xf32> to vector<32x1xf32>
    %208 = vector.extract_strided_slice %158 {offsets = [2, 0], sizes = [1, 32], strides = [1, 1]} : vector<32x32xf32> to vector<1x32xf32>
    %209 = vector.broadcast %207 : vector<32x1xf32> to vector<32x32xf32>
    %210 = vector.broadcast %208 : vector<1x32xf32> to vector<32x32xf32>
    %211 = arith.addf %209, %210 : vector<32x32xf32>
    %cst_92 = arith.constant 0.000000e+00 : f32
    %212 = vector.broadcast %cst_92 : f32 to vector<32x32xf32>
    %213 = arith.cmpf ogt, %211, %212 : vector<32x32xf32>
    %cst_93 = arith.constant 2.000000e-01 : f32
    %214 = vector.broadcast %cst_93 : f32 to vector<32x32xf32>
    %215 = arith.mulf %214, %211 : vector<32x32xf32>
    %216 = arith.select %213, %211, %215 : vector<32x32xi1>, vector<32x32xf32>
    %cst_94 = arith.constant 0.000000e+00 : f32
    %217 = vector.broadcast %cst_94 : f32 to vector<32x32xf32>
    %218 = arith.cmpf ogt, %3, %217 : vector<32x32xf32>
    %cst_95 = arith.constant -1.000000e+30 : f32
    %219 = vector.broadcast %cst_95 : f32 to vector<32x32xf32>
    %220 = arith.select %218, %216, %219 : vector<32x32xi1>, vector<32x32xf32>
    %cst_96 = arith.constant dense<0xFF800000> : vector<32xf32>
    %221 = vector.multi_reduction <maximumf>, %220, %cst_96 [1] : vector<32x32xf32> to vector<32xf32>
    %222 = vector.shape_cast %221 : vector<32xf32> to vector<32x1xf32>
    %223 = vector.broadcast %222 : vector<32x1xf32> to vector<32x32xf32>
    %224 = arith.subf %220, %223 : vector<32x32xf32>
    %225 = math.exp %224 : vector<32x32xf32>
    %cst_97 = arith.constant dense<0.000000e+00> : vector<32xf32>
    %226 = vector.multi_reduction <add>, %225, %cst_97 [1] : vector<32x32xf32> to vector<32xf32>
    %227 = vector.shape_cast %226 : vector<32xf32> to vector<32x1xf32>
    %228 = tpu.reciprocal %227 {approx = true} : vector<32x1xf32> -> vector<32x1xf32>
    %229 = vector.broadcast %228 : vector<32x1xf32> to vector<32x32xf32>
    %230 = arith.mulf %225, %229 : vector<32x32xf32>
    %231 = vector.extract_strided_slice %157 {offsets = [0, 3], sizes = [32, 1], strides = [1, 1]} : vector<32x32xf32> to vector<32x1xf32>
    %232 = vector.extract_strided_slice %158 {offsets = [3, 0], sizes = [1, 32], strides = [1, 1]} : vector<32x32xf32> to vector<1x32xf32>
    %233 = vector.broadcast %231 : vector<32x1xf32> to vector<32x32xf32>
    %234 = vector.broadcast %232 : vector<1x32xf32> to vector<32x32xf32>
    %235 = arith.addf %233, %234 : vector<32x32xf32>
    %cst_98 = arith.constant 0.000000e+00 : f32
    %236 = vector.broadcast %cst_98 : f32 to vector<32x32xf32>
    %237 = arith.cmpf ogt, %235, %236 : vector<32x32xf32>
    %cst_99 = arith.constant 2.000000e-01 : f32
    %238 = vector.broadcast %cst_99 : f32 to vector<32x32xf32>
    %239 = arith.mulf %238, %235 : vector<32x32xf32>
    %240 = arith.select %237, %235, %239 : vector<32x32xi1>, vector<32x32xf32>
    %cst_100 = arith.constant 0.000000e+00 : f32
    %241 = vector.broadcast %cst_100 : f32 to vector<32x32xf32>
    %242 = arith.cmpf ogt, %3, %241 : vector<32x32xf32>
    %cst_101 = arith.constant -1.000000e+30 : f32
    %243 = vector.broadcast %cst_101 : f32 to vector<32x32xf32>
    %244 = arith.select %242, %240, %243 : vector<32x32xi1>, vector<32x32xf32>
    %cst_102 = arith.constant dense<0xFF800000> : vector<32xf32>
    %245 = vector.multi_reduction <maximumf>, %244, %cst_102 [1] : vector<32x32xf32> to vector<32xf32>
    %246 = vector.shape_cast %245 : vector<32xf32> to vector<32x1xf32>
    %247 = vector.broadcast %246 : vector<32x1xf32> to vector<32x32xf32>
    %248 = arith.subf %244, %247 : vector<32x32xf32>
    %249 = math.exp %248 : vector<32x32xf32>
    %cst_103 = arith.constant dense<0.000000e+00> : vector<32xf32>
    %250 = vector.multi_reduction <add>, %249, %cst_103 [1] : vector<32x32xf32> to vector<32xf32>
    %251 = vector.shape_cast %250 : vector<32xf32> to vector<32x1xf32>
    %252 = tpu.reciprocal %251 {approx = true} : vector<32x1xf32> -> vector<32x1xf32>
    %253 = vector.broadcast %252 : vector<32x1xf32> to vector<32x32xf32>
    %254 = arith.mulf %249, %253 : vector<32x32xf32>
    %255 = vector.extract_strided_slice %157 {offsets = [0, 4], sizes = [32, 1], strides = [1, 1]} : vector<32x32xf32> to vector<32x1xf32>
    %256 = vector.extract_strided_slice %158 {offsets = [4, 0], sizes = [1, 32], strides = [1, 1]} : vector<32x32xf32> to vector<1x32xf32>
    %257 = vector.broadcast %255 : vector<32x1xf32> to vector<32x32xf32>
    %258 = vector.broadcast %256 : vector<1x32xf32> to vector<32x32xf32>
    %259 = arith.addf %257, %258 : vector<32x32xf32>
    %cst_104 = arith.constant 0.000000e+00 : f32
    %260 = vector.broadcast %cst_104 : f32 to vector<32x32xf32>
    %261 = arith.cmpf ogt, %259, %260 : vector<32x32xf32>
    %cst_105 = arith.constant 2.000000e-01 : f32
    %262 = vector.broadcast %cst_105 : f32 to vector<32x32xf32>
    %263 = arith.mulf %262, %259 : vector<32x32xf32>
    %264 = arith.select %261, %259, %263 : vector<32x32xi1>, vector<32x32xf32>
    %cst_106 = arith.constant 0.000000e+00 : f32
    %265 = vector.broadcast %cst_106 : f32 to vector<32x32xf32>
    %266 = arith.cmpf ogt, %3, %265 : vector<32x32xf32>
    %cst_107 = arith.constant -1.000000e+30 : f32
    %267 = vector.broadcast %cst_107 : f32 to vector<32x32xf32>
    %268 = arith.select %266, %264, %267 : vector<32x32xi1>, vector<32x32xf32>
    %cst_108 = arith.constant dense<0xFF800000> : vector<32xf32>
    %269 = vector.multi_reduction <maximumf>, %268, %cst_108 [1] : vector<32x32xf32> to vector<32xf32>
    %270 = vector.shape_cast %269 : vector<32xf32> to vector<32x1xf32>
    %271 = vector.broadcast %270 : vector<32x1xf32> to vector<32x32xf32>
    %272 = arith.subf %268, %271 : vector<32x32xf32>
    %273 = math.exp %272 : vector<32x32xf32>
    %cst_109 = arith.constant dense<0.000000e+00> : vector<32xf32>
    %274 = vector.multi_reduction <add>, %273, %cst_109 [1] : vector<32x32xf32> to vector<32xf32>
    %275 = vector.shape_cast %274 : vector<32xf32> to vector<32x1xf32>
    %276 = tpu.reciprocal %275 {approx = true} : vector<32x1xf32> -> vector<32x1xf32>
    %277 = vector.broadcast %276 : vector<32x1xf32> to vector<32x32xf32>
    %278 = arith.mulf %273, %277 : vector<32x32xf32>
    %279 = vector.extract_strided_slice %157 {offsets = [0, 5], sizes = [32, 1], strides = [1, 1]} : vector<32x32xf32> to vector<32x1xf32>
    %280 = vector.extract_strided_slice %158 {offsets = [5, 0], sizes = [1, 32], strides = [1, 1]} : vector<32x32xf32> to vector<1x32xf32>
    %281 = vector.broadcast %279 : vector<32x1xf32> to vector<32x32xf32>
    %282 = vector.broadcast %280 : vector<1x32xf32> to vector<32x32xf32>
    %283 = arith.addf %281, %282 : vector<32x32xf32>
    %cst_110 = arith.constant 0.000000e+00 : f32
    %284 = vector.broadcast %cst_110 : f32 to vector<32x32xf32>
    %285 = arith.cmpf ogt, %283, %284 : vector<32x32xf32>
    %cst_111 = arith.constant 2.000000e-01 : f32
    %286 = vector.broadcast %cst_111 : f32 to vector<32x32xf32>
    %287 = arith.mulf %286, %283 : vector<32x32xf32>
    %288 = arith.select %285, %283, %287 : vector<32x32xi1>, vector<32x32xf32>
    %cst_112 = arith.constant 0.000000e+00 : f32
    %289 = vector.broadcast %cst_112 : f32 to vector<32x32xf32>
    %290 = arith.cmpf ogt, %3, %289 : vector<32x32xf32>
    %cst_113 = arith.constant -1.000000e+30 : f32
    %291 = vector.broadcast %cst_113 : f32 to vector<32x32xf32>
    %292 = arith.select %290, %288, %291 : vector<32x32xi1>, vector<32x32xf32>
    %cst_114 = arith.constant dense<0xFF800000> : vector<32xf32>
    %293 = vector.multi_reduction <maximumf>, %292, %cst_114 [1] : vector<32x32xf32> to vector<32xf32>
    %294 = vector.shape_cast %293 : vector<32xf32> to vector<32x1xf32>
    %295 = vector.broadcast %294 : vector<32x1xf32> to vector<32x32xf32>
    %296 = arith.subf %292, %295 : vector<32x32xf32>
    %297 = math.exp %296 : vector<32x32xf32>
    %cst_115 = arith.constant dense<0.000000e+00> : vector<32xf32>
    %298 = vector.multi_reduction <add>, %297, %cst_115 [1] : vector<32x32xf32> to vector<32xf32>
    %299 = vector.shape_cast %298 : vector<32xf32> to vector<32x1xf32>
    %300 = tpu.reciprocal %299 {approx = true} : vector<32x1xf32> -> vector<32x1xf32>
    %301 = vector.broadcast %300 : vector<32x1xf32> to vector<32x32xf32>
    %302 = arith.mulf %297, %301 : vector<32x32xf32>
    %303 = vector.extract_strided_slice %157 {offsets = [0, 6], sizes = [32, 1], strides = [1, 1]} : vector<32x32xf32> to vector<32x1xf32>
    %304 = vector.extract_strided_slice %158 {offsets = [6, 0], sizes = [1, 32], strides = [1, 1]} : vector<32x32xf32> to vector<1x32xf32>
    %305 = vector.broadcast %303 : vector<32x1xf32> to vector<32x32xf32>
    %306 = vector.broadcast %304 : vector<1x32xf32> to vector<32x32xf32>
    %307 = arith.addf %305, %306 : vector<32x32xf32>
    %cst_116 = arith.constant 0.000000e+00 : f32
    %308 = vector.broadcast %cst_116 : f32 to vector<32x32xf32>
    %309 = arith.cmpf ogt, %307, %308 : vector<32x32xf32>
    %cst_117 = arith.constant 2.000000e-01 : f32
    %310 = vector.broadcast %cst_117 : f32 to vector<32x32xf32>
    %311 = arith.mulf %310, %307 : vector<32x32xf32>
    %312 = arith.select %309, %307, %311 : vector<32x32xi1>, vector<32x32xf32>
    %cst_118 = arith.constant 0.000000e+00 : f32
    %313 = vector.broadcast %cst_118 : f32 to vector<32x32xf32>
    %314 = arith.cmpf ogt, %3, %313 : vector<32x32xf32>
    %cst_119 = arith.constant -1.000000e+30 : f32
    %315 = vector.broadcast %cst_119 : f32 to vector<32x32xf32>
    %316 = arith.select %314, %312, %315 : vector<32x32xi1>, vector<32x32xf32>
    %cst_120 = arith.constant dense<0xFF800000> : vector<32xf32>
    %317 = vector.multi_reduction <maximumf>, %316, %cst_120 [1] : vector<32x32xf32> to vector<32xf32>
    %318 = vector.shape_cast %317 : vector<32xf32> to vector<32x1xf32>
    %319 = vector.broadcast %318 : vector<32x1xf32> to vector<32x32xf32>
    %320 = arith.subf %316, %319 : vector<32x32xf32>
    %321 = math.exp %320 : vector<32x32xf32>
    %cst_121 = arith.constant dense<0.000000e+00> : vector<32xf32>
    %322 = vector.multi_reduction <add>, %321, %cst_121 [1] : vector<32x32xf32> to vector<32xf32>
    %323 = vector.shape_cast %322 : vector<32xf32> to vector<32x1xf32>
    %324 = tpu.reciprocal %323 {approx = true} : vector<32x1xf32> -> vector<32x1xf32>
    %325 = vector.broadcast %324 : vector<32x1xf32> to vector<32x32xf32>
    %326 = arith.mulf %321, %325 : vector<32x32xf32>
    %327 = vector.extract_strided_slice %157 {offsets = [0, 7], sizes = [32, 1], strides = [1, 1]} : vector<32x32xf32> to vector<32x1xf32>
    %328 = vector.extract_strided_slice %158 {offsets = [7, 0], sizes = [1, 32], strides = [1, 1]} : vector<32x32xf32> to vector<1x32xf32>
    %329 = vector.broadcast %327 : vector<32x1xf32> to vector<32x32xf32>
    %330 = vector.broadcast %328 : vector<1x32xf32> to vector<32x32xf32>
    %331 = arith.addf %329, %330 : vector<32x32xf32>
    %cst_122 = arith.constant 0.000000e+00 : f32
    %332 = vector.broadcast %cst_122 : f32 to vector<32x32xf32>
    %333 = arith.cmpf ogt, %331, %332 : vector<32x32xf32>
    %cst_123 = arith.constant 2.000000e-01 : f32
    %334 = vector.broadcast %cst_123 : f32 to vector<32x32xf32>
    %335 = arith.mulf %334, %331 : vector<32x32xf32>
    %336 = arith.select %333, %331, %335 : vector<32x32xi1>, vector<32x32xf32>
    %cst_124 = arith.constant 0.000000e+00 : f32
    %337 = vector.broadcast %cst_124 : f32 to vector<32x32xf32>
    %338 = arith.cmpf ogt, %3, %337 : vector<32x32xf32>
    %cst_125 = arith.constant -1.000000e+30 : f32
    %339 = vector.broadcast %cst_125 : f32 to vector<32x32xf32>
    %340 = arith.select %338, %336, %339 : vector<32x32xi1>, vector<32x32xf32>
    %cst_126 = arith.constant dense<0xFF800000> : vector<32xf32>
    %341 = vector.multi_reduction <maximumf>, %340, %cst_126 [1] : vector<32x32xf32> to vector<32xf32>
    %342 = vector.shape_cast %341 : vector<32xf32> to vector<32x1xf32>
    %343 = vector.broadcast %342 : vector<32x1xf32> to vector<32x32xf32>
    %344 = arith.subf %340, %343 : vector<32x32xf32>
    %345 = math.exp %344 : vector<32x32xf32>
    %cst_127 = arith.constant dense<0.000000e+00> : vector<32xf32>
    %346 = vector.multi_reduction <add>, %345, %cst_127 [1] : vector<32x32xf32> to vector<32xf32>
    %347 = vector.shape_cast %346 : vector<32xf32> to vector<32x1xf32>
    %348 = tpu.reciprocal %347 {approx = true} : vector<32x1xf32> -> vector<32x1xf32>
    %349 = vector.broadcast %348 : vector<32x1xf32> to vector<32x32xf32>
    %350 = arith.mulf %345, %349 : vector<32x32xf32>
    %351 = tpu.concatenate %182, %206, %230, %254, %278, %302, %326, %350 in 0 : vector<32x32xf32>, vector<32x32xf32>, vector<32x32xf32>, vector<32x32xf32>, vector<32x32xf32>, vector<32x32xf32>, vector<32x32xf32>, vector<32x32xf32> -> vector<256x32xf32>
    %cst_128 = arith.constant dense<0.000000e+00> : vector<256x32xf32>
    %352 = tpu.matmul %351, %153, %cst_128 {dimension_numbers = #tpu.dot_dimension_numbers<[1], [0], [0], [1], [0, 0, 1, 1], [], []>} : vector<256x32xf32>, vector<32x32xf32>, vector<256x32xf32> -> vector<256x32xf32>
    %c871 = arith.constant 871 : index
    %c0_129 = arith.constant 0 : index
    %353 = vector.load %arg3[%c871, %c0_129] : memref<880x32xf32, #tpu.memory_space<vmem>>, vector<1x32xf32>
    %c128_130 = arith.constant 128 : index
    %c0_131 = arith.constant 0 : index
    %354 = vector.load %arg2[%c128_130, %c0_131] : memref<416x32xf32, #tpu.memory_space<vmem>>, vector<32x32xf32>
    %355 = vector.extract_strided_slice %352 {offsets = [0, 0], sizes = [32, 32], strides = [1, 1]} : vector<256x32xf32> to vector<32x32xf32>
    %356 = arith.mulf %355, %354 : vector<32x32xf32>
    %357 = vector.broadcast %353 : vector<1x32xf32> to vector<32x32xf32>
    %358 = arith.addf %357, %356 : vector<32x32xf32>
    %c160_132 = arith.constant 160 : index
    %c0_133 = arith.constant 0 : index
    %359 = vector.load %arg2[%c160_132, %c0_133] : memref<416x32xf32, #tpu.memory_space<vmem>>, vector<32x32xf32>
    %360 = vector.extract_strided_slice %352 {offsets = [32, 0], sizes = [32, 32], strides = [1, 1]} : vector<256x32xf32> to vector<32x32xf32>
    %361 = arith.mulf %360, %359 : vector<32x32xf32>
    %362 = arith.addf %358, %361 : vector<32x32xf32>
    %c192_134 = arith.constant 192 : index
    %c0_135 = arith.constant 0 : index
    %363 = vector.load %arg2[%c192_134, %c0_135] : memref<416x32xf32, #tpu.memory_space<vmem>>, vector<32x32xf32>
    %364 = vector.extract_strided_slice %352 {offsets = [64, 0], sizes = [32, 32], strides = [1, 1]} : vector<256x32xf32> to vector<32x32xf32>
    %365 = arith.mulf %364, %363 : vector<32x32xf32>
    %366 = arith.addf %362, %365 : vector<32x32xf32>
    %c224_136 = arith.constant 224 : index
    %c0_137 = arith.constant 0 : index
    %367 = vector.load %arg2[%c224_136, %c0_137] : memref<416x32xf32, #tpu.memory_space<vmem>>, vector<32x32xf32>
    %368 = vector.extract_strided_slice %352 {offsets = [96, 0], sizes = [32, 32], strides = [1, 1]} : vector<256x32xf32> to vector<32x32xf32>
    %369 = arith.mulf %368, %367 : vector<32x32xf32>
    %370 = arith.addf %366, %369 : vector<32x32xf32>
    %c256_138 = arith.constant 256 : index
    %c0_139 = arith.constant 0 : index
    %371 = vector.load %arg2[%c256_138, %c0_139] : memref<416x32xf32, #tpu.memory_space<vmem>>, vector<32x32xf32>
    %372 = vector.extract_strided_slice %352 {offsets = [128, 0], sizes = [32, 32], strides = [1, 1]} : vector<256x32xf32> to vector<32x32xf32>
    %373 = arith.mulf %372, %371 : vector<32x32xf32>
    %374 = arith.addf %370, %373 : vector<32x32xf32>
    %c288_140 = arith.constant 288 : index
    %c0_141 = arith.constant 0 : index
    %375 = vector.load %arg2[%c288_140, %c0_141] : memref<416x32xf32, #tpu.memory_space<vmem>>, vector<32x32xf32>
    %376 = vector.extract_strided_slice %352 {offsets = [160, 0], sizes = [32, 32], strides = [1, 1]} : vector<256x32xf32> to vector<32x32xf32>
    %377 = arith.mulf %376, %375 : vector<32x32xf32>
    %378 = arith.addf %374, %377 : vector<32x32xf32>
    %c320_142 = arith.constant 320 : index
    %c0_143 = arith.constant 0 : index
    %379 = vector.load %arg2[%c320_142, %c0_143] : memref<416x32xf32, #tpu.memory_space<vmem>>, vector<32x32xf32>
    %380 = vector.extract_strided_slice %352 {offsets = [192, 0], sizes = [32, 32], strides = [1, 1]} : vector<256x32xf32> to vector<32x32xf32>
    %381 = arith.mulf %380, %379 : vector<32x32xf32>
    %382 = arith.addf %378, %381 : vector<32x32xf32>
    %c352_144 = arith.constant 352 : index
    %c0_145 = arith.constant 0 : index
    %383 = vector.load %arg2[%c352_144, %c0_145] : memref<416x32xf32, #tpu.memory_space<vmem>>, vector<32x32xf32>
    %384 = vector.extract_strided_slice %352 {offsets = [224, 0], sizes = [32, 32], strides = [1, 1]} : vector<256x32xf32> to vector<32x32xf32>
    %385 = arith.mulf %384, %383 : vector<32x32xf32>
    %386 = arith.addf %382, %385 : vector<32x32xf32>
    %cst_146 = arith.constant 0.000000e+00 : f32
    %387 = vector.broadcast %cst_146 : f32 to vector<32x32xf32>
    %388 = arith.cmpf ogt, %386, %387 : vector<32x32xf32>
    %389 = math.exp %386 : vector<32x32xf32>
    %cst_147 = arith.constant 1.000000e+00 : f32
    %390 = vector.broadcast %cst_147 : f32 to vector<32x32xf32>
    %391 = arith.subf %389, %390 : vector<32x32xf32>
    %392 = arith.select %388, %386, %391 : vector<32x32xi1>, vector<32x32xf32>
    %c640 = arith.constant 640 : index
    %c0_148 = arith.constant 0 : index
    %393 = vector.load %arg3[%c640, %c0_148] : memref<880x32xf32, #tpu.memory_space<vmem>>, vector<32x32xf32>
    %cst_149 = arith.constant dense<0.000000e+00> : vector<32x32xf32>
    %394 = tpu.matmul %392, %393, %cst_149 {dimension_numbers = #tpu.dot_dimension_numbers<[1], [0], [0], [1], [0, 0, 1, 1], [], []>} : vector<32x32xf32>, vector<32x32xf32>, vector<32x32xf32> -> vector<32x32xf32>
    %c672 = arith.constant 672 : index
    %c0_150 = arith.constant 0 : index
    %395 = vector.load %arg3[%c672, %c0_150] : memref<880x32xf32, #tpu.memory_space<vmem>>, vector<32x32xf32>
    %cst_151 = arith.constant dense<0.000000e+00> : vector<32x32xf32>
    %396 = tpu.matmul %394, %395, %cst_151 {dimension_numbers = #tpu.dot_dimension_numbers<[1], [0], [0], [1], [0, 0, 1, 1], [], []>} : vector<32x32xf32>, vector<32x32xf32>, vector<32x32xf32> -> vector<32x32xf32>
    %397 = vector.extract_strided_slice %396 {offsets = [0, 1], sizes = [32, 1], strides = [1, 1]} : vector<32x32xf32> to vector<32x1xf32>
    %398 = tpu.transpose %396, [1, 0] : vector<32x32xf32> -> vector<32x32xf32>
    %399 = vector.extract_strided_slice %398 {offsets = [0, 0], sizes = [1, 32], strides = [1, 1]} : vector<32x32xf32> to vector<1x32xf32>
    %400 = vector.broadcast %397 : vector<32x1xf32> to vector<32x32xf32>
    %401 = vector.broadcast %399 : vector<1x32xf32> to vector<32x32xf32>
    %402 = arith.addf %400, %401 : vector<32x32xf32>
    %cst_152 = arith.constant 0.000000e+00 : f32
    %403 = vector.broadcast %cst_152 : f32 to vector<32x32xf32>
    %404 = arith.cmpf ogt, %402, %403 : vector<32x32xf32>
    %cst_153 = arith.constant 2.000000e-01 : f32
    %405 = vector.broadcast %cst_153 : f32 to vector<32x32xf32>
    %406 = arith.mulf %405, %402 : vector<32x32xf32>
    %407 = arith.select %404, %402, %406 : vector<32x32xi1>, vector<32x32xf32>
    %cst_154 = arith.constant 0.000000e+00 : f32
    %408 = vector.broadcast %cst_154 : f32 to vector<32x32xf32>
    %409 = arith.cmpf ogt, %3, %408 : vector<32x32xf32>
    %cst_155 = arith.constant -1.000000e+30 : f32
    %410 = vector.broadcast %cst_155 : f32 to vector<32x32xf32>
    %411 = arith.select %409, %407, %410 : vector<32x32xi1>, vector<32x32xf32>
    %cst_156 = arith.constant dense<0xFF800000> : vector<32xf32>
    %412 = vector.multi_reduction <maximumf>, %411, %cst_156 [1] : vector<32x32xf32> to vector<32xf32>
    %413 = vector.shape_cast %412 : vector<32xf32> to vector<32x1xf32>
    %414 = vector.broadcast %413 : vector<32x1xf32> to vector<32x32xf32>
    %415 = arith.subf %411, %414 : vector<32x32xf32>
    %416 = math.exp %415 : vector<32x32xf32>
    %cst_157 = arith.constant dense<0.000000e+00> : vector<32xf32>
    %417 = vector.multi_reduction <add>, %416, %cst_157 [1] : vector<32x32xf32> to vector<32xf32>
    %418 = vector.shape_cast %417 : vector<32xf32> to vector<32x1xf32>
    %419 = tpu.reciprocal %418 {approx = true} : vector<32x1xf32> -> vector<32x1xf32>
    %420 = vector.broadcast %419 : vector<32x1xf32> to vector<32x32xf32>
    %421 = arith.mulf %416, %420 : vector<32x32xf32>
    %cst_158 = arith.constant dense<0.000000e+00> : vector<32x32xf32>
    %422 = tpu.matmul %421, %394, %cst_158 {dimension_numbers = #tpu.dot_dimension_numbers<[1], [0], [0], [1], [0, 0, 1, 1], [], []>} : vector<32x32xf32>, vector<32x32xf32>, vector<32x32xf32> -> vector<32x32xf32>
    %c872 = arith.constant 872 : index
    %c0_159 = arith.constant 0 : index
    %423 = vector.load %arg3[%c872, %c0_159] : memref<880x32xf32, #tpu.memory_space<vmem>>, vector<1x32xf32>
    %424 = vector.broadcast %423 : vector<1x32xf32> to vector<32x32xf32>
    %425 = arith.addf %422, %424 : vector<32x32xf32>
    %cst_160 = arith.constant dense<0.000000e+00> : vector<2x32xf32>
    %426 = tpu.matmul %6, %425, %cst_160 {dimension_numbers = #tpu.dot_dimension_numbers<[1], [0], [0], [1], [0, 0, 1, 1], [], []>} : vector<2x32xf32>, vector<32x32xf32>, vector<2x32xf32> -> vector<2x32xf32>
    %c704 = arith.constant 704 : index
    %c0_161 = arith.constant 0 : index
    %427 = vector.load %arg3[%c704, %c0_161] : memref<880x32xf32, #tpu.memory_space<vmem>>, vector<32x32xf32>
    %cst_162 = arith.constant dense<0.000000e+00> : vector<2x32xf32>
    %428 = tpu.matmul %151, %427, %cst_162 {dimension_numbers = #tpu.dot_dimension_numbers<[1], [0], [0], [1], [0, 0, 1, 1], [], []>} : vector<2x32xf32>, vector<32x32xf32>, vector<2x32xf32> -> vector<2x32xf32>
    %c873 = arith.constant 873 : index
    %c0_163 = arith.constant 0 : index
    %429 = vector.load %arg3[%c873, %c0_163] : memref<880x32xf32, #tpu.memory_space<vmem>>, vector<1x32xf32>
    %430 = vector.broadcast %429 : vector<1x32xf32> to vector<2x32xf32>
    %431 = arith.addf %428, %430 : vector<2x32xf32>
    %432 = math.tanh %431 : vector<2x32xf32>
    %c768 = arith.constant 768 : index
    %c0_164 = arith.constant 0 : index
    %433 = vector.load %arg3[%c768, %c0_164] : memref<880x32xf32, #tpu.memory_space<vmem>>, vector<32x32xf32>
    %cst_165 = arith.constant dense<0.000000e+00> : vector<2x32xf32>
    %434 = tpu.matmul %432, %433, %cst_165 {dimension_numbers = #tpu.dot_dimension_numbers<[1], [0], [0], [1], [0, 0, 1, 1], [], []>} : vector<2x32xf32>, vector<32x32xf32>, vector<2x32xf32> -> vector<2x32xf32>
    %c875 = arith.constant 875 : index
    %c0_166 = arith.constant 0 : index
    %435 = vector.load %arg3[%c875, %c0_166] : memref<880x32xf32, #tpu.memory_space<vmem>>, vector<1x32xf32>
    %436 = vector.broadcast %435 : vector<1x32xf32> to vector<2x32xf32>
    %437 = arith.addf %434, %436 : vector<2x32xf32>
    %438 = vector.extract_strided_slice %437 {offsets = [0, 0], sizes = [2, 1], strides = [1, 1]} : vector<2x32xf32> to vector<2x1xf32>
    %c736 = arith.constant 736 : index
    %c0_167 = arith.constant 0 : index
    %439 = vector.load %arg3[%c736, %c0_167] : memref<880x32xf32, #tpu.memory_space<vmem>>, vector<32x32xf32>
    %cst_168 = arith.constant dense<0.000000e+00> : vector<2x32xf32>
    %440 = tpu.matmul %426, %439, %cst_168 {dimension_numbers = #tpu.dot_dimension_numbers<[1], [0], [0], [1], [0, 0, 1, 1], [], []>} : vector<2x32xf32>, vector<32x32xf32>, vector<2x32xf32> -> vector<2x32xf32>
    %c874 = arith.constant 874 : index
    %c0_169 = arith.constant 0 : index
    %441 = vector.load %arg3[%c874, %c0_169] : memref<880x32xf32, #tpu.memory_space<vmem>>, vector<1x32xf32>
    %442 = vector.broadcast %441 : vector<1x32xf32> to vector<2x32xf32>
    %443 = arith.addf %440, %442 : vector<2x32xf32>
    %444 = math.tanh %443 : vector<2x32xf32>
    %c768_170 = arith.constant 768 : index
    %c0_171 = arith.constant 0 : index
    %445 = vector.load %arg3[%c768_170, %c0_171] : memref<880x32xf32, #tpu.memory_space<vmem>>, vector<32x32xf32>
    %cst_172 = arith.constant dense<0.000000e+00> : vector<2x32xf32>
    %446 = tpu.matmul %444, %445, %cst_172 {dimension_numbers = #tpu.dot_dimension_numbers<[1], [0], [0], [1], [0, 0, 1, 1], [], []>} : vector<2x32xf32>, vector<32x32xf32>, vector<2x32xf32> -> vector<2x32xf32>
    %c875_173 = arith.constant 875 : index
    %c0_174 = arith.constant 0 : index
    %447 = vector.load %arg3[%c875_173, %c0_174] : memref<880x32xf32, #tpu.memory_space<vmem>>, vector<1x32xf32>
    %448 = vector.broadcast %447 : vector<1x32xf32> to vector<2x32xf32>
    %449 = arith.addf %446, %448 : vector<2x32xf32>
    %450 = vector.extract_strided_slice %449 {offsets = [0, 0], sizes = [2, 1], strides = [1, 1]} : vector<2x32xf32> to vector<2x1xf32>
    %451 = arith.maximumf %438, %450 : vector<2x1xf32>
    %452 = arith.subf %438, %451 : vector<2x1xf32>
    %453 = math.exp %452 : vector<2x1xf32>
    %454 = arith.subf %450, %451 : vector<2x1xf32>
    %455 = math.exp %454 : vector<2x1xf32>
    %456 = arith.addf %453, %455 : vector<2x1xf32>
    %cst_175 = arith.constant 1.000000e+00 : f32
    %457 = vector.broadcast %cst_175 : f32 to vector<2x1xf32>
    %458 = arith.divf %457, %456 : vector<2x1xf32>
    %459 = arith.mulf %453, %458 : vector<2x1xf32>
    %460 = vector.broadcast %459 : vector<2x1xf32> to vector<2x32xf32>
    %461 = arith.mulf %460, %151 : vector<2x32xf32>
    %462 = arith.mulf %455, %458 : vector<2x1xf32>
    %463 = vector.broadcast %462 : vector<2x1xf32> to vector<2x32xf32>
    %464 = arith.mulf %463, %426 : vector<2x32xf32>
    %465 = arith.addf %461, %464 : vector<2x32xf32>
    %c800 = arith.constant 800 : index
    %c0_176 = arith.constant 0 : index
    %466 = vector.load %arg3[%c800, %c0_176] : memref<880x32xf32, #tpu.memory_space<vmem>>, vector<32x32xf32>
    %cst_177 = arith.constant dense<0.000000e+00> : vector<2x32xf32>
    %467 = tpu.matmul %465, %466, %cst_177 {dimension_numbers = #tpu.dot_dimension_numbers<[1], [0], [0], [1], [0, 0, 1, 1], [], []>} : vector<2x32xf32>, vector<32x32xf32>, vector<2x32xf32> -> vector<2x32xf32>
    %c876 = arith.constant 876 : index
    %c0_178 = arith.constant 0 : index
    %468 = vector.load %arg3[%c876, %c0_178] : memref<880x32xf32, #tpu.memory_space<vmem>>, vector<1x32xf32>
    %469 = vector.broadcast %468 : vector<1x32xf32> to vector<2x32xf32>
    %470 = arith.addf %467, %469 : vector<2x32xf32>
    %cst_179 = arith.constant 0.000000e+00 : f32
    %471 = vector.broadcast %cst_179 : f32 to vector<2x32xf32>
    %472 = arith.maximumf %470, %471 : vector<2x32xf32>
    %c832 = arith.constant 832 : index
    %c0_180 = arith.constant 0 : index
    %473 = vector.load %arg3[%c832, %c0_180] : memref<880x32xf32, #tpu.memory_space<vmem>>, vector<32x32xf32>
    %cst_181 = arith.constant dense<0.000000e+00> : vector<2x32xf32>
    %474 = tpu.matmul %472, %473, %cst_181 {dimension_numbers = #tpu.dot_dimension_numbers<[1], [0], [0], [1], [0, 0, 1, 1], [], []>} : vector<2x32xf32>, vector<32x32xf32>, vector<2x32xf32> -> vector<2x32xf32>
    %c877 = arith.constant 877 : index
    %c0_182 = arith.constant 0 : index
    %475 = vector.load %arg3[%c877, %c0_182] : memref<880x32xf32, #tpu.memory_space<vmem>>, vector<1x32xf32>
    %476 = vector.broadcast %475 : vector<1x32xf32> to vector<2x32xf32>
    %477 = arith.addf %474, %476 : vector<2x32xf32>
    %c0_183 = arith.constant 0 : index
    %c0_184 = arith.constant 0 : index
    %478 = vector.load %arg4[%c0_183, %c0_184] : memref<2x32xf32, #tpu.memory_space<vmem>>, vector<2x32xf32>
    tpu.vector_store %arg4[%c0_183, %c0_184], %477 {strides = array<i32>} : memref<2x32xf32, #tpu.memory_space<vmem>>, vector<2x32xf32>,
    return
  }
  func.func @transform_0(%arg0: i32) -> (i32, i32) {
    %c0_i32 = arith.constant 0 : i32
    %c0_i32_0 = arith.constant 0 : i32
    %c0_i32_1 = arith.constant 0 : i32
    return %c0_i32, %c0_i32_0 : i32, i32
  }
  func.func @transform_1(%arg0: i32) -> (i32, i32) {
    %c0_i32 = arith.constant 0 : i32
    %c0_i32_0 = arith.constant 0 : i32
    %c0_i32_1 = arith.constant 0 : i32
    return %c0_i32, %c0_i32_0 : i32, i32
  }
  func.func @transform_2(%arg0: i32) -> (i32, i32) {
    %c0_i32 = arith.constant 0 : i32
    %c0_i32_0 = arith.constant 0 : i32
    %c0_i32_1 = arith.constant 0 : i32
    return %c0_i32, %c0_i32_0 : i32, i32
  }
  func.func @transform_3(%arg0: i32) -> (i32, i32) {
    %c0_i32 = arith.constant 0 : i32
    %c0_i32_0 = arith.constant 0 : i32
    %c0_i32_1 = arith.constant 0 : i32
    return %c0_i32, %c0_i32_0 : i32, i32
  }
}

</mosaic_0001>

<bundles_post_ra>
// kernel: net_forward.1
= control target key start
LH: loop header
LB: loop body
LE: loop exit
PB: predicated region body
PF: predicated region fallthrough
CT: control target
= control target key end

     0   :  { %vm7729_vm0 = vcmask 261120   ;;  %s7723_s0 = inlined_call_operand.vmem [shape: f32[64,32], index: 0, kind: input, shape index: {}]   ;;  %s7724_s1 = inlined_call_operand.vmem [shape: f32[416,32], index: 1, kind: input, shape index: {}]   ;;  %s7725_s2 = inlined_call_operand.vmem [shape: f32[880,32], index: 2, kind: input, shape index: {}]   ;;  %s7726_s3 = inlined_call_operand.hbm [shape: f32[2,32], index: 3, kind: output, shape index: {}]  }
   0x1   :  { %v43_v0 = vld [vmem:[%s7725_s2] sm:$0xff]  ;;  %v44_v1 = vld [vmem:[%s7725_s2 + $0x8] sm:$0xff]  ;;  %v45_v2 = vld [vmem:[%s7725_s2 + $0x10] sm:$0xff] }
   0x2   :  { %v5741_v3 = vpack.c.bf16 %v44_v1, %v43_v0  ;;  %v46_v4 = vld [vmem:[%s7725_s2 + $0x18] sm:$0xff]  ;;  %v15_v5 = vld [vmem:[%s7723_s0] sm:$0xff] }
   0x3   :  { %v5745_v6 = vpack.c.bf16 %v46_v4, %v45_v2  ;;  %5232 = vmatprep.mubr.msk.f32.mxu0 %vm7729_vm0, %v15_v5 }
   0x4   :  { %8 = vsyncpa [#allocation3], 0  ;;  %5742 = vmatprep.subr.bf16.mxu0 %v5741_v3  ;;  %v16_v7 = vld [vmem:[%s7723_s0 + $0x8] sm:$0xff]  ;;  %v17_v8 = vld [vmem:[%s7723_s0 + $0x10] sm:$0xff]  ;;  %vm7727_vm1 = vmmov 0   ;;  %s6323_s16 = smov [#allocation2]  }
   0x5   :  { %5744 = vmatpush3.bf16.msra.mxu0 %v5741_v3  ;;  %v18_v9 = vld [vmem:[%s7723_s0 + $0x18] sm:$0xff]  ;;  %v6375_v10 = vld [vmem:[%s7724_s1] sm:$0xff]  ;;  %v6382_v17 = vld [vmem:[%s7724_s1 + $0x8] sm:$0xff]  ;;  %s4792_s17 = sshll.u32 %s6323_s16, 4  ;;  %s4793_s17 = int_to_ptr.vmem [resolvable:$true] %s4792_s17 }
   0x6   :  { %5746 = vmatprep.subr.bf16.mxu0 %v5745_v6  ;;  %5246 = vmatprep.mubr.msk.f32.mxu1 %vm7729_vm0, %v6375_v10  ;;  %v6387_v18 = vld [vmem:[%s7724_s1 + $0x10] sm:$0xff]  ;;  %v6396_v19 = vld [vmem:[%s7724_s1 + $0x18] sm:$0xff]  ;;  %v251_v20 = vld [vmem:[%s7725_s2 + $0x20] sm:$0xff]  ;;  %s6286_s18 = scalar_lea.vmem %s4793_s17, 32  ;;  %p6291_p1 = scmp.lt.s32.totalorder %s4793_s17, %s4793_s17 }
   0x7   :  { %v252_v21 = vld [vmem:[%s7725_s2 + $0x28] sm:$0xff]  ;;  %v253_v23 = vld [vmem:[%s7725_s2 + $0x30] sm:$0xff]  ;;  %v254_v24 = vld [vmem:[%s7725_s2 + $0x38] sm:$0xff]  ;;  %p6287_p0 = scmp.ne.s32.totalorder %s4793_s17, %s6286_s18  ;;  %p6292_p2 = scmp.lt.s32.totalorder %s6286_s18, %s6286_s18 }
   0x8   :  { %v5757_v22 = vpack.c.bf16 %v252_v21, %v251_v20  ;;  %v5761_v25 = vpack.c.bf16 %v254_v24, %v253_v23  ;;  %v4804_v26 = vld [vmem:[%s7725_s2 + $0x360] ss:$0 sm:$0xff]  ;;  %v447_v46 = vld [vmem:[%s7725_s2 + $0x48] sm:$0xff]  ;;  %v448_v48 = vld [vmem:[%s7725_s2 + $0x50] sm:$0xff] }
   0x9   :  { %5748 = vmatpush3.bf16.msra.mxu0 %v5745_v6  ;;  %v446_v45 = vld [vmem:[%s7725_s2 + $0x40] sm:$0xff]  ;;  %v449_v49 = vld [vmem:[%s7725_s2 + $0x58] sm:$0xff]  ;;  %p6293_p3 = por %p6292_p2, %p6291_p1 }
   0xa   :  { %5758 = vmatprep.subr.bf16.mxu0 %v5757_v22  ;;  %v5773_v47 = vpack.c.bf16 %v447_v46, %v446_v45  ;;  %v5777_v50 = vpack.c.bf16 %v449_v49, %v448_v48  ;;  %v4813_v51 = vld [vmem:[%s7725_s2 + $0x361] ss:$0 sm:$0xff]  ;;  %v1028_v45 = vld [vmem:[%s7725_s2 + $0x88] sm:$0xff]  ;;  %v1030_v48 = vld [vmem:[%s7725_s2 + $0x98] sm:$0xff] }
   0xb   :  { %v641_v6 = vld [vmem:[%s7725_s2 + $0x60] sm:$0xff]  ;;  %v1206_v49 = vld [vmem:[%s7725_s2 + $0xc8] sm:$0xff]  ;;  %p6294_p4 = pnand %p6293_p3, %p6287_p0 }
   0xc   :  { %5233 = vmatmul.mubr.msk.f32.vlgmr.msra.gmra.mrb[0].mxu0 %vm7729_vm0, %v16_v7  ;;  %v642_v7 = vld [vmem:[%s7725_s2 + $0x68] sm:$0xff] }
   0xd   :  { %5235 = vmatprep.mubr.msk.f32.mxu0 %vm7729_vm0, %v17_v8  ;;  %5760 = vmatpush3.bf16.msra.mxu0 %v5757_v22  ;;  %v5789_v8 = vpack.c.bf16 %v642_v7, %v641_v6  ;;  %v41_v6 = vld [vmem:[%s7724_s1 + $0x190] sm:$0xff]  ;;  %v6311_v7 = vmov 0.0|0.0  }
   0xe   :  { %5762 = vmatprep.subr.bf16.mxu0 %v5761_v25 }
  0x10   :  { %5236 = vmatmul.mubr.msk.f32.gmra.mrb[2].mxu0 %vm7729_vm0, %v18_v9  ;;  %v643_v9 = vld [vmem:[%s7725_s2 + $0x70] sm:$0xff] }
  0x11   :  { %5764 = vmatpush3.bf16.msra.mxu0 %v5761_v25 }
  0x12   :  { %5774 = vmatprep.subr.bf16.mxu0 %v5773_v47 }
  0xdf   :  { %v5234_v11 = vpop.f32.mrb[0].mxu0 }
  0xe0   :  { %v126_v12 = vpop.f32.mrb[1].mxu0 }
  0xe1   :  { %v5749_v13 = vpack.c.bf16 %v5234_v11, %v126_v12  ;;  %v644_v11 = vld [vmem:[%s7725_s2 + $0x78] sm:$0xff]  ;;  %v4822_v12 = vld [vmem:[%s7725_s2 + $0x362] ss:$0 sm:$0xff] }
  0xe3   :  { %v5237_v14 = vpop.f32.mrb[2].mxu0  ;;  %5750 = vmatprep.subr.bf16.mxu1 %v5749_v13 }
  0xe4   :  { %v136_v15 = vpop.f32.mrb[3].mxu0  ;;  %5752 = vmatpush3.bf16.msra.mxu1 %v5749_v13 }
  0xe5   :  { %v5753_v16 = vpack.c.bf16 %v5237_v14, %v136_v15 }
  0xe7   :  { %5754 = vmatprep.subr.bf16.mxu1 %v5753_v16 }
  0xe8   :  { %5756 = vmatpush3.bf16.msra.mxu1 %v5753_v16 }
  0xeb   :  { %5247 = vmatmul.mubr.msk.f32.vlgmr.msra.gmra.mrb[0].mxu1 %vm7729_vm0, %v6382_v17 }
  0xec   :  { %5249 = vmatprep.mubr.msk.f32.mxu1 %vm7729_vm0, %v6387_v18 }
  0xef   :  { %5250 = vmatmul.mubr.msk.f32.gmra.mrb[2].mxu1 %vm7729_vm0, %v6396_v19 }
  0xf0   :  { %5274 = vmatprep.mubr.msk.f32.mxu1 %vm7729_vm0, %v6375_v10 }
 0x1be   :  { %v5248_v27 = vpop.f32.mrb[0].mxu1 }
 0x1bf   :  { %v234_v28 = vadd.f32 %v5248_v27, %v4804_v26  ;;  %v228_v29 = vpop.f32.mrb[1].mxu1 }
 0x1c0   :  { %v229_v30 = vadd.f32 %v4804_v26, %v228_v29 }
 0x1c2   :  { %6092 = vtanh.f32 %v229_v30  ;;  %v5251_v31 = vpop.f32.mrb[2].mxu1 }
 0x1c3   :  { %6094 = vtanh.f32 %v234_v28  ;;  %v244_v32 = vadd.f32 %v5251_v31, %v4804_v26  ;;  %v238_v33 = vpop.f32.mrb[3].mxu1  ;;  %v1031_v31 = vld [vmem:[%s7725_s2 + $0xa0] sm:$0xff] }
 0x1c4   :  { %v239_v34 = vadd.f32 %v4804_v26, %v238_v33 }
 0x1c6   :  { %6096 = vtanh.f32 %v239_v34 }
 0x1c7   :  { %6098 = vtanh.f32 %v244_v32  ;;  %v1032_v32 = vld [vmem:[%s7725_s2 + $0xa8] sm:$0xff] }
 0x1cc   :  { %v6417_v35 = vpop.eup %6092 }
 0x1cd   :  { %v6419_v36 = vpop.eup %6094  ;;  %5260 = vmatprep.mubr.msk.f32.mxu0 %vm7729_vm0, %v6417_v35 }
 0x1ce   :  { %5261 = vmatmul.mubr.msk.f32.vlgmr.msra.gmra.mrb[4].mxu0 %vm7729_vm0, %v6419_v36 }
 0x1cf   :  { %5776 = vmatpush3.bf16.msra.mxu0 %v5773_v47  ;;  %v1029_v47 = vld [vmem:[%s7725_s2 + $0x90] sm:$0xff] }
 0x1d0   :  { %v6425_v37 = vpop.eup %6096  ;;  %5778 = vmatprep.subr.bf16.mxu0 %v5777_v50 }
 0x1d1   :  { %v6427_v38 = vpop.eup %6098  ;;  %5263 = vmatprep.mubr.msk.f32.mxu0 %vm7729_vm0, %v6425_v37 }
 0x1d2   :  { %5264 = vmatmul.mubr.msk.f32.gmra.mrb[6].mxu0 %vm7729_vm0, %v6427_v38 }
 0x1d3   :  { %5780 = vmatpush3.bf16.msra.mxu0 %v5777_v50  ;;  %v1207_v50 = vld [vmem:[%s7725_s2 + $0xd0] sm:$0xff] }
 0x1d4   :  { %5790 = vmatprep.subr.bf16.mxu0 %v5789_v8 }
 0x2a1   :  { %v5262_v39 = vpop.f32.mrb[4].mxu0 }
 0x2a2   :  { %v333_v40 = vpop.f32.mrb[5].mxu0 }
 0x2a3   :  { %v5765_v41 = vpack.c.bf16 %v5262_v39, %v333_v40  ;;  %v5811_v40 = vpack.c.bf16 %v1032_v32, %v1031_v31  ;;  %v6316_v31 = vmov 1.0   ;;  %v4857_v32 = vld [vmem:[%s7725_s2 + $0x364] ss:$0 sm:$0xff] }
 0x2a5   :  { %v5265_v42 = vpop.f32.mrb[6].mxu0  ;;  %5766 = vmatprep.subr.bf16.mxu1 %v5765_v41 }
 0x2a6   :  { %v343_v43 = vpop.f32.mrb[7].mxu0  ;;  %5768 = vmatpush3.bf16.msra.mxu1 %v5765_v41  ;;  %v1033_v41 = vld [vmem:[%s7725_s2 + $0xb0] sm:$0xff] }
 0x2a7   :  { %v5769_v44 = vpack.c.bf16 %v5265_v42, %v343_v43  ;;  %v1034_v42 = vld [vmem:[%s7725_s2 + $0xb8] sm:$0xff] }
 0x2a8   :  { %v5815_v43 = vpack.c.bf16 %v1034_v42, %v1033_v41 }
 0x2a9   :  { %5770 = vmatprep.subr.bf16.mxu1 %v5769_v44 }
 0x2aa   :  { %5772 = vmatpush3.bf16.msra.mxu1 %v5769_v44  ;;  %v1027_v44 = vld [vmem:[%s7725_s2 + $0x80] sm:$0xff] }
 0x2ab   :  { %v5819_v46 = vpack.c.bf16 %v1028_v45, %v1027_v44 }
 0x2ad   :  { %5275 = vmatmul.mubr.msk.f32.vlgmr.msra.gmra.mrb[4].mxu1 %vm7729_vm0, %v6382_v17 }
 0x2ae   :  { %5277 = vmatprep.mubr.msk.f32.mxu1 %vm7729_vm0, %v6387_v18 }
 0x2b1   :  { %5278 = vmatmul.mubr.msk.f32.gmra.mrb[6].mxu1 %vm7729_vm0, %v6396_v19 }
 0x2b2   :  { %5302 = vmatprep.mubr.msk.f32.mxu1 %vm7729_vm0, %v6375_v10 }
 0x380   :  { %v5276_v52 = vpop.f32.mrb[4].mxu1 }
 0x381   :  { %v429_v53 = vadd.f32 %v5276_v52, %v4813_v51  ;;  %v423_v54 = vpop.f32.mrb[5].mxu1 }
 0x382   :  { %v424_v55 = vadd.f32 %v4813_v51, %v423_v54 }
 0x384   :  { %6100 = vtanh.f32 %v424_v55  ;;  %v5279_v56 = vpop.f32.mrb[6].mxu1  ;;  %v6310_v55 = vmov 0  }
 0x385   :  { %6102 = vtanh.f32 %v429_v53  ;;  %v439_v57 = vadd.f32 %v5279_v56, %v4813_v51  ;;  %v433_v58 = vpop.f32.mrb[7].mxu1  ;;  %v1301_v53 = vld [vmem:[%s7725_s2 + $0xf8] sm:$0xff]  ;;  %6053 = vset.pattern.permute.xlu0 %v6310_v55  ;;  %6054 = vset.pattern.permute.xlu1 %v6310_v55  ;;  %v4831_v56 = vld [vmem:[%s7725_s2 + $0x363] ss:$0 sm:$0xff] }
 0x386   :  { %v434_v59 = vadd.f32 %v4813_v51, %v433_v58  ;;  %v1208_v51 = vld [vmem:[%s7725_s2 + $0xd8] sm:$0xff] }
 0x387   :  { %v5831_v52 = vpack.c.bf16 %v1208_v51, %v1207_v50 }
 0x388   :  { %6104 = vtanh.f32 %v434_v59 }
 0x389   :  { %6106 = vtanh.f32 %v439_v57 }
 0x38e   :  { %v6456_v60 = vpop.eup %6100 }
 0x38f   :  { %v6458_v61 = vpop.eup %6102  ;;  %5288 = vmatprep.mubr.msk.f32.mxu0 %vm7729_vm0, %v6456_v60 }
 0x390   :  { %5289 = vmatmul.mubr.msk.f32.vlgmr.msra.gmra.mrb[8].mxu0 %vm7729_vm0, %v6458_v61 }
 0x391   :  { %5792 = vmatpush3.bf16.msra.mxu0 %v5789_v8  ;;  %v6313_v8 = vmov 0.0  }
 0x392   :  { %v6464_v62 = vpop.eup %6104 }
 0x393   :  { %v6466_v63 = vpop.eup %6106  ;;  %5291 = vmatprep.mubr.msk.f32.mxu0 %vm7729_vm0, %v6464_v62 }
 0x394   :  { %5292 = vmatmul.mubr.msk.f32.gmra.mrb[10].mxu0 %vm7729_vm0, %v6466_v63 }
 0x463   :  { %v5290_v0 = vpop.f32.mrb[8].mxu0 }
 0x464   :  { %v528_v1 = vpop.f32.mrb[9].mxu0 }
 0x465   :  { %v5781_v2 = vpack.c.bf16 %v5290_v0, %v528_v1 }
 0x467   :  { %v5293_v3 = vpop.f32.mrb[10].mxu0  ;;  %5782 = vmatprep.subr.bf16.mxu1 %v5781_v2 }
 0x468   :  { %v538_v4 = vpop.f32.mrb[11].mxu0  ;;  %5784 = vmatpush3.bf16.msra.mxu1 %v5781_v2 }
 0x469   :  { %v5785_v5 = vpack.c.bf16 %v5293_v3, %v538_v4 }
 0x46b   :  { %5786 = vmatprep.subr.bf16.mxu1 %v5785_v5 }
 0x46c   :  { %5788 = vmatpush3.bf16.msra.mxu1 %v5785_v5  ;;  %v40_v5 = vld [vmem:[%s7724_s1 + $0x188] sm:$0xff] }
 0x46f   :  { %5303 = vmatmul.mubr.msk.f32.vlgmr.msra.gmra.mrb[8].mxu1 %vm7729_vm0, %v6382_v17 }
 0x470   :  { %5305 = vmatprep.mubr.msk.f32.mxu1 %vm7729_vm0, %v6387_v18 }
 0x473   :  { %5306 = vmatmul.mubr.msk.f32.gmra.mrb[10].mxu1 %vm7729_vm0, %v6396_v19 }
 0x474   :  { %5330 = vmatprep.mubr.msk.f32.mxu1 %vm7729_vm0, %v6375_v10  ;;  %v5793_v10 = vpack.c.bf16 %v644_v11, %v643_v9  ;;  %v6314_v9 = vmov 1   ;;  %v888_v11 = vlaneseq }
 0x476   :  { %5794 = vmatprep.subr.bf16.mxu0 %v5793_v10 }
 0x477   :  { %5796 = vmatpush3.bf16.msra.mxu0 %v5793_v10 }
 0x478   :  { %5805 = vmatprep.subr.bf16.mxu0 %v6311_v7 }
 0x542   :  { %v5304_v13 = vpop.f32.mrb[8].mxu1 }
 0x543   :  { %v624_v14 = vadd.f32 %v5304_v13, %v4822_v12  ;;  %v618_v15 = vpop.f32.mrb[9].mxu1 }
 0x544   :  { %v619_v16 = vadd.f32 %v4822_v12, %v618_v15  ;;  %v35_v15 = vld [vmem:[%s7724_s1 + $0x60] sm:$0xff] }
 0x545   :  { %vm900_vm2 = vcmp.gt.f32.partialorder %v35_v15, 0.0 }
 0x546   :  { %6108 = vtanh.f32 %v619_v16  ;;  %v5307_v20 = vpop.f32.mrb[10].mxu1  ;;  %v36_v16 = vld [vmem:[%s7724_s1 + $0x68] sm:$0xff] }
 0x547   :  { %6110 = vtanh.f32 %v624_v14  ;;  %v634_v21 = vadd.f32 %v5307_v20, %v4822_v12  ;;  %v628_v22 = vpop.f32.mrb[11].mxu1  ;;  %vm901_vm3 = vcmp.gt.f32.partialorder %v36_v16, 0.0 }
 0x548   :  { %v629_v23 = vadd.f32 %v4822_v12, %v628_v22  ;;  %v6596_v12 = vshrl.u32 %v888_v11, 7 }
 0x54a   :  { %6112 = vtanh.f32 %v629_v23  ;;  %v6599_v14 = vsub.s32 0, %v6596_v12  ;;  %v31_v23 = vld [vmem:[%s7724_s1 + $0x40] sm:$0xff] }
 0x54b   :  { %6114 = vtanh.f32 %v634_v21  ;;  %vm912_vm10 = vcmp.gt.f32.partialorder %v31_v23, 0.0 }
 0x550   :  { %v6109_v24 = vpop.eup %6108 }
 0x551   :  { %v6111_v25 = vpop.eup %6110  ;;  %5316 = vmatprep.mubr.msk.f32.mxu0 %vm7729_vm0, %v6109_v24 }
 0x552   :  { %5317 = vmatmul.mubr.msk.f32.vlgmr.msra.gmra.mrb[12].mxu0 %vm7729_vm0, %v6111_v25 }
 0x554   :  { %v6113_v26 = vpop.eup %6112 }
 0x555   :  { %v6115_v27 = vpop.eup %6114  ;;  %5319 = vmatprep.mubr.msk.f32.mxu0 %vm7729_vm0, %v6113_v26 }
 0x556   :  { %5320 = vmatmul.mubr.msk.f32.gmra.mrb[14].mxu0 %vm7729_vm0, %v6115_v27 }
 0x557   :  { %5344 = vmatprep.mubr.msk.f32.mxu0 %vm7727_vm1, %v6313_v8 }
 0x625   :  { %v5318_v28 = vpop.f32.mrb[12].mxu0 }
 0x626   :  { %v723_v29 = vpop.f32.mrb[13].mxu0 }
 0x627   :  { %v5797_v30 = vpack.c.bf16 %v5318_v28, %v723_v29  ;;  %v33_v28 = vld [vmem:[%s7724_s1 + $0x50] sm:$0xff]  ;;  %v34_v29 = vld [vmem:[%s7724_s1 + $0x58] sm:$0xff] }
 0x629   :  { %v5321_v33 = vpop.f32.mrb[14].mxu0  ;;  %5798 = vmatprep.subr.bf16.mxu1 %v5797_v30 }
 0x62a   :  { %v733_v34 = vpop.f32.mrb[15].mxu0  ;;  %5800 = vmatpush3.bf16.msra.mxu1 %v5797_v30  ;;  %v6315_v30 = vmov 1.0|1.0  }
 0x62b   :  { %v5801_v39 = vpack.c.bf16 %v5321_v33, %v733_v34 }
 0x62d   :  { %5802 = vmatprep.subr.bf16.mxu1 %v5801_v39 }
 0x62e   :  { %5804 = vmatpush3.bf16.msra.mxu1 %v5801_v39 }
 0x62f   :  { %5812 = vmatprep.subr.bf16.mxu1 %v5811_v40 }
 0x631   :  { %5331 = vmatmul.mubr.msk.f32.vlgmr.msra.gmra.mrb[12].mxu1 %vm7729_vm0, %v6382_v17  ;;  %v5823_v17 = vpack.c.bf16 %v1030_v48, %v1029_v47 }
 0x632   :  { %5814 = vmatpush3.bf16.msra.mxu1 %v5811_v40  ;;  %5333 = vmatprep.mubr.msk.f32.mxu1 %vm7729_vm0, %v6387_v18  ;;  %v1205_v18 = vld [vmem:[%s7725_s2 + $0xc0] sm:$0xff] }
 0x633   :  { %5816 = vmatprep.subr.bf16.mxu1 %v5815_v43 }
 0x635   :  { %5334 = vmatmul.mubr.msk.f32.gmra.mrb[14].mxu1 %vm7729_vm0, %v6396_v19  ;;  %v5827_v19 = vpack.c.bf16 %v1206_v49, %v1205_v18 }
 0x636   :  { %5818 = vmatpush3.bf16.msra.mxu1 %v5815_v43  ;;  %5355 = vmatprep.mubr.msk.f32.mxu1 %vm7729_vm0, %v6456_v60 }
 0x637   :  { %5820 = vmatprep.subr.bf16.mxu1 %v5819_v46 }
 0x639   :  { %5356 = vmatmul.mubr.msk.f32.vlgmr.msra.gmra.mrb[16].mxu1 %vm7729_vm0, %v6458_v61 }
 0x63a   :  { %5358 = vmatprep.mubr.msk.f32.mxu1 %vm7729_vm0, %v6464_v62  ;;  %5822 = vmatpush3.bf16.msra.mxu1 %v5819_v46 }
 0x63b   :  { %5824 = vmatprep.subr.bf16.mxu1 %v5823_v17 }
 0x63d   :  { %5359 = vmatmul.mubr.msk.f32.gmra.mrb[18].mxu1 %vm7729_vm0, %v6466_v63 }
 0x63e   :  { %5826 = vmatpush3.bf16.msra.mxu1 %v5823_v17  ;;  %5369 = vmatprep.mubr.msk.f32.mxu1 %vm7729_vm0, %v6417_v35  ;;  %v1298_v35 = vld [vmem:[%s7725_s2 + $0xe0] sm:$0xff] }
 0x63f   :  { %5828 = vmatprep.subr.bf16.mxu1 %v5827_v19 }
 0x641   :  { %5370 = vmatmul.mubr.msk.f32.vlgmr.msra.gmra.mrb[16].mxu1 %vm7729_vm0, %v6419_v36  ;;  %v1299_v36 = vld [vmem:[%s7725_s2 + $0xe8] sm:$0xff] }
 0x642   :  { %5372 = vmatprep.mubr.msk.f32.mxu1 %vm7729_vm0, %v6425_v37  ;;  %5830 = vmatpush3.bf16.msra.mxu1 %v5827_v19  ;;  %v5835_v37 = vpack.c.bf16 %v1299_v36, %v1298_v35  ;;  %v42_v19 = vld [vmem:[%s7724_s1 + $0x198] sm:$0x1] }
 0x643   :  { %5832 = vmatprep.subr.bf16.mxu1 %v5831_v52 }
 0x645   :  { %5373 = vmatmul.mubr.msk.f32.gmra.mrb[18].mxu1 %vm7729_vm0, %v6427_v38  ;;  %v1300_v38 = vld [vmem:[%s7725_s2 + $0xf0] sm:$0xff] }
 0x646   :  { %5834 = vmatpush3.bf16.msra.mxu1 %v5831_v52  ;;  %5383 = vmatprep.mubr.msk.f32.mxu1 %vm7729_vm0, %v6109_v24  ;;  %v5839_v54 = vpack.c.bf16 %v1301_v53, %v1300_v38  ;;  %v32_v24 = vld [vmem:[%s7724_s1 + $0x48] sm:$0xff] }
 0x647   :  { %5836 = vmatprep.subr.bf16.mxu1 %v5835_v37  ;;  %vm913_vm12 = vcmp.gt.f32.partialorder %v32_v24, 0.0 }
 0x649   :  { %5384 = vmatmul.mubr.msk.f32.vlgmr.msra.gmra.mrb[16].mxu1 %vm7729_vm0, %v6111_v25  ;;  %v37_v25 = vld [vmem:[%s7724_s1 + $0x70] sm:$0xff] }
 0x64a   :  { %5386 = vmatprep.mubr.msk.f32.mxu1 %vm7729_vm0, %v6113_v26  ;;  %5838 = vmatpush3.bf16.msra.mxu1 %v5835_v37  ;;  %v38_v26 = vld [vmem:[%s7724_s1 + $0x78] sm:$0xff] }
 0x64b   :  { %5840 = vmatprep.subr.bf16.mxu1 %v5839_v54 }
 0x64d   :  { %5387 = vmatmul.mubr.msk.f32.gmra.mrb[18].mxu1 %vm7729_vm0, %v6115_v27 }
 0x64e   :  { %5842 = vmatpush3.bf16.msra.mxu1 %v5839_v54 }
 0x64f   :  { %5889 = vmatprep.subr.bf16.mxu1 %v6311_v7 }
 0x704   :  { %v5332_v57 = vpop.f32.mrb[12].mxu1 }
 0x705   :  { %v819_v58 = vadd.f32 %v5332_v57, %v4831_v56  ;;  %v813_v59 = vpop.f32.mrb[13].mxu1 }
 0x706   :  { %v814_v60 = vadd.f32 %v4831_v56, %v813_v59  ;;  %v1583_v59 = vld [vmem:[%s7725_s2 + $0x108] sm:$0xff] }
 0x707   :  { %6116 = vtanh.f32 %v819_v58  ;;  %v1582_v58 = vld [vmem:[%s7725_s2 + $0x100] sm:$0xff] }
 0x708   :  { %6118 = vtanh.f32 %v814_v60  ;;  %v5335_v61 = vpop.f32.mrb[14].mxu1  ;;  %v5860_v60 = vpack.c.bf16 %v1583_v59, %v1582_v58  ;;  %v22_v58 = vld [vmem:[%s7723_s0 + $0x38] sm:$0xff]  ;;  %v2002_v59 = vld [vmem:[%s7725_s2 + $0x1a0] sm:$0xff] }
 0x709   :  { %v829_v62 = vadd.f32 %v5335_v61, %v4831_v56  ;;  %v823_v63 = vpop.f32.mrb[15].mxu1  ;;  %v1584_v61 = vld [vmem:[%s7725_s2 + $0x110] sm:$0xff] }
 0x70a   :  { %v824_v0 = vadd.f32 %v4831_v56, %v823_v63 }
 0x70b   :  { %6120 = vtanh.f32 %v829_v62  ;;  %v1585_v62 = vld [vmem:[%s7725_s2 + $0x118] sm:$0xff] }
 0x70c   :  { %6122 = vtanh.f32 %v824_v0  ;;  %v5863_v63 = vpack.c.bf16 %v1585_v62, %v1584_v61  ;;  %v2533_v62 = vld [vmem:[%s7725_s2 + $0x260] sm:$0xff] }
 0x711   :  { %v6117_v1 = vpop.eup %6116 }
 0x712   :  { %v6119_v2 = vpop.eup %6118  ;;  %875 = vperm.xlu0 %6053, %v6117_v1  }
 0x713   :  { %5397 = vmatprep.mubr.msk.f32.mxu1 %vm7729_vm0, %v6119_v2 }
 0x714   :  { %5398 = vmatmul.mubr.msk.f32.vlgmr.msra.gmra.mrb[16].mxu1 %vm7729_vm0, %v6117_v1 }
 0x715   :  { %v6121_v3 = vpop.eup %6120 }
 0x716   :  { %v6123_v4 = vpop.eup %6122  ;;  %870 = vperm.xlu0 %6053, %v6119_v2  }
 0x717   :  { %5400 = vmatprep.mubr.msk.f32.mxu1 %vm7729_vm0, %v6123_v4  ;;  %880 = vperm.xlu1 %6054, %v6123_v4  }
 0x718   :  { %5401 = vmatmul.mubr.msk.f32.gmra.mrb[18].mxu1 %vm7729_vm0, %v6121_v3 }
 0x719   :  { %5488 = vmatprep.mubr.msk.f32.mxu1 %vm7727_vm1, %v6313_v8  ;;  %vm902_vm1 = vcmp.gt.f32.partialorder %v37_v25, 0.0 }
 0x71b   :  { %885 = vperm.xlu1 %6054, %v6121_v3  }
 0x71f   :  { %1003 = vperm.xlu1 %6054, %v40_v5  }
 0x723   :  { %1008 = vperm.xlu1 %6054, %v41_v6  }
 0x727   :  { %6055 = vset.pattern.permute.xlu1 %v6314_v9 }
 0x728   :  { %1016 = vperm.xlu1 %6055, %v40_v5  }
 0x72c   :  { %1020 = vperm.xlu1 %6055, %v41_v6  }
 0x730   :  { %6056 = vset.pattern.permute.xlu1 %v6310_v55 }
 0x734   :  { %836 = vxpose.xlu0.b32.start [1/4] (short) (narrow) %v6119_v2, 8  ;;  %v1670_v2 = vld [vmem:[%s7725_s2 + $0x120] sm:$0xff] }
 0x738   :  { %837 = vxpose.xlu0.b32.cont [2/4] (short) (narrow) %v6117_v1, 8 }
 0x73c   :  { %838 = vxpose.xlu0.b32.cont [3/4] (short) (narrow) %v6123_v4, 8 }
 0x740   :  { %839 = vxpose.xlu0.b32.end [4/4] (short) (narrow) %v6121_v3, 8  ;;  %v1671_v3 = vld [vmem:[%s7725_s2 + $0x128] sm:$0xff] }
 0x791   :  { %v876_v10 = vpop.permute.xlu0 %875 }
 0x795   :  { %v871_v13 = vpop.permute.xlu0 %870 }
 0x796   :  { %v881_v22 = vpop.permute.xlu1 %880 }
 0x79a   :  { %v886_v27 = vpop.permute.xlu1 %885 }
 0x79e   :  { %v1004_v49 = vpop.permute.xlu1 %1003 }
 0x7a2   :  { %v1009_v50 = vpop.permute.xlu1 %1008 }
 0x7a7   :  { %v1017_v37 = vpop.permute.xlu1 %1016 }
 0x7ab   :  { %v1021_v56 = vpop.permute.xlu1 %1020 }
 0x7b4   :  { %v852_v20 = vpop.trf.xlu0 }
 0x7b5   :  { %v891_v21 = vrot.slane %v852_v20, %v6599_v14 }
 0x7b7   :  { %vm892_vm4 = vcmp.gt.f32.partialorder %v871_v13, %v891_v21  ;;  %vm896_vm5 = vcmp.eq.f32.partialorder %v871_v13, %v891_v21  ;;  %vm897_vm6 = vcmp.eq.f32.partialorder %v876_v10, %v891_v21  ;;  %vm893_vm7 = vcmp.gt.f32.partialorder %v876_v10, %v891_v21 }
 0x7b8   :  { %vm904_vm8 = vmand %vm896_vm5, %vm900_vm2  ;;  %vm898_vm15 = vcmp.eq.f32.partialorder %v881_v22, %v891_v21  ;;  %vm899_vm2 = vcmp.eq.f32.partialorder %v886_v27, %v891_v21  ;;  %v5866_v10 = vpack.c.bf16 %v1671_v3, %v1670_v2  ;;  %v2005_v2 = vld [vmem:[%s7725_s2 + $0x1b8] sm:$0xff]  ;;  %v2535_v3 = vld [vmem:[%s7725_s2 + $0x270] sm:$0xff] }
 0x7b9   :  { %vm905_vm9 = vmand %vm897_vm6, %vm901_vm3  ;;  %vm903_vm3 = vcmp.gt.f32.partialorder %v38_v26, 0.0  ;;  %vm895_vm6 = vcmp.gt.f32.partialorder %v886_v27, %v891_v21 }
 0x7ba   :  { %vm908_vm11 = vmor %vm892_vm4, %vm904_vm8  ;;  %vm894_vm4 = vcmp.gt.f32.partialorder %v881_v22, %v891_v21  ;;  %v1672_v21 = vld [vmem:[%s7725_s2 + $0x130] sm:$0xff]  ;;  %v1673_v22 = vld [vmem:[%s7725_s2 + $0x138] sm:$0xff] }
 0x7bb   :  { %vm909_vm13 = vmor %vm893_vm7, %vm905_vm9  ;;  %vm914_vm9 = vcmp.gt.f32.partialorder %v33_v28, 0.0 }
 0x7bc   :  { %vm916_vm14 = vmand %vm908_vm11, %vm912_vm10  ;;  %vm915_vm11 = vcmp.gt.f32.partialorder %v34_v29, 0.0 }
 0x7bd   :  { %vm917_vm0 = vmand %vm909_vm13, %vm913_vm12 }
 0x7be   :  { %vm5806_vm5 = vmpackc.low %vm917_vm0, %vm916_vm14 }
 0x7bf   :  { %5807 = vmatpush3.bf16.msk.msra.mxu0 %vm5806_vm5, %v6315_v30  ;;  %vm906_vm7 = vmand %vm898_vm15, %vm902_vm1  ;;  %vm7730_vm5 = vcmask 261120  }
 0x7c0   :  { %5808 = vmatprep.subr.bf16.mxu0 %v6311_v7  ;;  %vm907_vm8 = vmand %vm899_vm2, %vm903_vm3 }
 0x7c1   :  { %vm910_vm10 = vmor %vm894_vm4, %vm906_vm7 }
 0x7c2   :  { %vm911_vm12 = vmor %vm895_vm6, %vm907_vm8 }
 0x7c3   :  { %vm918_vm13 = vmand %vm910_vm10, %vm914_vm9  ;;  %vm7735_vm9 = vmmov 0   ;;  %vm1580_vm10 = vcmask 1043456  }
 0x7c4   :  { %vm919_vm0 = vmand %vm911_vm12, %vm915_vm11 }
 0x7c5   :  { %vm5809_vm14 = vmpackc.low %vm919_vm0, %vm918_vm13 }
 0x7c6   :  { %5810 = vmatpush3.bf16.msk.msra.mxu0 %vm5809_vm14, %v6315_v30  ;;  %vm7731_vm3 = vmmov %vm7730_vm5 }
 0x7c7   :  { %vm7732_vm4 = vmmov %vm7731_vm3 }
 0x7c8   :  { %vm7733_vm6 = vmmov %vm7731_vm3 }
 0x7c9   :  { %5345 = vmatmul.mubr.msk.f32.vlgmr.msra.gmra.mrb[16].mxu0 %vm7730_vm5, %v6316_v31  ;;  %vm7734_vm8 = vmmov %vm7731_vm3 }
 0x7ca   :  { %vm7736_vm11 = vmmov %vm7731_vm3 }
 0x7cb   :  { %vm7737_vm12 = vmmov %vm7731_vm3 }
 0x7cc   :  { %vm7738_vm13 = vmmov %vm7731_vm3 }
 0x7cd   :  { %vm7739_vm0 = vmmov %vm7731_vm3 }
 0x7ce   :  { %vm7740_vm14 = vmmov %vm7739_vm0 }
 0x7cf   :  { %vm7741_vm5 = vmmov %vm7739_vm0 }
 0x7e7   :  { %v5399_v33 = vpop.f32.mrb[16].mxu1 }
 0x7e8   :  { %v1405_v34 = vadd.f32 %v5399_v33, %v4857_v32  ;;  %v1376_v39 = vpop.f32.mrb[17].mxu1  ;;  %v1753_v33 = vld [vmem:[%s7725_s2 + $0x140] sm:$0xff] }
 0x7e9   :  { %v1404_v40 = vadd.f32 %v4857_v32, %v1376_v39 }
 0x7ea   :  { %v1409_v41 = vmax.f32 %v1405_v34, 0.0  ;;  %v1754_v34 = vld [vmem:[%s7725_s2 + $0x148] sm:$0xff] }
 0x7eb   :  { %v1408_v42 = vmax.f32 %v1404_v40, 0.0  ;;  %v5402_v43 = vpop.f32.mrb[18].mxu1  ;;  %v5872_v39 = vpack.c.bf16 %v1754_v34, %v1753_v33  ;;  %v1755_v40 = vld [vmem:[%s7725_s2 + $0x150] sm:$0xff]  ;;  %v2173_v33 = vld [vmem:[%s7725_s2 + $0x1e8] sm:$0xff] }
 0x7ec   :  { %v1407_v44 = vadd.f32 %v5402_v43, %v4857_v32  ;;  %v1386_v45 = vpop.f32.mrb[19].mxu1  ;;  %v1836_v43 = vld [vmem:[%s7725_s2 + $0x160] sm:$0xff] }
 0x7ed   :  { %v5843_v46 = vpack.c.bf16 %v1409_v41, %v1408_v42  ;;  %v1406_v47 = vadd.f32 %v4857_v32, %v1386_v45  ;;  %v5869_v32 = vpack.c.bf16 %v1673_v22, %v1672_v21  ;;  %v1756_v41 = vld [vmem:[%s7725_s2 + $0x158] sm:$0xff]  ;;  %v2090_v21 = vld [vmem:[%s7725_s2 + $0x1c8] sm:$0xff] }
 0x7ee   :  { %v1411_v48 = vmax.f32 %v1407_v44, 0.0  ;;  %v5875_v42 = vpack.c.bf16 %v1756_v41, %v1755_v40  ;;  %v1837_v44 = vld [vmem:[%s7725_s2 + $0x168] sm:$0xff] }
 0x7ef   :  { %v1410_v17 = vmax.f32 %v1406_v47, 0.0  ;;  %5844 = vmatprep.subr.bf16.mxu0 %v5843_v46  ;;  %v5878_v45 = vpack.c.bf16 %v1837_v44, %v1836_v43  ;;  %v1839_v47 = vld [vmem:[%s7725_s2 + $0x178] sm:$0xff]  ;;  %v2174_v43 = vld [vmem:[%s7725_s2 + $0x1f0] sm:$0xff] }
 0x7f0   :  { %5846 = vmatpush3.bf16.msra.mxu0 %v5843_v46  ;;  %v2175_v44 = vld [vmem:[%s7725_s2 + $0x1f8] sm:$0xff] }
 0x7f1   :  { %v5847_v18 = vpack.c.bf16 %v1411_v48, %v1410_v17  ;;  %v1917_v17 = vld [vmem:[%s7725_s2 + $0x180] sm:$0xff] }
 0x7f3   :  { %5848 = vmatprep.subr.bf16.mxu0 %v5847_v18 }
 0x7f4   :  { %5850 = vmatpush3.bf16.msra.mxu0 %v5847_v18 }
 0x7f5   :  { %5852 = vmatprep.subr.bf16.mxu0 %v5843_v46 }
 0x89c   :  { %v993_v51 = vpop.f32.mrb[16].mxu0 }
 0x89d   :  { %v994_v52 = vadd.f32 %v993_v51, %v42_v19  ;;  %v5346_v35 = vpop.f32.mrb[17].mxu0  ;;  %v1919_v19 = vld [vmem:[%s7725_s2 + $0x190] sm:$0xff]  ;;  %v2331_v51 = vld [vmem:[%s7725_s2 + $0x220] sm:$0xff] }
 0x89f   :  { %v1000_v36 = vrot.slane %v994_v52, %v6599_v14  ;;  %v2332_v52 = vld [vmem:[%s7725_s2 + $0x228] sm:$0xff] }
 0x8a1   :  { %vm1023_vm1 = vcmp.eq.f32.partialorder %v1000_v36, %v1017_v37  ;;  %vm1011_vm15 = vcmp.eq.f32.partialorder %v1000_v36, %v1004_v49  ;;  %vm1012_vm2 = vcmp.eq.f32.partialorder %v1000_v36, %v1009_v50  ;;  %vm1024_vm7 = vcmp.eq.f32.partialorder %v1000_v36, %v1021_v56  ;;  %v1920_v50 = vld [vmem:[%s7725_s2 + $0x198] sm:$0xff]  ;;  %v2333_v37 = vld [vmem:[%s7725_s2 + $0x230] sm:$0xff]  ;;  %v20_v56 = vld [vmem:[%s7723_s0 + $0x28] sm:$0xff] }
 0x8a2   :  { %v1013_v38 = vsel %vm1011_vm15, 1.0, %v6313_v8  ;;  %v1014_v53 = vsel %vm1012_vm2, 1.0, %v6313_v8  ;;  %v1025_v54 = vsel %vm1023_vm1, 1.0, %v6313_v8  ;;  %v1026_v57 = vsel %vm1024_vm7, 1.0, %v6313_v8  ;;  %vm7742_vm1 = vmmov %vm7739_vm0 }
 0x8a3   :  { %5411 = vmatprep.mubr.msk.f32.mxu0 %vm7731_vm3, %v1013_v38  ;;  %v5887_v35 = vpack.c.bf16 %v1920_v50, %v1919_v19  ;;  %v5913_v36 = vpack.c.bf16 %v2332_v52, %v2331_v51  ;;  %v2334_v38 = vld [vmem:[%s7725_s2 + $0x238] sm:$0xff]  ;;  %vm7743_vm15 = vmmov %vm7739_vm0  ;;  %vm2000_vm3 = vcmask 1040384   ;;  %v2255_v50 = vld [vmem:[%s7725_s2 + $0x210] sm:$0xff] }
 0x8a4   :  { %5412 = vmatmul.mubr.msk.f32.vlgmr.msra.gmra.mrb[18].mxu0 %vm7732_vm4, %v1014_v53  ;;  %v5917_v53 = vpack.c.bf16 %v2334_v38, %v2333_v37  ;;  %vm7744_vm2 = vmmov %vm7739_vm0  ;;  %v2256_v51 = vld [vmem:[%s7725_s2 + $0x218] sm:$0xff] }
 0x8a5   :  { %5854 = vmatpush3.bf16.msra.mxu0 %v5843_v46  ;;  %5422 = vmatprep.mubr.msk.f32.mxu0 %vm7733_vm6, %v1025_v54  ;;  %v1838_v46 = vld [vmem:[%s7725_s2 + $0x170] sm:$0xff]  ;;  %v19_v54 = vld [vmem:[%s7723_s0 + $0x20] sm:$0xff]  ;;  %vm7745_vm4 = vmmov %vm7739_vm0  ;;  %v5911_v37 = vpack.c.bf16 %v2256_v51, %v2255_v50  ;;  %v2932_v51 = vsub.s32 3, %v6596_v12 }
 0x8a6   :  { %5856 = vmatprep.subr.bf16.mxu0 %v5847_v18  ;;  %v5881_v48 = vpack.c.bf16 %v1839_v47, %v1838_v46  ;;  %vm7746_vm6 = vmmov %vm7739_vm0  ;;  %v5905_v47 = vpack.c.bf16 %v2175_v44, %v2174_v43  ;;  %v2764_v44 = vsub.s32 1, %v6596_v12 }
 0x8a7   :  { %vm7747_vm7 = vmmov %vm7739_vm0 }
 0x8a9   :  { %5858 = vmatpush3.bf16.msra.mxu0 %v5847_v18  ;;  %v1918_v18 = vld [vmem:[%s7725_s2 + $0x188] sm:$0xff] }
 0x8aa   :  { %5859 = vmatprep.subr.bf16.mxu0 %v6311_v7  ;;  %v5884_v49 = vpack.c.bf16 %v1918_v18, %v1917_v17  ;;  %v2254_v17 = vld [vmem:[%s7725_s2 + $0x208] sm:$0xff] }
 0x8ac   :  { %5423 = vmatmul.mubr.msk.f32.vlgmr.msra.gmra.mrb[20].mxu0 %vm7734_vm8, %v1026_v57  ;;  %v21_v57 = vld [vmem:[%s7723_s0 + $0x30] sm:$0xff]  ;;  %vm7748_vm8 = vmmov %vm7739_vm0 }
 0x8ad   :  { %5433 = vmatprep.mubr.msk.f32.mxu0 %vm7735_vm9, %v6313_v8  ;;  %5861 = vmatpush3.bf16.msra.mxu0 %v5860_v60  ;;  %v2003_v60 = vld [vmem:[%s7725_s2 + $0x1a8] sm:$0xff] }
 0x8ae   :  { %5862 = vmatprep.subr.bf16.mxu0 %v6311_v7  ;;  %v5890_v61 = vpack.c.bf16 %v2003_v60, %v2002_v59 }
 0x8b0   :  { %5891 = vmatpush3.bf16.msra.mxu1 %v5890_v61 }
 0x8b1   :  { %5864 = vmatpush3.bf16.msra.mxu0 %v5863_v63  ;;  %v2534_v63 = vld [vmem:[%s7725_s2 + $0x268] sm:$0xff]  ;;  %5892 = vmatprep.subr.bf16.mxu1 %v6311_v7 }
 0x8b2   :  { %5865 = vmatprep.subr.bf16.mxu0 %v6311_v7 }
 0x977   :  { %v5413_v0 = vpop.f32.mrb[18].mxu0 }
 0x978   :  { %v1484_v1 = vpop.f32.mrb[19].mxu0 }
 0x97f   :  { %v5424_v4 = vpop.f32.mrb[20].mxu0 }
 0x980   :  { %v1575_v5 = vmax.f32 %v5413_v0, %v5424_v4  ;;  %v1565_v6 = vpop.f32.mrb[21].mxu0  ;;  %v5929_v0 = vpack.c.bf16 %v2534_v63, %v2533_v62  ;;  %v6318_v62 = vmov 6  }
 0x981   :  { %v1574_v11 = vmax.f32 %v1484_v1, %v1565_v6  ;;  %v2004_v1 = vld [vmem:[%s7725_s2 + $0x1b0] sm:$0xff] }
 0x982   :  { %v1578_v13 = vrot.slane %v1575_v5, 4  ;;  %v1667_v15 = vrot.slane %v1575_v5, 5  ;;  %v1750_v16 = vrot.slane %v1575_v5, 6  ;;  %v1833_v20 = vrot.slane %v1575_v5, 7 }
 0x983   :  { %v1665_v23 = vrot.slane %v1574_v11, 1  ;;  %v1748_v24 = vrot.slane %v1574_v11, 2  ;;  %v1831_v25 = vrot.slane %v1574_v11, 3  ;;  %v1914_v26 = vrot.slane %v1574_v11, 4 }
 0x984   :  { %v1581_v27 = vsel %vm1580_vm10, %v1574_v11, %v1578_v13  ;;  %v5893_v4 = vpack.c.bf16 %v2005_v2, %v2004_v1  ;;  %v6317_v11 = vmov 4   ;;  %v6320_v1 = vmov 3  }
 0x985   :  { %5434 = vmatmul.mubr.msk.f32.vlgmr.msra.gmra.mrb[22].mxu0 %vm7736_vm11, %v1581_v27  ;;  %v1669_v28 = vsel %vm1580_vm10, %v1665_v23, %v1667_v15  ;;  %v1752_v29 = vsel %vm1580_vm10, %v1748_v24, %v1750_v16  ;;  %v1835_v30 = vsel %vm1580_vm10, %v1831_v25, %v1833_v20  ;;  %v1916_v31 = vsel %vm1580_vm10, %v1914_v26, %v1575_v5  ;;  %v2536_v5 = vld [vmem:[%s7725_s2 + $0x278] sm:$0xff]  ;;  %v2089_v20 = vld [vmem:[%s7725_s2 + $0x1c0] sm:$0xff]  ;;  %v2091_v25 = vld [vmem:[%s7725_s2 + $0x1d0] sm:$0xff] }
 0x986   :  { %5867 = vmatpush3.bf16.msra.mxu0 %v5866_v10  ;;  %5444 = vmatprep.mubr.msk.f32.mxu0 %vm7735_vm9, %v6313_v8  ;;  %v5933_v6 = vpack.c.bf16 %v2536_v5, %v2535_v3  ;;  %v4863_v10 = vld [vmem:[%s7725_s2 + $0x365] ss:$0 sm:$0xff]  ;;  %v5896_v24 = vpack.c.bf16 %v2090_v21, %v2089_v20  ;;  %v2092_v26 = vld [vmem:[%s7725_s2 + $0x1d8] sm:$0xff]  ;;  %vm7749_vm10 = vmmov %vm7739_vm0  ;;  %v6321_v2 = vmov 5   ;;  %v6322_v5 = vmov 7  }
 0x987   :  { %5868 = vmatprep.subr.bf16.mxu0 %v6311_v7  ;;  %5894 = vmatpush3.bf16.msra.mxu1 %v5893_v4  ;;  %vm7750_vm11 = vmmov %vm7739_vm0 }
 0x988   :  { %5895 = vmatprep.subr.bf16.mxu1 %v6311_v7  ;;  %6060 = vset.pattern.permute.xlu0 %v6317_v11 }
 0x98a   :  { %5870 = vmatpush3.bf16.msra.mxu0 %v5869_v32  ;;  %v2172_v32 = vld [vmem:[%s7725_s2 + $0x1e0] sm:$0xff] }
 0x98b   :  { %5871 = vmatprep.subr.bf16.mxu0 %v6311_v7  ;;  %v5902_v41 = vpack.c.bf16 %v2173_v33, %v2172_v32 }
 0x98d   :  { %5445 = vmatmul.mubr.msk.f32.vlgmr.msra.gmra.mrb[22].mxu0 %vm7737_vm12, %v1669_v28  ;;  %vm7751_vm12 = vmmov %vm7739_vm0 }
 0x98e   :  { %5873 = vmatpush3.bf16.msra.mxu0 %v5872_v39  ;;  %5455 = vmatprep.mubr.msk.f32.mxu0 %vm7735_vm9, %v6313_v8 }
 0x98f   :  { %5874 = vmatprep.subr.bf16.mxu0 %v6311_v7 }
 0x992   :  { %5876 = vmatpush3.bf16.msra.mxu0 %v5875_v42 }
 0x993   :  { %5877 = vmatprep.subr.bf16.mxu0 %v6311_v7 }
 0x995   :  { %5456 = vmatmul.mubr.msk.f32.vlgmr.msra.gmra.mrb[22].mxu0 %vm7738_vm13, %v1752_v29  ;;  %vm7752_vm13 = vmmov %vm7739_vm0 }
 0x996   :  { %5879 = vmatpush3.bf16.msra.mxu0 %v5878_v45  ;;  %5466 = vmatprep.mubr.msk.f32.mxu0 %vm7735_vm9, %v6313_v8 }
 0x997   :  { %5880 = vmatprep.subr.bf16.mxu0 %v6311_v7 }
 0x99a   :  { %5882 = vmatpush3.bf16.msra.mxu0 %v5881_v48  ;;  %v2253_v48 = vld [vmem:[%s7725_s2 + $0x200] sm:$0xff] }
 0x99b   :  { %5883 = vmatprep.subr.bf16.mxu0 %v6311_v7  ;;  %v5908_v19 = vpack.c.bf16 %v2254_v17, %v2253_v48  ;;  %v6959_v48 = vld [vmem:[%s7724_s1 + $0x30] sm:$0xff]  ;;  %v6964_v17 = vld [vmem:[%s7724_s1 + $0x38] sm:$0xff] }
 0x99d   :  { %5467 = vmatmul.mubr.msk.f32.vlgmr.msra.gmra.mrb[22].mxu0 %vm7739_vm0, %v1835_v30  ;;  %v5899_v30 = vpack.c.bf16 %v2092_v26, %v2091_v25 }
 0x99e   :  { %5885 = vmatpush3.bf16.msra.mxu0 %v5884_v49  ;;  %5477 = vmatprep.mubr.msk.f32.mxu0 %vm7735_vm9, %v6313_v8 }
 0x99f   :  { %5886 = vmatprep.subr.bf16.mxu0 %v6311_v7 }
 0x9a2   :  { %5888 = vmatpush3.bf16.msra.mxu0 %v5887_v35  ;;  %v2432_v35 = vld [vmem:[%s7725_s2 + $0x240] sm:$0xff] }
 0x9a3   :  { %5914 = vmatprep.subr.bf16.mxu0 %v5913_v36 }
 0x9a5   :  { %5478 = vmatmul.mubr.msk.f32.vlgmr.msra.gmra.mrb[22].mxu0 %vm7740_vm14, %v1916_v31  ;;  %vm7753_vm14 = vmmov %vm7739_vm0 }
 0x9a6   :  { %5916 = vmatpush3.bf16.msra.mxu0 %v5913_v36  ;;  %5532 = vmatprep.mubr.msk.f32.mxu0 %vm7741_vm5, %v19_v54  ;;  %v2433_v36 = vld [vmem:[%s7725_s2 + $0x248] sm:$0xff]  ;;  %v2434_v54 = vld [vmem:[%s7725_s2 + $0x250] sm:$0xff]  ;;  %vm7754_vm5 = vmmov %vm7739_vm0 }
 0x9a7   :  { %5918 = vmatprep.subr.bf16.mxu0 %v5917_v53  ;;  %v5921_v38 = vpack.c.bf16 %v2433_v36, %v2432_v35 }
 0x9aa   :  { %5920 = vmatpush3.bf16.msra.mxu0 %v5917_v53 }
 0x9ab   :  { %5930 = vmatprep.subr.bf16.mxu0 %v5929_v0 }
 0x9ad   :  { %5533 = vmatmul.mubr.msk.f32.vlgmr.msra.gmra.mrb[24].mxu0 %vm7742_vm1, %v20_v56  ;;  %v2435_v56 = vld [vmem:[%s7725_s2 + $0x258] sm:$0xff]  ;;  %vm7755_vm1 = vmmov %vm7739_vm0 }
 0x9ae   :  { %5535 = vmatprep.mubr.msk.f32.mxu0 %vm7743_vm15, %v21_v57  ;;  %5932 = vmatpush3.bf16.msra.mxu0 %v5929_v0  ;;  %v5925_v57 = vpack.c.bf16 %v2435_v56, %v2434_v54  ;;  %v6319_v0 = vmov 2  }
 0x9af   :  { %5934 = vmatprep.subr.bf16.mxu0 %v5933_v6 }
 0x9b1   :  { %5536 = vmatmul.mubr.msk.f32.gmra.mrb[26].mxu0 %vm7744_vm2, %v22_v58 }
 0x9b2   :  { %5936 = vmatpush3.bf16.msra.mxu0 %v5933_v6 }
 0xa78   :  { %v1990_v13 = vpop.f32.mrb[22].mxu0 }
 0xa79   :  { %v6011_v15 = vadd.f32 %v4863_v10, %v1990_v13  ;;  %v5479_v16 = vpop.f32.mrb[23].mxu0 }
 0xa7b   :  { %v6797_v22 = vmax.f32 %v6011_v15, 0.0 }
 0xa7d   :  { %v1998_v23 = vrot.slane %v6797_v22, 3  ;;  %v2084_v34 = vrot.slane %v6797_v22, 1  ;;  %v2086_v39 = vrot.slane %v6797_v22, 4  ;;  %v2167_v18 = vrot.slane %v6797_v22, 2 }
 0xa7e   :  { %v2169_v49 = vrot.slane %v6797_v22, 5  ;;  %v2250_v53 = vrot.slane %v6797_v22, 6 }
 0xa7f   :  { %v2001_v27 = vsel %vm2000_vm3, %v6797_v22, %v1998_v23  ;;  %v2088_v46 = vsel %vm2000_vm3, %v2084_v34, %v2086_v39 }
 0xa80   :  { %v5534_v28 = vpop.f32.mrb[24].mxu0  ;;  %5489 = vmatmul.mubr.msk.f32.vlgmr.msra.gmra.mrb[20].mxu1 %vm7745_vm4, %v2001_v27  ;;  %v2171_v52 = vsel %vm2000_vm3, %v2167_v18, %v2169_v49  ;;  %v2252_v58 = vsel %vm2000_vm3, %v1998_v23, %v2250_v53  ;;  %vm2696_vm3 = vcmp.gt.f32.partialorder %v6959_v48, 0.0  ;;  %vm2697_vm4 = vcmp.gt.f32.partialorder %v6964_v17, 0.0 }
 0xa81   :  { %5897 = vmatpush3.bf16.msra.mxu1 %v5896_v24  ;;  %v2413_v29 = vpop.f32.mrb[25].mxu0  ;;  %5499 = vmatprep.mubr.msk.f32.mxu1 %vm7735_vm9, %v6313_v8 }
 0xa82   :  { %v5937_v31 = vpack.c.bf16 %v5534_v28, %v2413_v29  ;;  %5560 = vmatprep.mubr.msk.f32.mxu0 %vm7746_vm6, %v2413_v29  ;;  %5898 = vmatprep.subr.bf16.mxu1 %v6311_v7 }
 0xa83   :  { %5561 = vmatmul.mubr.msk.f32.vlgmr.msra.gmra.mrb[28].mxu0 %vm7747_vm7, %v5534_v28 }
 0xa84   :  { %v5537_v40 = vpop.f32.mrb[26].mxu0 }
 0xa85   :  { %5900 = vmatpush3.bf16.msra.mxu1 %v5899_v30  ;;  %v2423_v42 = vpop.f32.mrb[27].mxu0 }
 0xa86   :  { %5901 = vmatprep.subr.bf16.mxu1 %v6311_v7  ;;  %v5941_v45 = vpack.c.bf16 %v5537_v40, %v2423_v42  ;;  %5563 = vmatprep.mubr.msk.f32.mxu0 %vm7748_vm8, %v2423_v42 }
 0xa87   :  { %5564 = vmatmul.mubr.msk.f32.gmra.mrb[30].mxu0 %vm7749_vm10, %v5537_v40 }
 0xa88   :  { %5500 = vmatmul.mubr.msk.f32.vlgmr.msra.gmra.mrb[20].mxu1 %vm7750_vm11, %v2088_v46  ;;  %v6953_v46 = vld [vmem:[%s7724_s1 + $0x20] sm:$0xff] }
 0xa89   :  { %5903 = vmatpush3.bf16.msra.mxu1 %v5902_v41  ;;  %5510 = vmatprep.mubr.msk.f32.mxu1 %vm7735_vm9, %v6313_v8  ;;  %vm2694_vm2 = vcmp.gt.f32.partialorder %v6953_v46, 0.0 }
 0xa8a   :  { %5904 = vmatprep.subr.bf16.mxu1 %v6311_v7 }
 0xa8d   :  { %5906 = vmatpush3.bf16.msra.mxu1 %v5905_v47  ;;  %v2848_v47 = vsub.s32 2, %v6596_v12 }
 0xa8e   :  { %5907 = vmatprep.subr.bf16.mxu1 %v6311_v7 }
 0xa90   :  { %5511 = vmatmul.mubr.msk.f32.vlgmr.msra.gmra.mrb[20].mxu1 %vm7751_vm12, %v2171_v52  ;;  %vm7756_vm12 = vmmov %vm7739_vm0 }
 0xa91   :  { %5909 = vmatpush3.bf16.msra.mxu1 %v5908_v19  ;;  %5521 = vmatprep.mubr.msk.f32.mxu1 %vm7735_vm9, %v6313_v8 }
 0xa92   :  { %5910 = vmatprep.subr.bf16.mxu1 %v6311_v7 }
 0xa95   :  { %5912 = vmatpush3.bf16.msra.mxu1 %v5911_v37 }
 0xa96   :  { %5922 = vmatprep.subr.bf16.mxu1 %v5921_v38 }
 0xa98   :  { %5522 = vmatmul.mubr.msk.f32.vlgmr.msra.gmra.mrb[20].mxu1 %vm7752_vm13, %v2252_v58  ;;  %vm7757_vm13 = vmmov %vm7739_vm0 }
 0xa99   :  { %5924 = vmatpush3.bf16.msra.mxu1 %v5921_v38  ;;  %5546 = vmatprep.mubr.msk.f32.mxu1 %vm7739_vm0, %v2413_v29 }
 0xa9a   :  { %5926 = vmatprep.subr.bf16.mxu1 %v5925_v57 }
 0xa9d   :  { %5928 = vmatpush3.bf16.msra.mxu1 %v5925_v57 }
 0xa9e   :  { %5938 = vmatprep.subr.bf16.mxu1 %v5937_v31 }
 0xaa0   :  { %5547 = vmatmul.mubr.msk.f32.vlgmr.msra.gmra.mrb[22].mxu1 %vm7753_vm14, %v5534_v28 }
 0xaa1   :  { %5940 = vmatpush3.bf16.msra.mxu1 %v5937_v31  ;;  %5549 = vmatprep.mubr.msk.f32.mxu1 %vm7754_vm5, %v2423_v42  ;;  %vm7758_vm5 = vmmov %vm7739_vm0 }
 0xaa2   :  { %5942 = vmatprep.subr.bf16.mxu1 %v5941_v45 }
 0xaa4   :  { %5550 = vmatmul.mubr.msk.f32.gmra.mrb[24].mxu1 %vm7755_vm1, %v5537_v40 }
 0xaa5   :  { %5944 = vmatpush3.bf16.msra.mxu1 %v5941_v45  ;;  %v6948_v45 = vld [vmem:[%s7724_s1 + $0x28] sm:$0xff] }
 0xaa6   :  { %5999 = vmatprep.subr.bf16.mxu1 %v6311_v7  ;;  %vm2695_vm15 = vcmp.gt.f32.partialorder %v6948_v45, 0.0 }
 0xb56   :  { %v5562_v59 = vpop.f32.mrb[28].mxu0 }
 0xb57   :  { %3003 = vperm.xlu0 %6060, %v5562_v59   ;;  %2661 = vperm.xlu1 %6056, %v5562_v59   ;;  %v2603_v60 = vpop.f32.mrb[29].mxu0 }
 0xb5a   :  { %v6876_v61 = vpop.f32.mrb[30].mxu0 }
 0xb5b   :  { %6062 = vset.pattern.permute.xlu0 %v6318_v62  ;;  %6057 = vset.pattern.permute.xlu1 %v6314_v9  ;;  %v6880_v63 = vpop.f32.mrb[31].mxu0 }
 0xb5c   :  { %3171 = vperm.xlu0 %6062, %v5562_v59   ;;  %2751 = vperm.xlu1 %6057, %v5562_v59  }
 0xb60   :  { %6068 = vset.pattern.permute.xlu0 %v6317_v11  ;;  %6058 = vset.pattern.permute.xlu1 %v6319_v0 }
 0xb61   :  { %2835 = vperm.xlu1 %6058, %v5562_v59   ;;  %2999 = vperm.xlu0 %6068, %v2603_v60  }
 0xb65   :  { %6059 = vset.pattern.permute.xlu1 %v6320_v1  ;;  %6069 = vset.pattern.permute.xlu0 %v6321_v2 }
 0xb66   :  { %2919 = vperm.xlu1 %6059, %v5562_v59   ;;  %3083 = vperm.xlu0 %6069, %v2603_v60  }
 0xb6a   :  { %6061 = vset.pattern.permute.xlu1 %v6321_v2  ;;  %6070 = vset.pattern.permute.xlu0 %v6318_v62 }
 0xb6b   :  { %3087 = vperm.xlu1 %6061, %v5562_v59   ;;  %3167 = vperm.xlu0 %6070, %v2603_v60   ;;  %v6884_v3 = vpop.f32.mrb[20].mxu1 }
 0xb6c   :  { %v5523_v4 = vpop.f32.mrb[21].mxu1 }
 0xb6f   :  { %6063 = vset.pattern.permute.xlu1 %v6322_v5  ;;  %6071 = vset.pattern.permute.xlu0 %v6322_v5 }
 0xb70   :  { %3255 = vperm.xlu1 %6063, %v5562_v59   ;;  %3251 = vperm.xlu0 %6071, %v2603_v60  }
 0xb73   :  { %v5548_v6 = vpop.f32.mrb[22].mxu1 }
 0xb74   :  { %v2514_v10 = vpop.f32.mrb[23].mxu1  ;;  %6064 = vset.pattern.permute.xlu1 %v6310_v55  ;;  %6073 = vset.pattern.permute.xlu0 %v6314_v9 }
 0xb75   :  { %2656 = vperm.xlu1 %6064, %v2603_v60   ;;  %2759 = vperm.xlu0 %6073, %v6876_v61  }
 0xb77   :  { %v5551_v13 = vpop.f32.mrb[24].mxu1 }
 0xb78   :  { %v2524_v15 = vpop.f32.mrb[25].mxu1 }
 0xb79   :  { %6065 = vset.pattern.permute.xlu1 %v6314_v9  ;;  %6075 = vset.pattern.permute.xlu0 %v6320_v1 }
 0xb7a   :  { %2747 = vperm.xlu1 %6065, %v2603_v60   ;;  %2927 = vperm.xlu0 %6075, %v6876_v61  }
 0xb7e   :  { %6066 = vset.pattern.permute.xlu1 %v6319_v0  ;;  %6076 = vset.pattern.permute.xlu0 %v6317_v11 }
 0xb7f   :  { %2831 = vperm.xlu1 %6066, %v2603_v60   ;;  %3011 = vperm.xlu0 %6076, %v6876_v61  }
 0xb83   :  { %6067 = vset.pattern.permute.xlu1 %v6320_v1  ;;  %6077 = vset.pattern.permute.xlu0 %v6321_v2 }
 0xb84   :  { %2915 = vperm.xlu1 %6067, %v2603_v60   ;;  %3095 = vperm.xlu0 %6077, %v6876_v61  }
 0xb88   :  { %6072 = vset.pattern.permute.xlu1 %v6310_v55  ;;  %6078 = vset.pattern.permute.xlu0 %v6318_v62 }
 0xb89   :  { %3179 = vperm.xlu0 %6078, %v6876_v61   ;;  %2671 = vperm.xlu1 %6072, %v6876_v61  }
 0xb8d   :  { %6082 = vset.pattern.permute.xlu0 %v6320_v1  ;;  %6074 = vset.pattern.permute.xlu1 %v6319_v0 }
 0xb8e   :  { %2843 = vperm.xlu1 %6074, %v6876_v61   ;;  %2923 = vperm.xlu0 %6082, %v6880_v63  }
 0xb92   :  { %6079 = vset.pattern.permute.xlu1 %v6310_v55  ;;  %6083 = vset.pattern.permute.xlu0 %v6317_v11 }
 0xb93   :  { %3007 = vperm.xlu0 %6083, %v6880_v63   ;;  %2666 = vperm.xlu1 %6079, %v6880_v63  }
 0xb97   :  { %6084 = vset.pattern.permute.xlu0 %v6321_v2  ;;  %6080 = vset.pattern.permute.xlu1 %v6314_v9 }
 0xb98   :  { %3091 = vperm.xlu0 %6084, %v6880_v63   ;;  %2755 = vperm.xlu1 %6080, %v6880_v63  }
 0xb9c   :  { %6085 = vset.pattern.permute.xlu0 %v6318_v62  ;;  %6081 = vset.pattern.permute.xlu1 %v6319_v0 }
 0xb9d   :  { %3175 = vperm.xlu0 %6085, %v6880_v63   ;;  %2839 = vperm.xlu1 %6081, %v6880_v63  }
 0xba1   :  { %6087 = vset.pattern.permute.xlu0 %v6322_v5 }
 0xba2   :  { %3263 = vperm.xlu0 %6087, %v6876_v61  }
 0xba6   :  { %6088 = vset.pattern.permute.xlu0 %v6314_v9 }
 0xbc6   :  { %2622 = vxpose.xlu1.b32.start [1/4] (short) (narrow) %v2514_v10, 8 }
 0xbca   :  { %2623 = vxpose.xlu1.b32.cont [2/4] (short) (narrow) %v5548_v6, 8 }
 0xbce   :  { %2624 = vxpose.xlu1.b32.cont [3/4] (short) (narrow) %v2524_v15, 8 }
 0xbd2   :  { %2625 = vxpose.xlu1.b32.end [4/4] (short) (narrow) %v5551_v13, 8 }
 0xbd6   :  { %v2662_v11 = vpop.permute.xlu1 %2661  ;;  %v6922_v26 = vpop.permute.xlu0 %3003 }
 0xbdb   :  { %v2752_v16 = vpop.permute.xlu1 %2751  ;;  %v6926_v28 = vpop.permute.xlu0 %3171 }
 0xbe0   :  { %v6914_v20 = vpop.permute.xlu1 %2835  ;;  %v6930_v30 = vpop.permute.xlu0 %2999 }
 0xbe5   :  { %v6916_v21 = vpop.permute.xlu1 %2919  ;;  %v6932_v31 = vpop.permute.xlu0 %3083 }
 0xbea   :  { %v6918_v22 = vpop.permute.xlu1 %3087  ;;  %v6936_v33 = vpop.permute.xlu0 %3167 }
 0xbef   :  { %v6920_v23 = vpop.permute.xlu1 %3255  ;;  %v6938_v39 = vpop.permute.xlu0 %3251 }
 0xbf0   :  { %6086 = vset.pattern.permute.xlu1 %v6322_v5 }
 0xbf1   :  { %3259 = vperm.xlu1 %6086, %v6880_v63  }
 0xbf4   :  { %v2657_v24 = vpop.permute.xlu1 %2656  ;;  %v2760_v41 = vpop.permute.xlu0 %2759 }
 0xbf5   :  { %6089 = vset.pattern.permute.xlu1 %v6314_v9 }
 0xbf9   :  { %v2748_v25 = vpop.permute.xlu1 %2747  ;;  %v6942_v43 = vpop.permute.xlu0 %2927 }
 0xbfe   :  { %v6924_v27 = vpop.permute.xlu1 %2831  ;;  %v6977_v52 = vpop.permute.xlu0 %3011 }
 0xc03   :  { %v6928_v29 = vpop.permute.xlu1 %2915  ;;  %v6987_v6 = vpop.permute.xlu0 %3095 }
 0xc08   :  { %v2672_v9 = vpop.permute.xlu1 %2671 }
 0xc0d   :  { %v6934_v32 = vpop.permute.xlu1 %2843 }
 0xc12   :  { %v2667_v34 = vpop.permute.xlu1 %2666 }
 0xc17   :  { %v2756_v40 = vpop.permute.xlu1 %2755 }
 0xc1c   :  { %v6940_v42 = vpop.permute.xlu1 %2839 }
 0xc46   :  { %v6966_v18 = vpop.trf.xlu1 }
 0xc47   :  { %v2677_v49 = vrot.slane %v6966_v18, %v6599_v14  ;;  %v2765_v19 = vrot.slane %v6966_v18, %v2764_v44  ;;  %v2849_v50 = vrot.slane %v6966_v18, %v2848_v47 }
 0xc49   :  { %v2679_v35 = vadd.f32 %v2677_v49, %v2662_v11  ;;  %v2678_v36 = vadd.f32 %v2677_v49, %v2657_v24  ;;  %v2680_v37 = vadd.f32 %v2677_v49, %v2667_v34  ;;  %v2681_v38 = vadd.f32 %v2677_v49, %v2672_v9 }
 0xc4a   :  { %v2766_v53 = vadd.f32 %v2765_v19, %v2748_v25  ;;  %v2767_v54 = vadd.f32 %v2765_v19, %v2752_v16  ;;  %v2768_v56 = vadd.f32 %v2765_v19, %v2756_v40  ;;  %v2769_v57 = vadd.f32 %v2765_v19, %v2760_v41 }
 0xc4b   :  { %vm2683_vm6 = vcmp.gt.f32.partialorder %v2679_v35, 0.0  ;;  %v2687_v58 = vmul.f32 0.2, %v2679_v35  ;;  %vm2682_vm7 = vcmp.gt.f32.partialorder %v2678_v36, 0.0  ;;  %v2686_v59 = vmul.f32 0.2, %v2678_v36 }
 0xc4c   :  { %vm2684_vm8 = vcmp.gt.f32.partialorder %v2680_v37, 0.0  ;;  %v2688_v60 = vmul.f32 0.2, %v2680_v37  ;;  %vm2685_vm10 = vcmp.gt.f32.partialorder %v2681_v38, 0.0  ;;  %v2689_v61 = vmul.f32 0.2, %v2681_v38 }
 0xc4d   :  { %v2691_v62 = vsel %vm2683_vm6, %v2679_v35, %v2687_v58  ;;  %v2690_v63 = vsel %vm2682_vm7, %v2678_v36, %v2686_v59  ;;  %vm2770_vm11 = vcmp.gt.f32.partialorder %v2766_v53, 0.0  ;;  %v2774_v0 = vmul.f32 0.2, %v2766_v53  ;;  %v7019_v59 = vpop.permute.xlu0 %3179  ;;  %vm7759_vm7 = vmmov %vm7739_vm0 }
 0xc4e   :  { %v6981_v1 = vsel %vm2695_vm15, %v2691_v62, -1e+30  ;;  %v6985_v2 = vsel %vm2694_vm2, %v2690_v63, -1e+30  ;;  %v2692_v4 = vsel %vm2684_vm8, %v2680_v37, %v2688_v60  ;;  %v2693_v5 = vsel %vm2685_vm10, %v2681_v38, %v2689_v61 }
 0xc4f   :  { %v2705_v10 = vsel %vm7756_vm12, %v6981_v1, -inf  ;;  %v2702_v13 = vsel %vm7757_vm13, %v6985_v2, -inf  ;;  %v6995_v15 = vsel %vm2696_vm3, %v2692_v4, -1e+30  ;;  %v6999_v11 = vsel %vm2697_vm4, %v2693_v5, -1e+30 }
 0xc50   :  { %2706 = vmax.xlane.f32.xlu0 %v2705_v10  ;;  %2703 = vmax.xlane.f32.xlu1 %v2702_v13  ;;  %v2708_v16 = vsel %vm7739_vm0, %v6995_v15, -inf  ;;  %v2778_v24 = vsel %vm2770_vm11, %v2766_v53, %v2774_v0  ;;  %vm2771_vm14 = vcmp.gt.f32.partialorder %v2767_v54, 0.0  ;;  %v3016_v25 = vsub.s32 4, %v6596_v12  ;;  %vm7760_vm11 = vmmov %vm7739_vm0 }
 0xc51   :  { %v2711_v9 = vsel %vm7758_vm5, %v6999_v11, -inf  ;;  %v2775_v34 = vmul.f32 0.2, %v2767_v54  ;;  %vm2772_vm1 = vcmp.gt.f32.partialorder %v2768_v56, 0.0  ;;  %vm2773_vm6 = vcmp.gt.f32.partialorder %v2769_v57, 0.0  ;;  %v2924_v4 = vpop.permute.xlu0 %2923 }
 0xc52   :  { %v7008_v40 = vsel %vm2694_vm2, %v2778_v24, -1e+30  ;;  %v2776_v41 = vmul.f32 0.2, %v2768_v56  ;;  %v2777_v44 = vmul.f32 0.2, %v2769_v57  ;;  %v2850_v47 = vadd.f32 %v2849_v50, %v6924_v27 }
 0xc53   :  { %v2779_v49 = vsel %vm2771_vm14, %v2767_v54, %v2775_v34  ;;  %v2851_v19 = vadd.f32 %v2849_v50, %v6914_v20  ;;  %v2852_v35 = vadd.f32 %v2849_v50, %v6940_v42  ;;  %v2853_v36 = vadd.f32 %v2849_v50, %v6934_v32  ;;  %vm7761_vm14 = vmmov %vm7739_vm0 }
 0xc54   :  { %2709 = vmax.xlane.f32.xlu0 %v2708_v16  ;;  %2712 = vmax.xlane.f32.xlu1 %v2711_v9  ;;  %v7016_v37 = vsel %vm2695_vm15, %v2779_v49, -1e+30  ;;  %v2780_v38 = vsel %vm2772_vm1, %v2768_v56, %v2776_v41  ;;  %v2781_v53 = vsel %vm2773_vm6, %v2769_v57, %v2777_v44  ;;  %v2933_v58 = vrot.slane %v6966_v18, %v2932_v51  ;;  %vm7762_vm1 = vmmov %vm7739_vm0 }
 0xc55   :  { %v2786_v27 = vsel %vm7759_vm7, %v7008_v40, -inf  ;;  %v7025_v20 = vsel %vm2696_vm3, %v2780_v38, -1e+30  ;;  %vm2854_vm8 = vcmp.gt.f32.partialorder %v2850_v47, 0.0  ;;  %vm2855_vm10 = vcmp.gt.f32.partialorder %v2851_v19, 0.0  ;;  %vm7763_vm7 = vmmov %vm7739_vm0 }
 0xc56   :  { %v7029_v32 = vsel %vm2697_vm4, %v2781_v53, -1e+30  ;;  %v2858_v42 = vmul.f32 0.2, %v2850_v47  ;;  %v2859_v50 = vmul.f32 0.2, %v2851_v19  ;;  %v2934_v61 = vadd.f32 %v2933_v58, %v6928_v29 }
 0xc57   :  { %v2789_v51 = vsel %vm7760_vm11, %v7016_v37, -inf  ;;  %vm2856_vm12 = vcmp.gt.f32.partialorder %v2852_v35, 0.0  ;;  %v2860_v54 = vmul.f32 0.2, %v2852_v35  ;;  %v2861_v56 = vmul.f32 0.2, %v2853_v36  ;;  %vm7764_vm11 = vmmov %vm7739_vm0 }
 0xc58   :  { %2787 = vmax.xlane.f32.xlu0 %v2786_v27  ;;  %2790 = vmax.xlane.f32.xlu1 %v2789_v51  ;;  %v2862_v57 = vsel %vm2854_vm8, %v2850_v47, %v2858_v42  ;;  %v2863_v60 = vsel %vm2855_vm10, %v2851_v19, %v2859_v50  ;;  %vm2857_vm13 = vcmp.gt.f32.partialorder %v2853_v36, 0.0  ;;  %v2792_v62 = vsel %vm7739_vm0, %v7025_v20, -inf }
 0xc59   :  { %v2795_v63 = vsel %vm7761_vm14, %v7029_v32, -inf  ;;  %v3017_v0 = vrot.slane %v6966_v18, %v3016_v25  ;;  %v7041_v5 = vsel %vm2694_vm2, %v2862_v57, -1e+30  ;;  %v7045_v10 = vsel %vm2695_vm15, %v2863_v60, -1e+30  ;;  %vm7766_vm14 = vmmov %vm7762_vm1 }
 0xc5a   :  { %v2864_v13 = vsel %vm2856_vm12, %v2852_v35, %v2860_v54  ;;  %v2865_v16 = vsel %vm2857_vm13, %v2853_v36, %v2861_v56  ;;  %v2942_v29 = vmul.f32 0.2, %v2934_v61  ;;  %v2935_v24 = vadd.f32 %v2933_v58, %v6916_v21  ;;  %vm7765_vm12 = vmmov %vm7739_vm0 }
 0xc5b   :  { %v2936_v9 = vadd.f32 %v2933_v58, %v2924_v4  ;;  %v2937_v34 = vadd.f32 %v2933_v58, %v6942_v43  ;;  %vm2938_vm5 = vcmp.gt.f32.partialorder %v2934_v61, 0.0  ;;  %v2870_v25 = vsel %vm7762_vm1, %v7041_v5, -inf  ;;  %v3008_v58 = vpop.permute.xlu0 %3007 }
 0xc5c   :  { %2793 = vmax.xlane.f32.xlu0 %v2792_v62  ;;  %2796 = vmax.xlane.f32.xlu1 %v2795_v63  ;;  %vm2939_vm6 = vcmp.gt.f32.partialorder %v2935_v24, 0.0  ;;  %v2943_v41 = vmul.f32 0.2, %v2935_v24  ;;  %v3100_v44 = vsub.s32 5, %v6596_v12  ;;  %v2873_v47 = vsel %vm7763_vm7, %v7045_v10, -inf }
 0xc5d   :  { %v7056_v49 = vsel %vm2696_vm3, %v2864_v13, -1e+30  ;;  %v7060_v21 = vsel %vm2697_vm4, %v2865_v16, -1e+30  ;;  %v3018_v43 = vadd.f32 %v3017_v0, %v6930_v30  ;;  %v2946_v19 = vsel %vm2938_vm5, %v2934_v61, %v2942_v29  ;;  %vm7767_vm5 = vmmov %vm7762_vm1 }
 0xc5e   :  { %v2944_v35 = vmul.f32 0.2, %v2936_v9  ;;  %v2945_v36 = vmul.f32 0.2, %v2937_v34  ;;  %v3019_v38 = vadd.f32 %v3017_v0, %v6922_v26  ;;  %v2947_v53 = vsel %vm2939_vm6, %v2935_v24, %v2943_v41  ;;  %vm7768_vm7 = vmmov %vm7767_vm5 }
 0xc5f   :  { %vm2940_vm8 = vcmp.gt.f32.partialorder %v2936_v9, 0.0  ;;  %vm2941_vm10 = vcmp.gt.f32.partialorder %v2937_v34, 0.0  ;;  %v2876_v27 = vsel %vm7764_vm11, %v7056_v49, -inf  ;;  %v3101_v42 = vrot.slane %v6966_v18, %v3100_v44  ;;  %v3092_v41 = vpop.permute.xlu0 %3091 }
 0xc60   :  { %2871 = vmax.xlane.f32.xlu0 %v2870_v25  ;;  %2874 = vmax.xlane.f32.xlu1 %v2873_v47  ;;  %v2879_v50 = vsel %vm7765_vm12, %v7060_v21, -inf  ;;  %v7071_v30 = vsel %vm2694_vm2, %v2946_v19, -1e+30  ;;  %v3026_v51 = vmul.f32 0.2, %v3018_v43  ;;  %v3020_v54 = vadd.f32 %v3017_v0, %v3008_v58  ;;  %vm7770_vm12 = vmmov %vm7767_vm5 }
 0xc61   :  { %v7075_v26 = vsel %vm2695_vm15, %v2947_v53, -1e+30  ;;  %v2948_v56 = vsel %vm2940_vm8, %v2936_v9, %v2944_v35  ;;  %v2949_v57 = vsel %vm2941_vm10, %v2937_v34, %v2945_v36  ;;  %v3027_v60 = vmul.f32 0.2, %v3019_v38  ;;  %vm7769_vm8 = vmmov %vm7767_vm5 }
 0xc62   :  { %vm3022_vm13 = vcmp.gt.f32.partialorder %v3018_v43, 0.0  ;;  %vm3023_vm0 = vcmp.gt.f32.partialorder %v3019_v38, 0.0  ;;  %v3021_v61 = vadd.f32 %v3017_v0, %v6977_v52  ;;  %v3184_v62 = vsub.s32 6, %v6596_v12 }
 0xc63   :  { %v2954_v63 = vsel %vm7766_vm14, %v7071_v30, -inf  ;;  %v2957_v4 = vsel %vm7767_vm5, %v7075_v26, -inf  ;;  %v7085_v13 = vsel %vm2696_vm3, %v2948_v56, -1e+30  ;;  %v7089_v16 = vsel %vm2697_vm4, %v2949_v57, -1e+30 }
 0xc64   :  { %2877 = vmax.xlane.f32.xlu0 %v2876_v27  ;;  %2880 = vmax.xlane.f32.xlu1 %v2879_v50  ;;  %v3030_v29 = vsel %vm3022_vm13, %v3018_v43, %v3026_v51  ;;  %v3031_v52 = vsel %vm3023_vm0, %v3019_v38, %v3027_v60  ;;  %v3028_v0 = vmul.f32 0.2, %v3020_v54  ;;  %v3102_v24 = vadd.f32 %v3101_v42, %v6932_v31  ;;  %vm7771_vm13 = vmmov %vm7767_vm5 }
 0xc65   :  { %vm3024_vm1 = vcmp.gt.f32.partialorder %v3020_v54, 0.0  ;;  %v3029_v9 = vmul.f32 0.2, %v3021_v61  ;;  %v3103_v34 = vadd.f32 %v3101_v42, %v6918_v22  ;;  %vm3025_vm6 = vcmp.gt.f32.partialorder %v3021_v61, 0.0 }
 0xc66   :  { %v3185_v25 = vrot.slane %v6966_v18, %v3184_v62  ;;  %v2960_v44 = vsel %vm7768_vm7, %v7085_v13, -inf  ;;  %v2963_v47 = vsel %vm7769_vm8, %v7089_v16, -inf  ;;  %v7100_v43 = vsel %vm2694_vm2, %v3030_v29, -1e+30 }
 0xc67   :  { %v7104_v31 = vsel %vm2695_vm15, %v3031_v52, -1e+30  ;;  %v3032_v22 = vsel %vm3024_vm1, %v3020_v54, %v3028_v0  ;;  %v3110_v19 = vmul.f32 0.2, %v3102_v24  ;;  %v3104_v35 = vadd.f32 %v3101_v42, %v3092_v41  ;;  %vm7772_vm1 = vmmov %vm7767_vm5 }
 0xc68   :  { %2955 = vmax.xlane.f32.xlu0 %v2954_v63  ;;  %2958 = vmax.xlane.f32.xlu1 %v2957_v4  ;;  %v3105_v36 = vadd.f32 %v3101_v42, %v6987_v6  ;;  %v3033_v38 = vsel %vm3025_vm6, %v3021_v61, %v3029_v9  ;;  %vm3106_vm10 = vcmp.gt.f32.partialorder %v3102_v24, 0.0  ;;  %v3111_v53 = vmul.f32 0.2, %v3103_v34  ;;  %v3176_v4 = vpop.permute.xlu0 %3175  ;;  %vm7773_vm8 = vmmov %vm7772_vm1 }
 0xc69   :  { %v3268_v58 = vsub.s32 7, %v6596_v12  ;;  %vm3107_vm11 = vcmp.gt.f32.partialorder %v3103_v34, 0.0  ;;  %v3038_v27 = vsel %vm7770_vm12, %v7100_v43, -inf  ;;  %v3041_v50 = vsel %vm7771_vm13, %v7104_v31, -inf  ;;  %vm7775_vm13 = vmmov %vm7772_vm1 }
 0xc6a   :  { %v7114_v51 = vsel %vm2696_vm3, %v3032_v22, -1e+30  ;;  %v3186_v54 = vadd.f32 %v3185_v25, %v6936_v33  ;;  %v7119_v6 = vsel %vm2697_vm4, %v3033_v38, -1e+30  ;;  %v3114_v12 = vsel %vm3106_vm10, %v3102_v24, %v3110_v19  ;;  %vm7774_vm10 = vmmov %vm7772_vm1 }
 0xc6b   :  { %v3112_v42 = vmul.f32 0.2, %v3104_v35  ;;  %v3113_v56 = vmul.f32 0.2, %v3105_v36  ;;  %v3115_v57 = vsel %vm3107_vm11, %v3103_v34, %v3111_v53  ;;  %vm3108_vm0 = vcmp.gt.f32.partialorder %v3104_v35, 0.0 }
 0xc6c   :  { %2961 = vmax.xlane.f32.xlu0 %v2960_v44  ;;  %2964 = vmax.xlane.f32.xlu1 %v2963_v47  ;;  %vm3109_vm14 = vcmp.gt.f32.partialorder %v3105_v36, 0.0  ;;  %v3187_v60 = vadd.f32 %v3185_v25, %v6926_v28  ;;  %v3269_v61 = vrot.slane %v6966_v18, %v3268_v58  ;;  %v3044_v62 = vsel %vm7767_vm5, %v7114_v51, -inf  ;;  %v3264_v53 = vpop.permute.xlu0 %3263 }
 0xc6d   :  { %v3047_v33 = vsel %vm7772_vm1, %v7119_v6, -inf  ;;  %v7129_v63 = vsel %vm2694_vm2, %v3114_v12, -1e+30  ;;  %v7133_v29 = vsel %vm2695_vm15, %v3115_v57, -1e+30  ;;  %v3116_v28 = vsel %vm3108_vm0, %v3104_v35, %v3112_v42  ;;  %vm7776_vm0 = vmmov %vm7772_vm1 }
 0xc6e   :  { %v3117_v52 = vsel %vm3109_vm14, %v3105_v36, %v3113_v56  ;;  %v3194_v18 = vmul.f32 0.2, %v3186_v54  ;;  %vm3190_vm6 = vcmp.gt.f32.partialorder %v3186_v54, 0.0  ;;  %v3195_v0 = vmul.f32 0.2, %v3187_v60  ;;  %vm7777_vm1 = vmmov %vm7776_vm0 }
 0xc6f   :  { %v3188_v24 = vadd.f32 %v3185_v25, %v3176_v4  ;;  %v3189_v9 = vadd.f32 %v3185_v25, %v7019_v59  ;;  %vm3191_vm7 = vcmp.gt.f32.partialorder %v3187_v60, 0.0  ;;  %v3122_v34 = vsel %vm7773_vm8, %v7129_v63, -inf }
 0xc70   :  { %3039 = vmax.xlane.f32.xlu0 %v3038_v27  ;;  %3042 = vmax.xlane.f32.xlu1 %v3041_v50  ;;  %v3125_v41 = vsel %vm7774_vm10, %v7133_v29, -inf  ;;  %v7142_v44 = vsel %vm2696_vm3, %v3116_v28, -1e+30  ;;  %v7146_v47 = vsel %vm2697_vm4, %v3117_v52, -1e+30  ;;  %v3198_v22 = vsel %vm3190_vm6, %v3186_v54, %v3194_v18  ;;  %v3260_v25 = vpop.permute.xlu1 %3259  ;;  %vm7778_vm6 = vmmov %vm7776_vm0 }
 0xc71   :  { %v3270_v59 = vadd.f32 %v3269_v61, %v6938_v39  ;;  %v3199_v19 = vsel %vm3191_vm7, %v3187_v60, %v3195_v0  ;;  %v3196_v35 = vmul.f32 0.2, %v3188_v24  ;;  %v3197_v36 = vmul.f32 0.2, %v3189_v9  ;;  %vm7779_vm10 = vmmov %vm7776_vm0 }
 0xc72   :  { %v3271_v38 = vadd.f32 %v3269_v61, %v6920_v23  ;;  %vm3192_vm11 = vcmp.gt.f32.partialorder %v3188_v24, 0.0  ;;  %vm3193_vm12 = vcmp.gt.f32.partialorder %v3189_v9, 0.0  ;;  %v3128_v58 = vsel %vm7775_vm13, %v7142_v44, -inf  ;;  %vm7782_vm13 = vmmov %vm7776_vm0 }
 0xc73   :  { %v3131_v27 = vsel %vm7776_vm0, %v7146_v47, -inf  ;;  %v3272_v50 = vadd.f32 %v3269_v61, %v3260_v25  ;;  %v7156_v39 = vsel %vm2694_vm2, %v3198_v22, -1e+30  ;;  %v7160_v54 = vsel %vm2695_vm15, %v3199_v19, -1e+30 }
 0xc74   :  { %3045 = vmax.xlane.f32.xlu0 %v3044_v62  ;;  %3048 = vmax.xlane.f32.xlu1 %v3047_v33  ;;  %v3273_v23 = vadd.f32 %v3269_v61, %v3264_v53  ;;  %v3200_v12 = vsel %vm3192_vm11, %v3188_v24, %v3196_v35  ;;  %v3201_v42 = vsel %vm3193_vm12, %v3189_v9, %v3197_v36  ;;  %v3278_v56 = vmul.f32 0.2, %v3270_v59  ;;  %vm7780_vm11 = vmmov %vm7776_vm0 }
 0xc75   :  { %v3279_v57 = vmul.f32 0.2, %v3271_v38  ;;  %vm3274_vm14 = vcmp.gt.f32.partialorder %v3270_v59, 0.0  ;;  %vm3275_vm5 = vcmp.gt.f32.partialorder %v3271_v38, 0.0  ;;  %v3206_v60 = vsel %vm7777_vm1, %v7156_v39, -inf  ;;  %vm7781_vm12 = vmmov %vm7776_vm0 }
 0xc76   :  { %v3209_v62 = vsel %vm7778_vm6, %v7160_v54, -inf  ;;  %v7168_v33 = vsel %vm2696_vm3, %v3200_v12, -1e+30  ;;  %v7172_v61 = vsel %vm2697_vm4, %v3201_v42, -1e+30  ;;  %v3282_v28 = vsel %vm3274_vm14, %v3270_v59, %v3278_v56  ;;  %vm7783_vm14 = vmmov %vm7776_vm0 }
 0xc77   :  { %v3280_v4 = vmul.f32 0.2, %v3272_v50  ;;  %v3283_v52 = vsel %vm3275_vm5, %v3271_v38, %v3279_v57  ;;  %v3281_v18 = vmul.f32 0.2, %v3273_v23  ;;  %vm3277_vm7 = vcmp.gt.f32.partialorder %v3273_v23, 0.0  ;;  %vm7784_vm5 = vmmov %vm7776_vm0 }
 0xc78   :  { %3123 = vmax.xlane.f32.xlu0 %v3122_v34  ;;  %3126 = vmax.xlane.f32.xlu1 %v3125_v41  ;;  %vm3276_vm8 = vcmp.gt.f32.partialorder %v3272_v50, 0.0  ;;  %v3212_v0 = vsel %vm7779_vm10, %v7168_v33, -inf  ;;  %v3215_v24 = vsel %vm7780_vm11, %v7172_v61, -inf  ;;  %v7180_v9 = vsel %vm2694_vm2, %v3282_v28, -1e+30  ;;  %vm7785_vm1 = vmmov %vm7776_vm0 }
 0xc79   :  { %v7184_v34 = vsel %vm2695_vm15, %v3283_v52, -1e+30  ;;  %v3285_v41 = vsel %vm3277_vm7, %v3273_v23, %v3281_v18  ;;  %v3284_v22 = vsel %vm3276_vm8, %v3272_v50, %v3280_v4  ;;  %v3290_v59 = vsel %vm7781_vm12, %v7180_v9, -inf  ;;  %vm7786_vm6 = vmmov %vm7776_vm0 }
 0xc7a   :  { %v3293_v25 = vsel %vm7782_vm13, %v7184_v34, -inf  ;;  %v7192_v19 = vsel %vm2697_vm4, %v3285_v41, -1e+30  ;;  %v7196_v35 = vsel %vm2696_vm3, %v3284_v22, -1e+30  ;;  %vm7787_vm7 = vmmov %vm7776_vm0 }
 0xc7b   :  { %v3299_v36 = vsel %vm7776_vm0, %v7192_v19, -inf  ;;  %v3296_v38 = vsel %vm7783_vm14, %v7196_v35, -inf  ;;  %vm7788_vm8 = vmmov %vm7776_vm0 }
 0xc7c   :  { %3129 = vmax.xlane.f32.xlu0 %v3128_v58  ;;  %3132 = vmax.xlane.f32.xlu1 %v3131_v27  ;;  %vm7789_vm10 = vmmov %vm7776_vm0 }
 0xc7d   :  { %vm7790_vm11 = vmmov %vm7776_vm0 }
 0xc7e   :  { %vm7791_vm12 = vmmov %vm7776_vm0 }
 0xc7f   :  { %vm7792_vm13 = vmmov %vm7776_vm0 }
 0xc80   :  { %3207 = vmax.xlane.f32.xlu0 %v3206_v60  ;;  %3210 = vmax.xlane.f32.xlu1 %v3209_v62  ;;  %vm7793_vm14 = vmmov %vm7776_vm0 }
 0xc84   :  { %3213 = vmax.xlane.f32.xlu0 %v3212_v0  ;;  %3216 = vmax.xlane.f32.xlu1 %v3215_v24 }
 0xc88   :  { %3291 = vmax.xlane.f32.xlu0 %v3290_v59  ;;  %3294 = vmax.xlane.f32.xlu1 %v3293_v25 }
 0xc8c   :  { %3300 = vmax.xlane.f32.xlu1 %v3299_v36  ;;  %3297 = vmax.xlane.f32.xlu0 %v3296_v38 }
 0xcdd   :  { %v2707_v53 = vpop.xlane.xlu0 %2706  ;;  %v2704_v58 = vpop.xlane.xlu1 %2703 }
 0xcde   :  { %v2715_v27 = vsub.f32 %v6981_v1, %v2707_v53  ;;  %v2714_v50 = vsub.f32 %v6985_v2, %v2704_v58 }
 0xce0   :  { %v2720_v23 = vmul.f32 1.442695, %v2715_v27  ;;  %v2718_v12 = vmul.f32 1.442695, %v2714_v50 }
 0xce1   :  { %v2710_v42 = vpop.xlane.xlu0 %2709  ;;  %v2713_v56 = vpop.xlane.xlu1 %2712 }
 0xce2   :  { %6124 = vpow2.f32 %v2720_v23  ;;  %v2716_v57 = vsub.f32 %v6995_v15, %v2710_v42  ;;  %v2717_v60 = vsub.f32 %v6999_v11, %v2713_v56 }
 0xce3   :  { %6126 = vpow2.f32 %v2718_v12 }
 0xce4   :  { %v2722_v62 = vmul.f32 1.442695, %v2716_v57  ;;  %v2724_v4 = vmul.f32 1.442695, %v2717_v60 }
 0xce5   :  { %v2788_v28 = vpop.xlane.xlu0 %2787  ;;  %v2791_v52 = vpop.xlane.xlu1 %2790 }
 0xce6   :  { %6128 = vpow2.f32 %v2722_v62  ;;  %v2798_v18 = vsub.f32 %v7008_v40, %v2788_v28  ;;  %v2799_v1 = vsub.f32 %v7016_v37, %v2791_v52 }
 0xce7   :  { %6130 = vpow2.f32 %v2724_v4 }
 0xce8   :  { %v2802_v2 = vmul.f32 1.442695, %v2798_v18  ;;  %v2804_v0 = vmul.f32 1.442695, %v2799_v1 }
 0xce9   :  { %v2794_v24 = vpop.xlane.xlu0 %2793  ;;  %v2797_v41 = vpop.xlane.xlu1 %2796 }
 0xcea   :  { %6132 = vpow2.f32 %v2802_v2  ;;  %v2800_v15 = vsub.f32 %v7025_v20, %v2794_v24  ;;  %v2801_v11 = vsub.f32 %v7029_v32, %v2797_v41 }
 0xceb   :  { %6134 = vpow2.f32 %v2804_v0 }
 0xcec   :  { %v7210_v22 = vpop.eup %6124  ;;  %v2806_v59 = vmul.f32 1.442695, %v2800_v15  ;;  %v2808_v25 = vmul.f32 1.442695, %v2801_v11 }
 0xced   :  { %v7212_v36 = vpop.eup %6126  ;;  %v2872_v40 = vpop.xlane.xlu0 %2871  ;;  %v2729_v37 = vsel %vm7784_vm5, %v7210_v22, 0.0  ;;  %vm7794_vm5 = vmmov %vm7776_vm0 }
 0xcee   :  { %v2875_v38 = vpop.xlane.xlu1 %2874  ;;  %6136 = vpow2.f32 %v2806_v59  ;;  %v2882_v53 = vsub.f32 %v7041_v5, %v2872_v40  ;;  %2730 = vadd.xlane.f32.xlu1 %v2729_v37  ;;  %v2726_v20 = vsel %vm7785_vm1, %v7212_v36, 0.0  ;;  %vm7795_vm1 = vmmov %vm7776_vm0 }
 0xcef   :  { %v2883_v58 = vsub.f32 %v7045_v10, %v2875_v38  ;;  %6138 = vpow2.f32 %v2808_v25  ;;  %2727 = vadd.xlane.f32.xlu0 %v2726_v20 }
 0xcf0   :  { %v7220_v32 = vpop.eup %6128  ;;  %v2886_v27 = vmul.f32 1.442695, %v2882_v53 }
 0xcf1   :  { %v2888_v50 = vmul.f32 1.442695, %v2883_v58  ;;  %v7222_v23 = vpop.eup %6130  ;;  %v2878_v12 = vpop.xlane.xlu0 %2877  ;;  %v2732_v56 = vsel %vm7786_vm6, %v7220_v32, 0.0  ;;  %vm7796_vm6 = vmmov %vm7776_vm0 }
 0xcf2   :  { %v2881_v42 = vpop.xlane.xlu1 %2880  ;;  %6140 = vpow2.f32 %v2886_v27  ;;  %v2884_v5 = vsub.f32 %v7056_v49, %v2878_v12  ;;  %v2735_v57 = vsel %vm7787_vm7, %v7222_v23, 0.0  ;;  %vm7797_vm7 = vmmov %vm7776_vm0 }
 0xcf3   :  { %v2885_v10 = vsub.f32 %v7060_v21, %v2881_v42  ;;  %6142 = vpow2.f32 %v2888_v50  ;;  %2733 = vadd.xlane.f32.xlu0 %v2732_v56  ;;  %2736 = vadd.xlane.f32.xlu1 %v2735_v57 }
 0xcf4   :  { %v7230_v60 = vpop.eup %6132  ;;  %v2890_v62 = vmul.f32 1.442695, %v2884_v5 }
 0xcf5   :  { %v2892_v4 = vmul.f32 1.442695, %v2885_v10  ;;  %v7232_v28 = vpop.eup %6134  ;;  %v2956_v52 = vpop.xlane.xlu0 %2955  ;;  %v2810_v1 = vsel %vm7788_vm8, %v7230_v60, 0.0  ;;  %vm7798_vm8 = vmmov %vm7776_vm0 }
 0xcf6   :  { %v2959_v18 = vpop.xlane.xlu1 %2958  ;;  %6144 = vpow2.f32 %v2890_v62  ;;  %v2966_v49 = vsub.f32 %v7071_v30, %v2956_v52  ;;  %v2813_v2 = vsel %vm7789_vm10, %v7232_v28, 0.0  ;;  %vm7799_vm10 = vmmov %vm7776_vm0 }
 0xcf7   :  { %v2967_v21 = vsub.f32 %v7075_v26, %v2959_v18  ;;  %6146 = vpow2.f32 %v2892_v4  ;;  %2811 = vadd.xlane.f32.xlu0 %v2810_v1  ;;  %2814 = vadd.xlane.f32.xlu1 %v2813_v2 }
 0xcf8   :  { %v7240_v0 = vpop.eup %6136  ;;  %v2970_v24 = vmul.f32 1.442695, %v2966_v49 }
 0xcf9   :  { %v2972_v41 = vmul.f32 1.442695, %v2967_v21  ;;  %v7242_v15 = vpop.eup %6138  ;;  %v2962_v11 = vpop.xlane.xlu0 %2961  ;;  %v2816_v25 = vsel %vm7790_vm11, %v7240_v0, 0.0  ;;  %vm7800_vm11 = vmmov %vm7776_vm0 }
 0xcfa   :  { %v2965_v59 = vpop.xlane.xlu1 %2964  ;;  %6148 = vpow2.f32 %v2970_v24  ;;  %v2968_v30 = vsub.f32 %v7085_v13, %v2962_v11  ;;  %v2819_v40 = vsel %vm7791_vm12, %v7242_v15, 0.0  ;;  %vm7801_vm12 = vmmov %vm7776_vm0 }
 0xcfb   :  { %v2969_v26 = vsub.f32 %v7089_v16, %v2965_v59  ;;  %6150 = vpow2.f32 %v2972_v41  ;;  %2817 = vadd.xlane.f32.xlu0 %v2816_v25  ;;  %2820 = vadd.xlane.f32.xlu1 %v2819_v40 }
 0xcfc   :  { %v7250_v38 = vpop.eup %6140  ;;  %v2974_v37 = vmul.f32 1.442695, %v2968_v30 }
 0xcfd   :  { %v2976_v53 = vmul.f32 1.442695, %v2969_v26  ;;  %v7252_v58 = vpop.eup %6142  ;;  %v3040_v20 = vpop.xlane.xlu0 %3039  ;;  %v2894_v50 = vsel %vm7792_vm13, %v7250_v38, 0.0  ;;  %vm7802_vm13 = vmmov %vm7776_vm0 }
 0xcfe   :  { %v3043_v27 = vpop.xlane.xlu1 %3042  ;;  %6152 = vpow2.f32 %v2974_v37  ;;  %v3050_v13 = vsub.f32 %v7100_v43, %v3040_v20  ;;  %v2897_v12 = vsel %vm7776_vm0, %v7252_v58, 0.0 }
 0xcff   :  { %v3051_v16 = vsub.f32 %v7104_v31, %v3043_v27  ;;  %6154 = vpow2.f32 %v2976_v53  ;;  %2895 = vadd.xlane.f32.xlu0 %v2894_v50  ;;  %2898 = vadd.xlane.f32.xlu1 %v2897_v12 }
 0xd00   :  { %v7260_v42 = vpop.eup %6144  ;;  %v3054_v56 = vmul.f32 1.442695, %v3050_v13 }
 0xd01   :  { %v3056_v5 = vmul.f32 1.442695, %v3051_v16  ;;  %v7262_v10 = vpop.eup %6146  ;;  %v3046_v57 = vpop.xlane.xlu0 %3045  ;;  %v2900_v4 = vsel %vm7793_vm14, %v7260_v42, 0.0  ;;  %vm7803_vm14 = vmmov %vm7776_vm0 }
 0xd02   :  { %v3049_v62 = vpop.xlane.xlu1 %3048  ;;  %6156 = vpow2.f32 %v3054_v56  ;;  %v3052_v43 = vsub.f32 %v7114_v51, %v3046_v57  ;;  %v2903_v52 = vsel %vm7794_vm5, %v7262_v10, 0.0  ;;  %vm7804_vm5 = vmmov %vm7776_vm0 }
 0xd03   :  { %v3053_v31 = vsub.f32 %v7119_v6, %v3049_v62  ;;  %6158 = vpow2.f32 %v3056_v5  ;;  %2901 = vadd.xlane.f32.xlu0 %v2900_v4  ;;  %2904 = vadd.xlane.f32.xlu1 %v2903_v52 }
 0xd04   :  { %v7270_v18 = vpop.eup %6148  ;;  %v3058_v1 = vmul.f32 1.442695, %v3052_v43 }
 0xd05   :  { %v3060_v49 = vmul.f32 1.442695, %v3053_v31  ;;  %v7272_v21 = vpop.eup %6150  ;;  %v3124_v2 = vpop.xlane.xlu0 %3123  ;;  %v2978_v41 = vsel %vm7795_vm1, %v7270_v18, 0.0  ;;  %vm7805_vm1 = vmmov %vm7776_vm0 }
 0xd06   :  { %v3127_v24 = vpop.xlane.xlu1 %3126  ;;  %6160 = vpow2.f32 %v3058_v1  ;;  %v3134_v51 = vsub.f32 %v7129_v63, %v3124_v2  ;;  %v2981_v11 = vsel %vm7796_vm6, %v7272_v21, 0.0  ;;  %vm7806_vm6 = vmmov %vm7776_vm0 }
 0xd07   :  { %v3135_v6 = vsub.f32 %v7133_v29, %v3127_v24  ;;  %6162 = vpow2.f32 %v3060_v49  ;;  %2979 = vadd.xlane.f32.xlu0 %v2978_v41  ;;  %2982 = vadd.xlane.f32.xlu1 %v2981_v11 }
 0xd08   :  { %v7280_v59 = vpop.eup %6152  ;;  %v3138_v25 = vmul.f32 1.442695, %v3134_v51 }
 0xd09   :  { %v3140_v30 = vmul.f32 1.442695, %v3135_v6  ;;  %v7282_v26 = vpop.eup %6154  ;;  %v3130_v40 = vpop.xlane.xlu0 %3129  ;;  %v2984_v53 = vsel %vm7797_vm7, %v7280_v59, 0.0  ;;  %vm7807_vm7 = vmmov %vm7776_vm0 }
 0xd0a   :  { %v3133_v37 = vpop.xlane.xlu1 %3132  ;;  %6164 = vpow2.f32 %v3138_v25  ;;  %v3136_v63 = vsub.f32 %v7142_v44, %v3130_v40  ;;  %v2987_v20 = vsel %vm7798_vm8, %v7282_v26, 0.0  ;;  %vm7808_vm8 = vmmov %vm7776_vm0 }
 0xd0b   :  { %v3137_v29 = vsub.f32 %v7146_v47, %v3133_v37  ;;  %6166 = vpow2.f32 %v3140_v30  ;;  %2985 = vadd.xlane.f32.xlu0 %v2984_v53  ;;  %2988 = vadd.xlane.f32.xlu1 %v2987_v20 }
 0xd0c   :  { %v7290_v27 = vpop.eup %6156  ;;  %v3142_v50 = vmul.f32 1.442695, %v3136_v63 }
 0xd0d   :  { %v3144_v13 = vmul.f32 1.442695, %v3137_v29  ;;  %v7292_v16 = vpop.eup %6158  ;;  %v3208_v12 = vpop.xlane.xlu0 %3207  ;;  %v3062_v5 = vsel %vm7799_vm10, %v7290_v27, 0.0  ;;  %vm7809_vm10 = vmmov %vm7776_vm0 }
 0xd0e   :  { %v3211_v56 = vpop.xlane.xlu1 %3210  ;;  %6168 = vpow2.f32 %v3142_v50  ;;  %v3218_v44 = vsub.f32 %v7156_v39, %v3208_v12  ;;  %v3065_v57 = vsel %vm7800_vm11, %v7292_v16, 0.0  ;;  %vm7810_vm11 = vmmov %vm7776_vm0 }
 0xd0f   :  { %v3219_v47 = vsub.f32 %v7160_v54, %v3211_v56  ;;  %6170 = vpow2.f32 %v3144_v13  ;;  %3063 = vadd.xlane.f32.xlu0 %v3062_v5  ;;  %3066 = vadd.xlane.f32.xlu1 %v3065_v57 }
 0xd10   :  { %v7300_v62 = vpop.eup %6160  ;;  %v3222_v4 = vmul.f32 1.442695, %v3218_v44 }
 0xd11   :  { %v3224_v43 = vmul.f32 1.442695, %v3219_v47  ;;  %v7302_v31 = vpop.eup %6162  ;;  %v3214_v52 = vpop.xlane.xlu0 %3213  ;;  %v3068_v49 = vsel %vm7801_vm12, %v7300_v62, 0.0  ;;  %vm7811_vm12 = vmmov %vm7776_vm0 }
 0xd12   :  { %v3217_v1 = vpop.xlane.xlu1 %3216  ;;  %6172 = vpow2.f32 %v3222_v4  ;;  %v3220_v39 = vsub.f32 %v7168_v33, %v3214_v52  ;;  %v3071_v2 = vsel %vm7802_vm13, %v7302_v31, 0.0  ;;  %vm7812_vm13 = vmmov %vm7776_vm0 }
 0xd13   :  { %v3221_v54 = vsub.f32 %v7172_v61, %v3217_v1  ;;  %6174 = vpow2.f32 %v3224_v43  ;;  %3069 = vadd.xlane.f32.xlu0 %v3068_v49  ;;  %3072 = vadd.xlane.f32.xlu1 %v3071_v2 }
 0xd14   :  { %v7310_v24 = vpop.eup %6164  ;;  %v3226_v41 = vmul.f32 1.442695, %v3220_v39 }
 0xd15   :  { %v3228_v51 = vmul.f32 1.442695, %v3221_v54  ;;  %v7312_v6 = vpop.eup %6166  ;;  %v3292_v11 = vpop.xlane.xlu0 %3291  ;;  %v3146_v30 = vsel %vm7776_vm0, %v7310_v24, 0.0 }
 0xd16   :  { %v3295_v25 = vpop.xlane.xlu1 %3294  ;;  %6176 = vpow2.f32 %v3226_v41  ;;  %v3302_v33 = vsub.f32 %v7180_v9, %v3292_v11  ;;  %v3149_v40 = vsel %vm7803_vm14, %v7312_v6, 0.0  ;;  %vm7813_vm14 = vmmov %vm7776_vm0 }
 0xd17   :  { %v3303_v61 = vsub.f32 %v7184_v34, %v3295_v25  ;;  %6178 = vpow2.f32 %v3228_v51  ;;  %3147 = vadd.xlane.f32.xlu0 %v3146_v30  ;;  %3150 = vadd.xlane.f32.xlu1 %v3149_v40 }
 0xd18   :  { %v7320_v37 = vpop.eup %6168  ;;  %v3306_v53 = vmul.f32 1.442695, %v3302_v33 }
 0xd19   :  { %v3308_v63 = vmul.f32 1.442695, %v3303_v61  ;;  %v7322_v29 = vpop.eup %6170  ;;  %v3298_v20 = vpop.xlane.xlu0 %3297  ;;  %v3152_v13 = vsel %vm7804_vm5, %v7320_v37, 0.0  ;;  %vm7814_vm5 = vmmov %vm7776_vm0 }
 0xd1a   :  { %v3301_v50 = vpop.xlane.xlu1 %3300  ;;  %6180 = vpow2.f32 %v3306_v53  ;;  %v3304_v9 = vsub.f32 %v7196_v35, %v3298_v20  ;;  %v3155_v12 = vsel %vm7805_vm1, %v7322_v29, 0.0  ;;  %vm7815_vm1 = vmmov %vm7776_vm0 }
 0xd1b   :  { %v3305_v34 = vsub.f32 %v7192_v19, %v3301_v50  ;;  %6182 = vpow2.f32 %v3308_v63  ;;  %3153 = vadd.xlane.f32.xlu0 %v3152_v13  ;;  %3156 = vadd.xlane.f32.xlu1 %v3155_v12 }
 0xd1c   :  { %v7330_v56 = vpop.eup %6172  ;;  %v3310_v5 = vmul.f32 1.442695, %v3304_v9 }
 0xd1d   :  { %v3312_v44 = vmul.f32 1.442695, %v3305_v34  ;;  %v7332_v47 = vpop.eup %6174  ;;  %v3230_v57 = vsel %vm7806_vm6, %v7330_v56, 0.0  ;;  %vm7816_vm6 = vmmov %vm7776_vm0 }
 0xd1e   :  { %6184 = vpow2.f32 %v3310_v5  ;;  %v3233_v35 = vsel %vm7807_vm7, %v7332_v47, 0.0  ;;  %vm7817_vm7 = vmmov %vm7776_vm0 }
 0xd1f   :  { %6186 = vpow2.f32 %v3312_v44  ;;  %3231 = vadd.xlane.f32.xlu0 %v3230_v57  ;;  %3234 = vadd.xlane.f32.xlu1 %v3233_v35 }
 0xd20   :  { %v7338_v19 = vpop.eup %6176 }
 0xd21   :  { %v7340_v4 = vpop.eup %6178  ;;  %v3236_v43 = vsel %vm7808_vm8, %v7338_v19, 0.0  ;;  %vm7818_vm8 = vmmov %vm7776_vm0 }
 0xd22   :  { %v3239_v52 = vsel %vm7809_vm10, %v7340_v4, 0.0  ;;  %vm7819_vm10 = vmmov %vm7776_vm0 }
 0xd23   :  { %3237 = vadd.xlane.f32.xlu0 %v3236_v43  ;;  %3240 = vadd.xlane.f32.xlu1 %v3239_v52 }
 0xd24   :  { %v7346_v1 = vpop.eup %6180 }
 0xd25   :  { %v7348_v49 = vpop.eup %6182  ;;  %v3314_v39 = vsel %vm7810_vm11, %v7346_v1, 0.0  ;;  %vm7820_vm11 = vmmov %vm7776_vm0 }
 0xd26   :  { %v3317_v54 = vsel %vm7811_vm12, %v7348_v49, 0.0  ;;  %vm7821_vm12 = vmmov %vm7776_vm0 }
 0xd27   :  { %3315 = vadd.xlane.f32.xlu0 %v3314_v39  ;;  %3318 = vadd.xlane.f32.xlu1 %v3317_v54 }
 0xd28   :  { %v7354_v2 = vpop.eup %6184 }
 0xd29   :  { %v7356_v41 = vpop.eup %6186  ;;  %v3320_v51 = vsel %vm7812_vm13, %v7354_v2, 0.0  ;;  %vm7822_vm13 = vmmov %vm7776_vm0 }
 0xd2a   :  { %v3323_v11 = vsel %vm7776_vm0, %v7356_v41, 0.0 }
 0xd2b   :  { %3321 = vadd.xlane.f32.xlu0 %v3320_v51  ;;  %3324 = vadd.xlane.f32.xlu1 %v3323_v11 }
 0xd7b   :  { %v2731_v25 = vpop.xlane.xlu1 %2730 }
 0xd7c   :  { %v2728_v30 = vpop.xlane.xlu0 %2727  ;;  %6188 = vrcp.f32 %v2731_v25 }
 0xd7d   :  { %6190 = vrcp.f32 %v2728_v30 }
 0xd80   :  { %v2734_v33 = vpop.xlane.xlu0 %2733  ;;  %v2737_v61 = vpop.xlane.xlu1 %2736 }
 0xd81   :  { %6192 = vrcp.f32 %v2734_v33 }
 0xd82   :  { %6194 = vrcp.f32 %v2737_v61 }
 0xd84   :  { %v2812_v40 = vpop.xlane.xlu0 %2811  ;;  %v2815_v53 = vpop.xlane.xlu1 %2814 }
 0xd85   :  { %6196 = vrcp.f32 %v2812_v40 }
 0xd86   :  { %v6189_v63 = vpop.eup %6188  ;;  %6198 = vrcp.f32 %v2815_v53 }
 0xd87   :  { %v6191_v20 = vpop.eup %6190  ;;  %v2743_v50 = vmul.f32 %v6189_v63, %v7210_v22 }
 0xd88   :  { %v2818_v13 = vpop.xlane.xlu0 %2817  ;;  %v2821_v9 = vpop.xlane.xlu1 %2820  ;;  %v2742_v34 = vmul.f32 %v6191_v20, %v7212_v36 }
 0xd89   :  { %6200 = vrcp.f32 %v2818_v13 }
 0xd8a   :  { %6202 = vrcp.f32 %v2821_v9  ;;  %5574 = vmatprep.mubr.msk.f32.mxu1 %vm7813_vm14, %v2742_v34  ;;  %vm7823_vm14 = vmmov %vm7776_vm0 }
 0xd8b   :  { %v6193_v12 = vpop.eup %6192  ;;  %5575 = vmatmul.mubr.msk.f32.vlgmr.msra.gmra.mrb[26].mxu1 %vm7814_vm5, %v2743_v50  ;;  %vm7824_vm5 = vmmov %vm7776_vm0 }
 0xd8c   :  { %v6195_v5 = vpop.eup %6194  ;;  %v2896_v44 = vpop.xlane.xlu0 %2895  ;;  %v2744_v35 = vmul.f32 %v6193_v12, %v7220_v32 }
 0xd8d   :  { %v2899_v57 = vpop.xlane.xlu1 %2898  ;;  %6204 = vrcp.f32 %v2896_v44  ;;  %v2745_v43 = vmul.f32 %v6195_v5, %v7222_v23 }
 0xd8e   :  { %6206 = vrcp.f32 %v2899_v57  ;;  %5577 = vmatprep.mubr.msk.f32.mxu1 %vm7815_vm1, %v2744_v35  ;;  %vm7825_vm1 = vmmov %vm7776_vm0 }
 0xd8f   :  { %v6197_v22 = vpop.eup %6196  ;;  %5578 = vmatmul.mubr.msk.f32.gmra.mrb[28].mxu1 %vm7816_vm6, %v2745_v43  ;;  %vm7826_vm6 = vmmov %vm7776_vm0 }
 0xd90   :  { %v6199_v36 = vpop.eup %6198  ;;  %v2902_v52 = vpop.xlane.xlu0 %2901  ;;  %v2826_v54 = vmul.f32 %v6197_v22, %v7230_v60 }
 0xd91   :  { %v2905_v39 = vpop.xlane.xlu1 %2904  ;;  %6208 = vrcp.f32 %v2902_v52  ;;  %v2827_v51 = vmul.f32 %v6199_v36, %v7232_v28 }
 0xd92   :  { %6210 = vrcp.f32 %v2905_v39  ;;  %5580 = vmatprep.mubr.msk.f32.mxu1 %vm7817_vm7, %v2826_v54  ;;  %vm7827_vm7 = vmmov %vm7776_vm0 }
 0xd93   :  { %v6201_v32 = vpop.eup %6200  ;;  %5581 = vmatmul.mubr.msk.f32.gmra.mrb[30].mxu1 %vm7818_vm8, %v2827_v51  ;;  %vm7828_vm8 = vmmov %vm7776_vm0 }
 0xd94   :  { %v6203_v23 = vpop.eup %6202  ;;  %v2980_v11 = vpop.xlane.xlu0 %2979  ;;  %v2828_v30 = vmul.f32 %v6201_v32, %v7240_v0 }
 0xd95   :  { %v2983_v25 = vpop.xlane.xlu1 %2982  ;;  %6212 = vrcp.f32 %v2980_v11  ;;  %v2829_v33 = vmul.f32 %v6203_v23, %v7242_v15 }
 0xd96   :  { %6214 = vrcp.f32 %v2983_v25  ;;  %5583 = vmatprep.mubr.msk.f32.mxu1 %vm7819_vm10, %v2828_v30  ;;  %vm7829_vm10 = vmmov %vm7776_vm0 }
 0xd97   :  { %v6205_v60 = vpop.eup %6204  ;;  %5584 = vmatmul.mubr.msk.f32.gmra.mrb[32].mxu1 %vm7820_vm11, %v2829_v33  ;;  %vm7830_vm11 = vmmov %vm7776_vm0 }
 0xd98   :  { %v6207_v28 = vpop.eup %6206  ;;  %v2986_v61 = vpop.xlane.xlu0 %2985  ;;  %v2910_v53 = vmul.f32 %v6205_v60, %v7250_v38 }
 0xd99   :  { %v2989_v40 = vpop.xlane.xlu1 %2988  ;;  %6216 = vrcp.f32 %v2986_v61  ;;  %v2911_v63 = vmul.f32 %v6207_v28, %v7252_v58 }
 0xd9a   :  { %6218 = vrcp.f32 %v2989_v40  ;;  %5586 = vmatprep.mubr.msk.f32.mxu1 %vm7821_vm12, %v2910_v53  ;;  %vm7831_vm12 = vmmov %vm7776_vm0 }
 0xd9b   :  { %v6209_v0 = vpop.eup %6208  ;;  %5587 = vmatmul.mubr.msk.f32.gmra.mrb[34].mxu1 %vm7822_vm13, %v2911_v63  ;;  %vm7832_vm13 = vmmov %vm7776_vm0 }
 0xd9c   :  { %v6211_v15 = vpop.eup %6210  ;;  %v3064_v20 = vpop.xlane.xlu0 %3063  ;;  %v2912_v13 = vmul.f32 %v6209_v0, %v7260_v42 }
 0xd9d   :  { %v3067_v50 = vpop.xlane.xlu1 %3066  ;;  %6220 = vrcp.f32 %v3064_v20  ;;  %v2913_v9 = vmul.f32 %v6211_v15, %v7262_v10 }
 0xd9e   :  { %6222 = vrcp.f32 %v3067_v50  ;;  %5589 = vmatprep.mubr.msk.f32.mxu1 %vm7776_vm0, %v2912_v13 }
 0xd9f   :  { %v6213_v38 = vpop.eup %6212  ;;  %5590 = vmatmul.mubr.msk.f32.gmra.mrb[36].mxu1 %vm7823_vm14, %v2913_v9  ;;  %vm7833_vm14 = vmmov %vm7776_vm0 }
 0xda0   :  { %v6215_v58 = vpop.eup %6214  ;;  %v3070_v34 = vpop.xlane.xlu0 %3069  ;;  %v2994_v5 = vmul.f32 %v6213_v38, %v7270_v18 }
 0xda1   :  { %v3073_v12 = vpop.xlane.xlu1 %3072  ;;  %6224 = vrcp.f32 %v3070_v34  ;;  %v2995_v44 = vmul.f32 %v6215_v58, %v7272_v21 }
 0xda2   :  { %6226 = vrcp.f32 %v3073_v12  ;;  %5592 = vmatprep.mubr.msk.f32.mxu1 %vm7824_vm5, %v2994_v5  ;;  %vm7834_vm5 = vmmov %vm7776_vm0  ;;  %v3779_v12 = vld [vmem:[%s7725_s2 + $0x298] sm:$0xff] }
 0xda3   :  { %v6217_v42 = vpop.eup %6216  ;;  %5593 = vmatmul.mubr.msk.f32.gmra.mrb[38].mxu1 %vm7825_vm1, %v2995_v44  ;;  %vm7835_vm1 = vmmov %vm7776_vm0  ;;  %v3877_v44 = vld [vmem:[%s7725_s2 + $0x2a0] sm:$0xff] }
 0xda4   :  { %v6219_v10 = vpop.eup %6218  ;;  %v3148_v57 = vpop.xlane.xlu0 %3147  ;;  %v2996_v43 = vmul.f32 %v6217_v42, %v7280_v59  ;;  %v3878_v42 = vld [vmem:[%s7725_s2 + $0x2a8] sm:$0xff] }
 0xda5   :  { %v3151_v35 = vpop.xlane.xlu1 %3150  ;;  %6228 = vrcp.f32 %v3148_v57  ;;  %v2997_v22 = vmul.f32 %v6219_v10, %v7282_v26  ;;  %v7446_v10 = vpack.c.bf16 %v3878_v42, %v3877_v44 }
 0xda6   :  { %6230 = vrcp.f32 %v3151_v35  ;;  %5595 = vmatprep.mubr.msk.f32.mxu1 %vm7826_vm6, %v2996_v43  ;;  %vm7836_vm6 = vmmov %vm7776_vm0  ;;  %v3657_v43 = vld [vmem:[%s7724_s1 + $0x88] sm:$0xff] }
 0xda7   :  { %v6221_v18 = vpop.eup %6220  ;;  %5596 = vmatmul.mubr.msk.f32.gmra.mrb[40].mxu1 %vm7827_vm7, %v2997_v22  ;;  %vm7837_vm7 = vmmov %vm7776_vm0  ;;  %v3656_v22 = vld [vmem:[%s7724_s1 + $0x80] sm:$0xff] }
 0xda8   :  { %v6223_v21 = vpop.eup %6222  ;;  %v3154_v36 = vpop.xlane.xlu0 %3153  ;;  %v3078_v39 = vmul.f32 %v6221_v18, %v7290_v27 }
 0xda9   :  { %v3157_v52 = vpop.xlane.xlu1 %3156  ;;  %6232 = vrcp.f32 %v3154_v36  ;;  %v3079_v54 = vmul.f32 %v6223_v21, %v7292_v16 }
 0xdaa   :  { %6234 = vrcp.f32 %v3157_v52  ;;  %5598 = vmatprep.mubr.msk.f32.mxu1 %vm7828_vm8, %v3078_v39  ;;  %vm7838_vm8 = vmmov %vm7776_vm0  ;;  %v4917_v52 = vld [vmem:[%s7725_s2 + $0x367] ss:$0 sm:$0xff] }
 0xdab   :  { %v6225_v59 = vpop.eup %6224  ;;  %5599 = vmatmul.mubr.msk.f32.gmra.mrb[42].mxu1 %vm7829_vm10, %v3079_v54  ;;  %vm7839_vm10 = vmmov %vm7776_vm0  ;;  %v3659_v54 = vld [vmem:[%s7724_s1 + $0x98] sm:$0xff] }
 0xdac   :  { %v6227_v26 = vpop.eup %6226  ;;  %v3232_v51 = vpop.xlane.xlu0 %3231  ;;  %v3080_v23 = vmul.f32 %v6225_v59, %v7300_v62  ;;  %v3673_v59 = vld [vmem:[%s7724_s1 + $0xa8] sm:$0xff] }
 0xdad   :  { %v3235_v32 = vpop.xlane.xlu1 %3234  ;;  %6236 = vrcp.f32 %v3232_v51  ;;  %v3081_v11 = vmul.f32 %v6227_v26, %v7302_v31  ;;  %v3658_v26 = vld [vmem:[%s7724_s1 + $0x90] sm:$0xff]  ;;  %v3672_v51 = vld [vmem:[%s7724_s1 + $0xa0] sm:$0xff] }
 0xdae   :  { %6238 = vrcp.f32 %v3235_v32  ;;  %5601 = vmatprep.mubr.msk.f32.mxu1 %vm7830_vm11, %v3080_v23  ;;  %vm7840_vm11 = vmmov %vm7776_vm0 }
 0xdaf   :  { %v6229_v27 = vpop.eup %6228  ;;  %5602 = vmatmul.mubr.msk.f32.gmra.mrb[44].mxu1 %vm7831_vm12, %v3081_v11  ;;  %vm7841_vm12 = vmmov %vm7776_vm0 }
 0xdb0   :  { %v6231_v16 = vpop.eup %6230  ;;  %v3238_v25 = vpop.xlane.xlu0 %3237  ;;  %v3162_v33 = vmul.f32 %v6229_v27, %v7310_v24 }
 0xdb1   :  { %v3241_v30 = vpop.xlane.xlu1 %3240  ;;  %6240 = vrcp.f32 %v3238_v25  ;;  %v3163_v60 = vmul.f32 %v6231_v16, %v7312_v6 }
 0xdb2   :  { %6242 = vrcp.f32 %v3241_v30  ;;  %5604 = vmatprep.mubr.msk.f32.mxu1 %vm7832_vm13, %v3162_v33  ;;  %vm7842_vm13 = vmmov %vm7776_vm0 }
 0xdb3   :  { %v6233_v62 = vpop.eup %6232  ;;  %5605 = vmatmul.mubr.msk.f32.gmra.mrb[46].mxu1 %vm7776_vm0, %v3163_v60  ;;  %v3675_v60 = vld [vmem:[%s7724_s1 + $0xb8] sm:$0xff] }
 0xdb4   :  { %v6235_v31 = vpop.eup %6234  ;;  %v3316_v28 = vpop.xlane.xlu0 %3315  ;;  %v3164_v40 = vmul.f32 %v6233_v62, %v7320_v37 }
 0xdb5   :  { %v3319_v61 = vpop.xlane.xlu1 %3318  ;;  %6244 = vrcp.f32 %v3316_v28  ;;  %v3165_v53 = vmul.f32 %v6235_v31, %v7322_v29  ;;  %v3674_v31 = vld [vmem:[%s7724_s1 + $0xb0] sm:$0xff] }
 0xdb6   :  { %6246 = vrcp.f32 %v3319_v61  ;;  %5607 = vmatprep.mubr.msk.f32.mxu1 %vm7833_vm14, %v3164_v40 }
 0xdb7   :  { %v6237_v24 = vpop.eup %6236  ;;  %5608 = vmatmul.mubr.msk.f32.gmra.mrb[48].mxu1 %vm7834_vm5, %v3165_v53  ;;  %vm7843_vm5 = vmmov %vm7835_vm1 }
 0xdb8   :  { %v6239_v6 = vpop.eup %6238  ;;  %v3322_v63 = vpop.xlane.xlu0 %3321  ;;  %v3246_v15 = vmul.f32 %v6237_v24, %v7330_v56 }
 0xdb9   :  { %v3325_v0 = vpop.xlane.xlu1 %3324  ;;  %6248 = vrcp.f32 %v3322_v63  ;;  %v3247_v20 = vmul.f32 %v6239_v6, %v7332_v47 }
 0xdba   :  { %6250 = vrcp.f32 %v3325_v0  ;;  %5610 = vmatprep.mubr.msk.f32.mxu1 %vm7835_vm1, %v3246_v15  ;;  %v3685_v0 = vld [vmem:[%s7724_s1 + $0xc8] sm:$0xff] }
 0xdbb   :  { %v6241_v37 = vpop.eup %6240  ;;  %5611 = vmatmul.mubr.msk.f32.gmra.mrb[50].mxu1 %vm7836_vm6, %v3247_v20  ;;  %v3684_v20 = vld [vmem:[%s7724_s1 + $0xc0] sm:$0xff] }
 0xdbc   :  { %v6243_v29 = vpop.eup %6242  ;;  %v3248_v50 = vmul.f32 %v6241_v37, %v7338_v19 }
 0xdbd   :  { %v3249_v13 = vmul.f32 %v6243_v29, %v7340_v4 }
 0xdbe   :  { %5613 = vmatprep.mubr.msk.f32.mxu1 %vm7837_vm7, %v3248_v50 }
 0xdbf   :  { %v6245_v9 = vpop.eup %6244  ;;  %5614 = vmatmul.mubr.msk.f32.gmra.mrb[52].mxu1 %vm7838_vm8, %v3249_v13  ;;  %vm7844_vm8 = vmmov %vm7835_vm1 }
 0xdc0   :  { %v6247_v56 = vpop.eup %6246  ;;  %v3330_v38 = vmul.f32 %v6245_v9, %v7346_v1  ;;  %v3776_v1 = vld [vmem:[%s7725_s2 + $0x280] sm:$0xff] }
 0xdc1   :  { %v3331_v47 = vmul.f32 %v6247_v56, %v7348_v49  ;;  %v3777_v49 = vld [vmem:[%s7725_s2 + $0x288] sm:$0xff]  ;;  %v3687_v56 = vld [vmem:[%s7724_s1 + $0xd8] sm:$0xff] }
 0xdc2   :  { %5616 = vmatprep.mubr.msk.f32.mxu1 %vm7839_vm10, %v3330_v38  ;;  %vm7845_vm10 = vmmov %vm7835_vm1 }
 0xdc3   :  { %v6249_v58 = vpop.eup %6248  ;;  %5617 = vmatmul.mubr.msk.f32.gmra.mrb[54].mxu1 %vm7840_vm11, %v3331_v47  ;;  %v3686_v47 = vld [vmem:[%s7724_s1 + $0xd0] sm:$0xff]  ;;  %vm7846_vm11 = vmmov %vm7835_vm1 }
 0xdc4   :  { %v6251_v34 = vpop.eup %6250  ;;  %v3332_v19 = vmul.f32 %v6249_v58, %v7354_v2  ;;  %v3778_v2 = vld [vmem:[%s7725_s2 + $0x290] sm:$0xff] }
 0xdc5   :  { %v3333_v4 = vmul.f32 %v6251_v34, %v7356_v41  ;;  %v5945_v41 = vpack.c.bf16 %v3777_v49, %v3776_v1  ;;  %v5949_v5 = vpack.c.bf16 %v3779_v12, %v3778_v2  ;;  %v3697_v49 = vld [vmem:[%s7724_s1 + $0xe8] sm:$0xff] }
 0xdc6   :  { %5619 = vmatprep.mubr.msk.f32.mxu1 %vm7841_vm12, %v3332_v19  ;;  %vm7847_vm12 = vmmov %vm7835_vm1 }
 0xdc7   :  { %5620 = vmatmul.mubr.msk.f32.gmra.mrb[56].mxu1 %vm7842_vm13, %v3333_v4  ;;  %5946 = vmatprep.subr.bf16.mxu0 %v5945_v41  ;;  %vm7848_vm13 = vmmov %vm7835_vm1 }
 0xdc8   :  { %5727 = vmatprep.mubr.msk.f32.mxu1 %vm7735_vm9, %v6313_v8  ;;  %5948 = vmatpush3.bf16.msra.mxu0 %v5945_v41  ;;  %v3696_v41 = vld [vmem:[%s7724_s1 + $0xe0] sm:$0xff] }
 0xdc9   :  { %5950 = vmatprep.subr.bf16.mxu0 %v5949_v5 }
 0xdcc   :  { %5952 = vmatpush3.bf16.msra.mxu0 %v5949_v5 }
 0xdcd   :  { %5954 = vmatprep.subr.bf16.mxu0 %v7446_v10 }
 0xe5e   :  { %v5576_v57 = vpop.f32.mrb[26].mxu1 }
 0xe5f   :  { %v3496_v35 = vpop.f32.mrb[27].mxu1  ;;  %v3661_v21 = vmul.f32 %v5576_v57, %v3657_v43 }
 0xe60   :  { %v3660_v39 = vmul.f32 %v3656_v22, %v3496_v35  ;;  %v3699_v35 = vld [vmem:[%s7724_s1 + $0xf8] sm:$0xff]  ;;  %v3698_v22 = vld [vmem:[%s7724_s1 + $0xf0] sm:$0xff] }
 0xe61   :  { %v3669_v23 = vadd.f32 %v4917_v52, %v3661_v21 }
 0xe62   :  { %v5579_v18 = vpop.f32.mrb[28].mxu1  ;;  %v3668_v25 = vadd.f32 %v4917_v52, %v3660_v39 }
 0xe63   :  { %v3506_v36 = vpop.f32.mrb[29].mxu1  ;;  %v3663_v11 = vmul.f32 %v5579_v18, %v3659_v54  ;;  %v3709_v54 = vld [vmem:[%s7724_s1 + $0x108] sm:$0xff] }
 0xe64   :  { %v3662_v30 = vmul.f32 %v3658_v26, %v3506_v36  ;;  %v3708_v26 = vld [vmem:[%s7724_s1 + $0x100] sm:$0xff] }
 0xe65   :  { %v3671_v40 = vadd.f32 %v4917_v52, %v3663_v11 }
 0xe66   :  { %v5582_v32 = vpop.f32.mrb[30].mxu1  ;;  %v3670_v6 = vadd.f32 %v4917_v52, %v3662_v30  ;;  %v3710_v30 = vld [vmem:[%s7724_s1 + $0x110] sm:$0xff] }
 0xe67   :  { %v3677_v27 = vmul.f32 %v5582_v32, %v3673_v59  ;;  %v3516_v16 = vpop.f32.mrb[31].mxu1 }
 0xe68   :  { %v3676_v33 = vmul.f32 %v3672_v51, %v3516_v16  ;;  %v3711_v16 = vld [vmem:[%s7724_s1 + $0x118] sm:$0xff] }
 0xe69   :  { %v3681_v62 = vadd.f32 %v3677_v27, %v3669_v23 }
 0xe6a   :  { %v3680_v28 = vadd.f32 %v3676_v33, %v3668_v25  ;;  %v5585_v61 = vpop.f32.mrb[32].mxu1 }
 0xe6b   :  { %v3679_v53 = vmul.f32 %v5585_v61, %v3675_v60  ;;  %v3526_v24 = vpop.f32.mrb[33].mxu1  ;;  %v3721_v61 = vld [vmem:[%s7724_s1 + $0x128] sm:$0xff] }
 0xe6c   :  { %v3678_v63 = vmul.f32 %v3674_v31, %v3526_v24 }
 0xe6d   :  { %v3683_v15 = vadd.f32 %v3679_v53, %v3671_v40  ;;  %v3720_v53 = vld [vmem:[%s7724_s1 + $0x120] sm:$0xff] }
 0xe6e   :  { %v3682_v37 = vadd.f32 %v3678_v63, %v3670_v6  ;;  %v5588_v29 = vpop.f32.mrb[34].mxu1 }
 0xe6f   :  { %v3689_v50 = vmul.f32 %v5588_v29, %v3685_v0  ;;  %v3536_v13 = vpop.f32.mrb[35].mxu1  ;;  %v3722_v29 = vld [vmem:[%s7724_s1 + $0x130] sm:$0xff] }
 0xe70   :  { %v3688_v9 = vmul.f32 %v3684_v20, %v3536_v13  ;;  %v3723_v20 = vld [vmem:[%s7724_s1 + $0x138] sm:$0xff] }
 0xe71   :  { %v3693_v38 = vadd.f32 %v3689_v50, %v3681_v62 }
 0xe72   :  { %v3692_v58 = vadd.f32 %v3688_v9, %v3680_v28  ;;  %v5591_v34 = vpop.f32.mrb[36].mxu1 }
 0xe73   :  { %v3691_v19 = vmul.f32 %v5591_v34, %v3687_v56  ;;  %v3546_v4 = vpop.f32.mrb[37].mxu1  ;;  %v3732_v34 = vld [vmem:[%s7724_s1 + $0x140] sm:$0xff] }
 0xe74   :  { %v3690_v1 = vmul.f32 %v3686_v47, %v3546_v4  ;;  %v3733_v47 = vld [vmem:[%s7724_s1 + $0x148] sm:$0xff] }
 0xe75   :  { %v3695_v2 = vadd.f32 %v3691_v19, %v3683_v15 }
 0xe76   :  { %v3694_v12 = vadd.f32 %v3690_v1, %v3682_v37  ;;  %v5594_v5 = vpop.f32.mrb[38].mxu1 }
 0xe77   :  { %v3701_v44 = vmul.f32 %v5594_v5, %v3697_v49  ;;  %v3556_v42 = vpop.f32.mrb[39].mxu1  ;;  %v3734_v5 = vld [vmem:[%s7724_s1 + $0x150] sm:$0xff] }
 0xe78   :  { %v3700_v57 = vmul.f32 %v3696_v41, %v3556_v42  ;;  %v3735_v41 = vld [vmem:[%s7724_s1 + $0x158] sm:$0xff] }
 0xe79   :  { %v3705_v43 = vadd.f32 %v3701_v44, %v3693_v38 }
 0xe7a   :  { %v3704_v18 = vadd.f32 %v3700_v57, %v3692_v58  ;;  %v5597_v21 = vpop.f32.mrb[40].mxu1 }
 0xe7b   :  { %v3703_v36 = vmul.f32 %v5597_v21, %v3699_v35  ;;  %v3566_v52 = vpop.f32.mrb[41].mxu1  ;;  %v3744_v21 = vld [vmem:[%s7724_s1 + $0x160] sm:$0xff] }
 0xe7c   :  { %v3702_v39 = vmul.f32 %v3698_v22, %v3566_v52  ;;  %v3745_v22 = vld [vmem:[%s7724_s1 + $0x168] sm:$0xff] }
 0xe7d   :  { %v3707_v59 = vadd.f32 %v3703_v36, %v3695_v2 }
 0xe7e   :  { %v3706_v51 = vadd.f32 %v3702_v39, %v3694_v12  ;;  %v5600_v32 = vpop.f32.mrb[42].mxu1 }
 0xe7f   :  { %v3713_v23 = vmul.f32 %v5600_v32, %v3709_v54  ;;  %v3576_v11 = vpop.f32.mrb[43].mxu1  ;;  %v3746_v32 = vld [vmem:[%s7724_s1 + $0x170] sm:$0xff] }
 0xe80   :  { %v3712_v27 = vmul.f32 %v3708_v26, %v3576_v11  ;;  %v3747_v26 = vld [vmem:[%s7724_s1 + $0x178] sm:$0xff] }
 0xe81   :  { %v3717_v25 = vadd.f32 %v3713_v23, %v3705_v43 }
 0xe82   :  { %v3716_v33 = vadd.f32 %v3712_v27, %v3704_v18  ;;  %v5603_v60 = vpop.f32.mrb[44].mxu1 }
 0xe83   :  { %v3715_v62 = vmul.f32 %v5603_v60, %v3711_v16  ;;  %v3586_v31 = vpop.f32.mrb[45].mxu1 }
 0xe84   :  { %v3714_v28 = vmul.f32 %v3710_v30, %v3586_v31 }
 0xe85   :  { %v3719_v40 = vadd.f32 %v3715_v62, %v3707_v59 }
 0xe86   :  { %v3718_v24 = vadd.f32 %v3714_v28, %v3706_v51  ;;  %v5606_v6 = vpop.f32.mrb[46].mxu1 }
 0xe87   :  { %v3725_v63 = vmul.f32 %v5606_v6, %v3721_v61  ;;  %v3596_v0 = vpop.f32.mrb[47].mxu1  ;;  %v3880_v6 = vld [vmem:[%s7725_s2 + $0x2b8] sm:$0xff] }
 0xe88   :  { %v3724_v15 = vmul.f32 %v3720_v53, %v3596_v0 }
 0xe89   :  { %v3729_v37 = vadd.f32 %v3725_v63, %v3717_v25 }
 0xe8a   :  { %v3728_v50 = vadd.f32 %v3724_v15, %v3716_v33  ;;  %v5609_v13 = vpop.f32.mrb[48].mxu1 }
 0xe8b   :  { %v3727_v9 = vmul.f32 %v5609_v13, %v3723_v20  ;;  %v3606_v56 = vpop.f32.mrb[49].mxu1 }
 0xe8c   :  { %v3726_v38 = vmul.f32 %v3722_v29, %v3606_v56 }
 0xe8d   :  { %v3731_v58 = vadd.f32 %v3727_v9, %v3719_v40 }
 0xe8e   :  { %v3730_v19 = vadd.f32 %v3726_v38, %v3718_v24  ;;  %v5612_v4 = vpop.f32.mrb[50].mxu1  ;;  %v3879_v24 = vld [vmem:[%s7725_s2 + $0x2b0] sm:$0xff] }
 0xe8f   :  { %v3737_v1 = vmul.f32 %v5612_v4, %v3733_v47  ;;  %v3616_v49 = vpop.f32.mrb[51].mxu1  ;;  %v5957_v20 = vpack.c.bf16 %v3880_v6, %v3879_v24 }
 0xe90   :  { %v3736_v2 = vmul.f32 %v3732_v34, %v3616_v49 }
 0xe91   :  { %v3741_v12 = vadd.f32 %v3737_v1, %v3729_v37 }
 0xe92   :  { %v3740_v44 = vadd.f32 %v3736_v2, %v3728_v50  ;;  %v5615_v42 = vpop.f32.mrb[52].mxu1 }
 0xe93   :  { %v3739_v57 = vmul.f32 %v5615_v42, %v3735_v41  ;;  %v3626_v35 = vpop.f32.mrb[53].mxu1 }
 0xe94   :  { %v3738_v43 = vmul.f32 %v3734_v5, %v3626_v35 }
 0xe95   :  { %v3743_v18 = vadd.f32 %v3739_v57, %v3731_v58 }
 0xe96   :  { %v3742_v36 = vadd.f32 %v3738_v43, %v3730_v19  ;;  %v5618_v52 = vpop.f32.mrb[54].mxu1 }
 0xe97   :  { %v3749_v39 = vmul.f32 %v5618_v52, %v3745_v22  ;;  %v3636_v54 = vpop.f32.mrb[55].mxu1 }
 0xe98   :  { %v3748_v59 = vmul.f32 %v3744_v21, %v3636_v54 }
 0xe99   :  { %v3753_v51 = vadd.f32 %v3749_v39, %v3741_v12 }
 0xe9a   :  { %v3752_v23 = vadd.f32 %v3748_v59, %v3740_v44  ;;  %v5621_v11 = vpop.f32.mrb[56].mxu1 }
 0xe9b   :  { %v3762_v27 = vmul.f32 1.442695, %v3753_v51  ;;  %v3751_v16 = vmul.f32 %v5621_v11, %v3747_v26  ;;  %v3646_v25 = vpop.f32.mrb[57].mxu1  ;;  %vm3757_vm14 = vcmp.gt.f32.partialorder %v3753_v51, 0.0 }
 0xe9c   :  { %v3760_v30 = vmul.f32 1.442695, %v3752_v23  ;;  %v3750_v33 = vmul.f32 %v3746_v32, %v3646_v25  ;;  %vm3756_vm0 = vcmp.gt.f32.partialorder %v3752_v23, 0.0 }
 0xe9d   :  { %6252 = vpow2.f32 %v3762_v27  ;;  %v3755_v60 = vadd.f32 %v3751_v16, %v3743_v18 }
 0xe9e   :  { %6254 = vpow2.f32 %v3760_v30  ;;  %v3754_v62 = vadd.f32 %v3750_v33, %v3742_v36 }
 0xe9f   :  { %v3766_v31 = vmul.f32 1.442695, %v3755_v60  ;;  %vm3759_vm7 = vcmp.gt.f32.partialorder %v3755_v60, 0.0 }
 0xea0   :  { %v3764_v28 = vmul.f32 1.442695, %v3754_v62  ;;  %vm3758_vm6 = vcmp.gt.f32.partialorder %v3754_v62, 0.0 }
 0xea1   :  { %6256 = vpow2.f32 %v3766_v31 }
 0xea2   :  { %6258 = vpow2.f32 %v3764_v28 }
 0xea7   :  { %v6253_v61 = vpop.eup %6252 }
 0xea8   :  { %v6255_v40 = vpop.eup %6254  ;;  %v4919_v53 = vadd.f32 -1.0, %v6253_v61 }
 0xea9   :  { %v4918_v63 = vadd.f32 -1.0, %v6255_v40 }
 0xeaa   :  { %v3773_v29 = vsel %vm3757_vm14, %v3753_v51, %v4919_v53 }
 0xeab   :  { %v6257_v0 = vpop.eup %6256  ;;  %v3772_v15 = vsel %vm3756_vm0, %v3752_v23, %v4918_v63  ;;  %vm7849_vm0 = vmmov %vm7835_vm1 }
 0xeac   :  { %v6259_v37 = vpop.eup %6258  ;;  %5630 = vmatprep.mubr.msk.f32.mxu0 %vm7843_vm5, %v3772_v15  ;;  %v4921_v50 = vadd.f32 -1.0, %v6257_v0 }
 0xead   :  { %5631 = vmatmul.mubr.msk.f32.vlgmr.msra.gmra.mrb[32].mxu0 %vm7835_vm1, %v3773_v29  ;;  %v4920_v13 = vadd.f32 -1.0, %v6259_v37 }
 0xeae   :  { %5956 = vmatpush3.bf16.msra.mxu0 %v7446_v10  ;;  %v3775_v56 = vsel %vm3759_vm7, %v3755_v60, %v4921_v50  ;;  %vm7850_vm7 = vmmov %vm7849_vm0 }
 0xeaf   :  { %v3774_v9 = vsel %vm3758_vm6, %v3754_v62, %v4920_v13  ;;  %5958 = vmatprep.subr.bf16.mxu0 %v5957_v20 }
 0xeb0   :  { %5633 = vmatprep.mubr.msk.f32.mxu0 %vm7844_vm8, %v3774_v9  ;;  %vm7851_vm8 = vmmov %vm7849_vm0 }
 0xeb1   :  { %5634 = vmatmul.mubr.msk.f32.gmra.mrb[34].mxu0 %vm7845_vm10, %v3775_v56  ;;  %vm7852_vm10 = vmmov %vm7849_vm0 }
 0xeb2   :  { %5960 = vmatpush3.bf16.msra.mxu0 %v5957_v20 }
 0xf80   :  { %v5632_v38 = vpop.f32.mrb[32].mxu0 }
 0xf81   :  { %v3858_v47 = vpop.f32.mrb[33].mxu0 }
 0xf82   :  { %v5961_v58 = vpack.c.bf16 %v5632_v38, %v3858_v47  ;;  %5644 = vmatprep.mubr.msk.f32.mxu0 %vm7846_vm11, %v3858_v47  ;;  %vm7857_vm11 = vmmov %vm7849_vm0 }
 0xf83   :  { %5645 = vmatmul.mubr.msk.f32.vlgmr.msra.gmra.mrb[36].mxu0 %vm7847_vm12, %v5632_v38  ;;  %vm7858_vm12 = vmmov %vm7849_vm0 }
 0xf84   :  { %v5635_v34 = vpop.f32.mrb[34].mxu0  ;;  %5962 = vmatprep.subr.bf16.mxu0 %v5961_v58 }
 0xf85   :  { %v3868_v19 = vpop.f32.mrb[35].mxu0  ;;  %5964 = vmatpush3.bf16.msra.mxu0 %v5961_v58 }
 0xf86   :  { %v5965_v10 = vpack.c.bf16 %v5635_v34, %v3868_v19  ;;  %5647 = vmatprep.mubr.msk.f32.mxu0 %vm7848_vm13, %v3868_v19  ;;  %vm7859_vm13 = vmmov %vm7849_vm0 }
 0xf87   :  { %5648 = vmatmul.mubr.msk.f32.gmra.mrb[38].mxu0 %vm7849_vm0, %v5635_v34 }
 0xf88   :  { %5966 = vmatprep.subr.bf16.mxu0 %v5965_v10 }
 0xf89   :  { %5968 = vmatpush3.bf16.msra.mxu0 %v5965_v10 }
 0xf8a   :  { %5969 = vmatprep.subr.bf16.mxu0 %v6311_v7 }
0x1056   :  { %v5646_v4 = vpop.f32.mrb[36].mxu0 }
0x1057   :  { %4017 = vperm.xlu1 %6089, %v5646_v4   ;;  %v3959_v1 = vpop.f32.mrb[37].mxu0 }
0x1058   :  { %4012 = vperm.xlu0 %6088, %v3959_v1  }
0x105a   :  { %v5649_v49 = vpop.f32.mrb[38].mxu0 }
0x105b   :  { %4027 = vperm.xlu1 %6089, %v5649_v49   ;;  %v3969_v2 = vpop.f32.mrb[39].mxu0 }
0x105c   :  { %6090 = vset.pattern.permute.xlu0 %v6310_v55 }
0x105f   :  { %4022 = vperm.xlu1 %6089, %v3969_v2  }
0x1088   :  { %3978 = vxpose.xlu1.b32.start [1/4] (short) (narrow) %v3959_v1, 8  ;;  %v4930_v1 = vld [vmem:[%s7725_s2 + $0x368] ss:$0 sm:$0xff] }
0x108c   :  { %3979 = vxpose.xlu1.b32.cont [2/4] (short) (narrow) %v5646_v4, 8 }
0x1090   :  { %3980 = vxpose.xlu1.b32.cont [3/4] (short) (narrow) %v3969_v2, 8 }
0x1094   :  { %3981 = vxpose.xlu1.b32.end [4/4] (short) (narrow) %v5649_v49, 8 }
0x10b2   :  { %6091 = vset.pattern.permute.xlu1 %v6310_v55 }
0x10d6   :  { %v4018_v41 = vpop.permute.xlu1 %4017 }
0x10d7   :  { %v4013_v57 = vpop.permute.xlu0 %4012 }
0x10da   :  { %v4028_v12 = vpop.permute.xlu1 %4027 }
0x10de   :  { %v4023_v5 = vpop.permute.xlu1 %4022 }
0x1108   :  { %v3994_v44 = vpop.trf.xlu1 }
0x1109   :  { %v4033_v42 = vrot.slane %v3994_v44, %v6599_v14 }
0x110b   :  { %v4037_v35 = vadd.f32 %v4033_v42, %v4028_v12  ;;  %v4035_v43 = vadd.f32 %v4033_v42, %v4018_v41  ;;  %v4034_v22 = vadd.f32 %v4033_v42, %v4013_v57  ;;  %v4036_v18 = vadd.f32 %v4033_v42, %v4023_v5 }
0x110d   :  { %vm4041_vm14 = vcmp.gt.f32.partialorder %v4037_v35, 0.0  ;;  %v4045_v21 = vmul.f32 0.2, %v4037_v35  ;;  %vm4039_vm5 = vcmp.gt.f32.partialorder %v4035_v43, 0.0  ;;  %v4043_v36 = vmul.f32 0.2, %v4035_v43 }
0x110e   :  { %vm4038_vm1 = vcmp.gt.f32.partialorder %v4034_v22, 0.0  ;;  %v4042_v52 = vmul.f32 0.2, %v4034_v22  ;;  %v4044_v55 = vmul.f32 0.2, %v4036_v18  ;;  %vm4040_vm6 = vcmp.gt.f32.partialorder %v4036_v18, 0.0 }
0x110f   :  { %v4049_v39 = vsel %vm4041_vm14, %v4037_v35, %v4045_v21  ;;  %v4047_v54 = vsel %vm4039_vm5, %v4035_v43, %v4043_v36  ;;  %vm7860_vm14 = vmmov %vm7849_vm0  ;;  %v4273_v43 = vld [vmem:[%s7725_s2 + $0x2c0] sm:$0xff] }
0x1110   :  { %v4053_v59 = vsel %vm2697_vm4, %v4049_v39, -1e+30  ;;  %v4051_v14 = vsel %vm2695_vm15, %v4047_v54, -1e+30  ;;  %v4046_v26 = vsel %vm4038_vm1, %v4034_v22, %v4042_v52  ;;  %v4048_v11 = vsel %vm4040_vm6, %v4036_v18, %v4044_v55  ;;  %vm7853_vm4 = vmmov %vm7849_vm0  ;;  %v4274_v22 = vld [vmem:[%s7725_s2 + $0x2c8] sm:$0xff]  ;;  %v4275_v52 = vld [vmem:[%s7725_s2 + $0x2d0] sm:$0xff] }
0x1111   :  { %v4063_v51 = vsel %vm7850_vm7, %v4053_v59, -inf  ;;  %v4057_v32 = vsel %vm7851_vm8, %v4051_v14, -inf  ;;  %v4050_v23 = vsel %vm2694_vm2, %v4046_v26, -1e+30  ;;  %v4052_v17 = vsel %vm2696_vm3, %v4048_v11, -1e+30  ;;  %vm7854_vm15 = vmmov %vm7849_vm0 }
0x1112   :  { %4064 = vmax.xlane.f32.xlu1 %v4063_v51  ;;  %4058 = vmax.xlane.f32.xlu0 %v4057_v32  ;;  %v4054_v27 = vsel %vm7852_vm10, %v4050_v23, -inf  ;;  %v4060_v45 = vsel %vm7853_vm4, %v4052_v17, -inf  ;;  %vm7855_vm2 = vmmov %vm7849_vm0  ;;  %v39_v21 = vld [vmem:[%s7724_s1 + $0x180] sm:$0x3]  ;;  %v5976_v36 = vpack.c.bf16 %v4274_v22, %v4273_v43  ;;  %v4276_v39 = vld [vmem:[%s7725_s2 + $0x2d8] sm:$0xff]  ;;  %vm4784_vm4 = vcmask 254976  }
0x1113   :  { %vm7856_vm3 = vmmov %vm7849_vm0  ;;  %v5979_v54 = vpack.c.bf16 %v4276_v39, %v4275_v52  ;;  %v4869_v55 = vld [vmem:[%s7725_s2 + $0x366] ss:$0 sm:$0xff]  ;;  %v4357_v26 = vld [vmem:[%s7725_s2 + $0x308] sm:$0xff] }
0x1114   :  { %vm7861_vm5 = vmmov %vm7849_vm0  ;;  %v4359_v32 = vld [vmem:[%s7725_s2 + $0x318] sm:$0xff] }
0x1115   :  { %vm7862_vm1 = vmmov %vm7849_vm0 }
0x1116   :  { %4055 = vmax.xlane.f32.xlu0 %v4054_v27  ;;  %vm7863_vm6 = vmmov %vm7849_vm0 }
0x1117   :  { %vm7864_vm7 = vmmov %vm7849_vm0 }
0x1118   :  { %vm7865_vm8 = vmmov %vm7849_vm0 }
0x1119   :  { %vm7867_vm10 = vmmov %vm7849_vm0 }
0x111a   :  { %4061 = vmax.xlane.f32.xlu0 %v4060_v45 }
0x119f   :  { %v4059_v16 = vpop.xlane.xlu0 %4058  ;;  %v4065_v60 = vpop.xlane.xlu1 %4064 }
0x11a0   :  { %v4067_v25 = vsub.f32 %v4051_v14, %v4059_v16  ;;  %v4069_v46 = vsub.f32 %v4053_v59, %v4065_v60  ;;  %v7617_v59 = vadd.f32 %v4869_v55, %v6884_v3  ;;  %v4356_v14 = vld [vmem:[%s7725_s2 + $0x300] sm:$0xff]  ;;  %v4358_v3 = vld [vmem:[%s7725_s2 + $0x310] sm:$0xff] }
0x11a1   :  { %v5982_v51 = vpack.c.bf16 %v4357_v26, %v4356_v14  ;;  %v4945_v14 = vld [vmem:[%s7725_s2 + $0x36d] ss:$0 sm:$0xff] }
0x11a2   :  { %v4072_v30 = vmul.f32 1.442695, %v4067_v25  ;;  %v4076_v53 = vmul.f32 1.442695, %v4069_v46 }
0x11a3   :  { %v4056_v33 = vpop.xlane.xlu0 %4055 }
0x11a4   :  { %v4066_v62 = vsub.f32 %v4050_v23, %v4056_v33  ;;  %6260 = vpow2.f32 %v4072_v30  ;;  %v5985_v23 = vpack.c.bf16 %v4359_v32, %v4358_v3  ;;  %v4438_v30 = vld [vmem:[%s7725_s2 + $0x2e0] sm:$0xff]  ;;  %v4439_v33 = vld [vmem:[%s7725_s2 + $0x2e8] sm:$0xff] }
0x11a5   :  { %v5988_v60 = vpack.c.bf16 %v4439_v33, %v4438_v30 }
0x11a6   :  { %v4070_v31 = vmul.f32 1.442695, %v4066_v62  ;;  %v4440_v62 = vld [vmem:[%s7725_s2 + $0x2f0] sm:$0xff] }
0x11a7   :  { %v4062_v28 = vpop.xlane.xlu0 %4061 }
0x11a8   :  { %6262 = vpow2.f32 %v4070_v31  ;;  %v4068_v61 = vsub.f32 %v4052_v17, %v4062_v28  ;;  %v4936_v17 = vld [vmem:[%s7725_s2 + $0x369] ss:$0 sm:$0xff]  ;;  %v4441_v31 = vld [vmem:[%s7725_s2 + $0x2f8] sm:$0xff] }
0x11a9   :  { %v5991_v28 = vpack.c.bf16 %v4441_v31, %v4440_v62 }
0x11aa   :  { %v4074_v40 = vmul.f32 1.442695, %v4068_v61 }
0x11ac   :  { %6264 = vpow2.f32 %v4074_v40 }
0x11ad   :  { %6266 = vpow2.f32 %v4076_v53  ;;  %v4940_v53 = vld [vmem:[%s7725_s2 + $0x36a] ss:$0 sm:$0xff] }
0x11ae   :  { %v6261_v48 = vpop.eup %6260 }
0x11af   :  { %v4081_v24 = vsel %vm7854_vm15, %v6261_v48, 0.0 }
0x11b0   :  { %4082 = vadd.xlane.f32.xlu0 %v4081_v24 }
0x11b2   :  { %v6263_v6 = vpop.eup %6262 }
0x11b3   :  { %v4078_v63 = vsel %vm7855_vm2, %v6263_v6, 0.0 }
0x11b4   :  { %4079 = vadd.xlane.f32.xlu0 %v4078_v63 }
0x11b6   :  { %v6265_v0 = vpop.eup %6264 }
0x11b7   :  { %v4084_v15 = vsel %vm7856_vm3, %v6265_v0, 0.0  ;;  %v6267_v20 = vpop.eup %6266 }
0x11b8   :  { %4085 = vadd.xlane.f32.xlu0 %v4084_v15  ;;  %v4087_v37 = vsel %vm7857_vm11, %v6267_v20, 0.0  ;;  %v4620_v15 = vld [vmem:[%s7725_s2 + $0x328] sm:$0xff] }
0x11bc   :  { %4088 = vadd.xlane.f32.xlu0 %v4087_v37 }
0x123d   :  { %v4083_v29 = vpop.xlane.xlu0 %4082 }
0x123e   :  { %6268 = vrcp.f32 %v4083_v29  ;;  %v4622_v29 = vld [vmem:[%s7725_s2 + $0x338] sm:$0xff] }
0x1241   :  { %v4080_v50 = vpop.xlane.xlu0 %4079 }
0x1242   :  { %6270 = vrcp.f32 %v4080_v50 }
0x1245   :  { %v4086_v13 = vpop.xlane.xlu0 %4085 }
0x1246   :  { %6272 = vrcp.f32 %v4086_v13 }
0x1248   :  { %v6269_v56 = vpop.eup %6268 }
0x1249   :  { %v4089_v9 = vpop.xlane.xlu0 %4088  ;;  %v4095_v58 = vmul.f32 %v6269_v56, %v6261_v48 }
0x124a   :  { %6274 = vrcp.f32 %v4089_v9 }
0x124c   :  { %v6271_v38 = vpop.eup %6270 }
0x124d   :  { %v4094_v47 = vmul.f32 %v6271_v38, %v6263_v6 }
0x124f   :  { %5658 = vmatprep.mubr.msk.f32.mxu0 %vm7858_vm12, %v4094_v47 }
0x1250   :  { %v6273_v34 = vpop.eup %6272  ;;  %5659 = vmatmul.mubr.msk.f32.vlgmr.msra.gmra.mrb[40].mxu0 %vm7859_vm13, %v4095_v58 }
0x1251   :  { %v4096_v19 = vmul.f32 %v6273_v34, %v6265_v0  ;;  %v4619_v0 = vld [vmem:[%s7725_s2 + $0x320] sm:$0xff] }
0x1252   :  { %v6000_v37 = vpack.c.bf16 %v4620_v15, %v4619_v0 }
0x1253   :  { %5661 = vmatprep.mubr.msk.f32.mxu0 %vm7849_vm0, %v4096_v19 }
0x1254   :  { %v6275_v10 = vpop.eup %6274  ;;  %6001 = vmatpush3.bf16.msra.mxu1 %v6000_v37 }
0x1255   :  { %v4097_v4 = vmul.f32 %v6275_v10, %v6267_v20  ;;  %v4621_v20 = vld [vmem:[%s7725_s2 + $0x330] sm:$0xff]  ;;  %6002 = vmatprep.subr.bf16.mxu1 %v6311_v7 }
0x1256   :  { %v6003_v50 = vpack.c.bf16 %v4622_v29, %v4621_v20 }
0x1257   :  { %5662 = vmatmul.mubr.msk.f32.gmra.mrb[42].mxu0 %vm7860_vm14, %v4097_v4 }
0x1258   :  { %5672 = vmatprep.mubr.msk.f32.mxu0 %vm7735_vm9, %v6313_v8  ;;  %6004 = vmatpush3.bf16.msra.mxu1 %v6003_v50 }
0x1323   :  { %v5660_v49 = vpop.f32.mrb[40].mxu0 }
0x1324   :  { %v4187_v2 = vadd.f32 %v5660_v49, %v4930_v1  ;;  %v4181_v41 = vpop.f32.mrb[41].mxu0 }
0x1325   :  { %v4182_v12 = vadd.f32 %v4930_v1, %v4181_v41 }
0x1327   :  { %v5970_v5 = vpack.c.bf16 %v4187_v2, %v4182_v12 }
0x1329   :  { %5971 = vmatpush3.bf16.msra.mxu0 %v5970_v5  ;;  %v4702_v5 = vld [vmem:[%s7725_s2 + $0x340] sm:$0xff] }
0x132a   :  { %v5663_v44 = vpop.f32.mrb[42].mxu0  ;;  %5972 = vmatprep.subr.bf16.mxu0 %v6311_v7 }
0x132b   :  { %v4197_v42 = vadd.f32 %v5663_v44, %v4930_v1  ;;  %v4191_v57 = vpop.f32.mrb[43].mxu0  ;;  %v4703_v44 = vld [vmem:[%s7725_s2 + $0x348] sm:$0xff] }
0x132c   :  { %v4192_v35 = vadd.f32 %v4930_v1, %v4191_v57 }
0x132e   :  { %v5973_v18 = vpack.c.bf16 %v4197_v42, %v4192_v35  ;;  %v6006_v42 = vpack.c.bf16 %v4703_v44, %v4702_v5 }
0x1330   :  { %5974 = vmatpush3.bf16.msra.mxu0 %v5973_v18 }
0x1331   :  { %5975 = vmatprep.subr.bf16.mxu0 %v6311_v7 }
0x1333   :  { %5673 = vmatmul.mubr.msk.f32.vlgmr.msra.gmra.mrb[44].mxu0 %vm7861_vm5, %v39_v21  ;;  %v4704_v21 = vld [vmem:[%s7725_s2 + $0x350] sm:$0xff] }
0x1334   :  { %5977 = vmatpush3.bf16.msra.mxu0 %v5976_v36  ;;  %5683 = vmatprep.mubr.msk.f32.mxu0 %vm7735_vm9, %v6313_v8  ;;  %v4705_v36 = vld [vmem:[%s7725_s2 + $0x358] sm:$0xff] }
0x1335   :  { %5978 = vmatprep.subr.bf16.mxu0 %v6311_v7  ;;  %v6009_v52 = vpack.c.bf16 %v4705_v36, %v4704_v21 }
0x1338   :  { %5980 = vmatpush3.bf16.msra.mxu0 %v5979_v54 }
0x1339   :  { %5981 = vmatprep.subr.bf16.mxu0 %v6311_v7 }
0x133b   :  { %5684 = vmatmul.mubr.msk.f32.vlgmr.msra.gmra.mrb[46].mxu0 %vm7862_vm1, %v7617_v59 }
0x133c   :  { %5694 = vmatprep.mubr.msk.f32.mxu0 %vm7735_vm9, %v6313_v8  ;;  %5983 = vmatpush3.bf16.msra.mxu0 %v5982_v51 }
0x133d   :  { %5984 = vmatprep.subr.bf16.mxu0 %v6311_v7 }
0x1340   :  { %5986 = vmatpush3.bf16.msra.mxu0 %v5985_v23 }
0x1341   :  { %5987 = vmatprep.subr.bf16.mxu0 %v6311_v7 }
0x1406   :  { %v7638_v11 = vpop.f32.mrb[44].mxu0 }
0x1407   :  { %v5674_v27 = vpop.f32.mrb[45].mxu0 }
0x140e   :  { %v4351_v45 = vpop.f32.mrb[46].mxu0 }
0x140f   :  { %v4352_v16 = vadd.f32 %v4936_v17, %v4351_v45  ;;  %v5685_v25 = vpop.f32.mrb[47].mxu0 }
0x1411   :  { %6276 = vtanh.f32 %v4352_v16 }
0x141b   :  { %v6277_v46 = vpop.eup %6276 }
0x141c   :  { %5695 = vmatmul.mubr.msk.f32.vlgmr.msra.gmra.mrb[48].mxu0 %vm7863_vm6, %v6277_v46 }
0x141d   :  { %5989 = vmatpush3.bf16.msra.mxu0 %v5988_v60  ;;  %5705 = vmatprep.mubr.msk.f32.mxu0 %vm7735_vm9, %v6313_v8 }
0x141e   :  { %5990 = vmatprep.subr.bf16.mxu0 %v6311_v7 }
0x1421   :  { %5992 = vmatpush3.bf16.msra.mxu0 %v5991_v28 }
0x1422   :  { %5993 = vmatprep.subr.bf16.mxu0 %v6311_v7 }
0x1424   :  { %5706 = vmatmul.mubr.msk.f32.vlgmr.msra.gmra.mrb[50].mxu0 %vm7864_vm7, %v7638_v11 }
0x1425   :  { %5995 = vmatpush3.bf16.msra.mxu0 %v5982_v51  ;;  %5716 = vmatprep.mubr.msk.f32.mxu0 %vm7735_vm9, %v6313_v8 }
0x1426   :  { %5996 = vmatprep.subr.bf16.mxu0 %v6311_v7 }
0x1429   :  { %5998 = vmatpush3.bf16.msra.mxu0 %v5985_v23 }
0x142a   :  { %6005 = vmatprep.subr.bf16.mxu0 %v6311_v7 }
0x14ef   :  { %v4434_v61 = vpop.f32.mrb[48].mxu0 }
0x14f0   :  { %v5696_v40 = vpop.f32.mrb[49].mxu0 }
0x14f7   :  { %v4516_v48 = vpop.f32.mrb[50].mxu0 }
0x14f8   :  { %v4517_v24 = vadd.f32 %v4940_v53, %v4516_v48  ;;  %v5707_v6 = vpop.f32.mrb[51].mxu0 }
0x14fa   :  { %6278 = vtanh.f32 %v4517_v24 }
0x1504   :  { %v6279_v63 = vpop.eup %6278 }
0x1505   :  { %5717 = vmatmul.mubr.msk.f32.vlgmr.msra.gmra.mrb[52].mxu0 %vm7865_vm8, %v6279_v63 }
0x1506   :  { %5738 = vmatprep.mubr.msk.f32.mxu0 %vm7735_vm9, %v6313_v8  ;;  %v4938_v8 = vld [vmem:[%s7725_s2 + $0x36b] ss:$0 sm:$0xff]  ;;  %6007 = vmatpush3.bf16.msra.mxu0 %v6006_v42  ;;  %vm7866_vm9 = vmmov %vm7849_vm0 }
0x1507   :  { %v4435_v9 = vadd.f32 %v4938_v8, %v4434_v61  ;;  %6008 = vmatprep.subr.bf16.mxu0 %v6311_v7  ;;  %v4943_v7 = vld [vmem:[%s7725_s2 + $0x36c] ss:$0 sm:$0xff] }
0x150a   :  { %6010 = vmatpush3.bf16.msra.mxu0 %v6009_v52 }
0x15d8   :  { %v4590_v13 = vpop.f32.mrb[52].mxu0 }
0x15d9   :  { %v4591_v56 = vadd.f32 %v4938_v8, %v4590_v13  ;;  %v5718_v38 = vpop.f32.mrb[53].mxu0 }
0x15db   :  { %v4594_v47 = vmax.f32 %v4435_v9, %v4591_v56 }
0x15dd   :  { %v4595_v58 = vsub.f32 %v4435_v9, %v4594_v47  ;;  %v4598_v34 = vsub.f32 %v4591_v56, %v4594_v47 }
0x15df   :  { %v4596_v19 = vmul.f32 1.442695, %v4595_v58  ;;  %v4599_v10 = vmul.f32 1.442695, %v4598_v34 }
0x15e1   :  { %6280 = vpow2.f32 %v4596_v19 }
0x15e2   :  { %6282 = vpow2.f32 %v4599_v10 }
0x15eb   :  { %v6281_v4 = vpop.eup %6280 }
0x15ec   :  { %v6283_v1 = vpop.eup %6282 }
0x15ed   :  { %v4601_v49 = vadd.f32 %v6283_v1, %v6281_v4 }
0x15ef   :  { %6284 = vrcp.f32 %v4601_v49 }
0x15f9   :  { %v6285_v2 = vpop.eup %6284 }
0x15fa   :  { %v4611_v41 = vmul.f32 %v6285_v2, %v6283_v1  ;;  %v4604_v12 = vmul.f32 %v6285_v2, %v6281_v4 }
0x15fc   :  { %4614 = vperm.xlu1 %6091, %v4611_v41   ;;  %4607 = vperm.xlu0 %6090, %v4604_v12  }
0x167b   :  { %v4615_v57 = vpop.permute.xlu1 %4614  ;;  %v4608_v35 = vpop.permute.xlu0 %4607 }
0x167c   :  { %v4617_v43 = vmul.f32 %v4615_v57, %v7638_v11  ;;  %v4610_v22 = vmul.f32 %v7617_v59, %v4608_v35 }
0x167e   :  { %v4618_v18 = vadd.f32 %v4617_v43, %v4610_v22 }
0x1680   :  { %5728 = vmatmul.mubr.msk.f32.vlgmr.msra.gmra.mrb[58].mxu1 %vm7866_vm9, %v4618_v18 }
0x1753   :  { %v4697_v39 = vpop.f32.mrb[58].mxu1 }
0x1754   :  { %v4698_v54 = vadd.f32 %v4943_v7, %v4697_v39  ;;  %v5729_v55 = vpop.f32.mrb[59].mxu1 }
0x1756   :  { %v4701_v59 = vmax.f32 %v4698_v54, 0.0 }
0x1758   :  { %5739 = vmatmul.mubr.msk.f32.vlgmr.msra.gmra.mrb[54].mxu0 %vm7867_vm10, %v4701_v59 }
0x182b   :  { %v4780_v26 = vpop.f32.mrb[54].mxu0 }
0x182c   :  { %v4781_v3 = vadd.f32 %v4945_v14, %v4780_v26  ;;  %v5740_v51 = vpop.f32.mrb[55].mxu0 }
0x182e   :  { %4785 = vst.msk [vmem:[#allocation2] sm:$0x3] %vm4784_vm4, %v4781_v3 }
0x182f   :  { %6297 = shalt.err (!%p6294_p4)
}
0x1830   :  { %s6298_s21 = scalar_lea.hbm %s7726_s3, 32 }
0x1831   :  { %p6299_p5 = scmp.ne.s32.totalorder %s7726_s3, %s6298_s21  ;;  %p6302_p6 = scmp.lt.u32.totalorder %s6298_s21, %s7726_s3 }
0x1833   :  { %p6304_p7 = pnand %p6302_p6, %p6299_p5 }
0x1835   :  { %6307 = shalt.err (!%p6304_p7)
}
0x1836   :  { %4795 = dma.vmem_to_hbm [thread:$0]  %s4793_s17, 32, %s7726_s3, [#allocation3]  }
0x1837   :  { %6308 = dma.done.wait [#allocation3], 32  }
0x1838   :  { %6309 = vsyncadd [#allocation3], 4294967264 }
0x1839   :  { %4799 = vsyncpa [#allocation3], 1 }

</bundles_post_ra>
